<compile_context>
chip_gen: v6e
topology: v6e:2x2x1
jax: 0.10.0
libtpu: 0.0.40
codegen_flags: <defaults>
</compile_context>

<pallas_src>
import functools

import jax
import jax.numpy as jnp
from jax import lax
from jax.experimental import pallas as pl
from jax.experimental.pallas import tpu as pltpu

# ----------------------------- hyperparameters ------------------------------
N_EMBD = 32          # n_embd
N_HEAD = 4           # n_head
HEAD_SIZE = N_EMBD // N_HEAD
BLOCK_SIZE = 8       # block_size (max sequence length / tril size)
LN_EPS = 1e-5


# --------------------------------- kernel -----------------------------------
def gpt_block_kernel(x_ref,
                     ln1g_ref, ln1b_ref,
                     wq_ref, wk_ref, wv_ref,
                     wp_ref, bp_ref,
                     ln2g_ref, ln2b_ref,
                     w1_ref, b1_ref, w2_ref, b2_ref,
                     o_ref,
                     *, bb, seq, n_head, head_size):
    C = n_head * head_size
    N = bb * seq

    # (Bb, T, C) block -> (Bb*T, C): leading-dim merge (layout no-op) so every
    # matmul fills the MXU sublane dim with Bb*T rows.
    x = x_ref[...].astype(jnp.float32).reshape(N, C)

    def layernorm(h, g_ref, b_ref):
        mu = jnp.mean(h, axis=-1, keepdims=True)
        d = h - mu
        var = jnp.mean(d * d, axis=-1, keepdims=True)
        return d * lax.rsqrt(var + LN_EPS) * g_ref[...] + b_ref[...]

    # ---- self-attention branch: sa(ln1(x)) ----
    h = layernorm(x, ln1g_ref, ln1b_ref)                      # (N, C)

    # NOTE: reference scales by C ** -0.5 (n_embd, not head_size); fold the
    # scale into q once instead of scaling every (T, T) score tensor.
    scale = C ** (-0.5)
    q = jnp.dot(h, wq_ref[...], preferred_element_type=jnp.float32) * scale
    k = jnp.dot(h, wk_ref[...], preferred_element_type=jnp.float32)
    v = jnp.dot(h, wv_ref[...], preferred_element_type=jnp.float32)

    # (Bb, T, C) views — leading-dim split, layout no-op.
    q3 = q.reshape(bb, seq, C)
    k3 = k.reshape(bb, seq, C)
    v3 = v.reshape(bb, seq, C)

    # Causal mask hoisted out of the per-head work.
    row = lax.broadcasted_iota(jnp.int32, (seq, seq), 0)
    col = lax.broadcasted_iota(jnp.int32, (seq, seq), 1)
    causal = (col <= row)[None]                               # (1, T, T)

    head_outs = []
    for hidx in range(n_head):
        lo = hidx * head_size
        qh = q3[:, :, lo:lo + head_size]                      # (Bb, T, hs)
        kh = k3[:, :, lo:lo + head_size]
        vh = v3[:, :, lo:lo + head_size]

        s = jnp.einsum('btd,bsd->bts', qh, kh,
                       preferred_element_type=jnp.float32)    # (Bb, T, T)
        s = jnp.where(causal, s, -jnp.inf)
        s = s - jnp.max(s, axis=-1, keepdims=True)
        p = jnp.exp(s)
        p = p * pl.reciprocal(jnp.sum(p, axis=-1, keepdims=True), approx=True)
        head_outs.append(jnp.einsum('bts,bsd->btd', p, vh,
                                    preferred_element_type=jnp.float32))

    attn = jnp.concatenate(head_outs, axis=-1).reshape(N, C)  # (N, C)
    sa = jnp.dot(attn, wp_ref[...],
                 preferred_element_type=jnp.float32) + bp_ref[...]
    x = x + sa                                                # residual 1

    # ---- feed-forward branch: ffwd(ln2(x)) ----
    h2 = layernorm(x, ln2g_ref, ln2b_ref)                     # (N, C)
    ff = jnp.dot(h2, w1_ref[...],
                 preferred_element_type=jnp.float32) + b1_ref[...]   # (N, 4C)
    ff = jnp.maximum(ff, 0.0)                                 # ReLU
    ff = jnp.dot(ff, w2_ref[...],
                 preferred_element_type=jnp.float32) + b2_ref[...]   # (N, C)
    x = x + ff                                                # residual 2

    # Lane-dense store: pack each sequence's (T, C) rows into one T*C-wide
    # lane row so the output block's last dim is 256 (multiple of 128) rather
    # than 32-lane masked partial stores.
    x3 = x.reshape(bb, seq, C)
    packed = jnp.concatenate([x3[:, t, :] for t in range(seq)], axis=-1)
    o_ref[...] = packed.astype(o_ref.dtype)                   # (Bb, T*C)


# -------------------------------- wrapper ------------------------------------
def _choose_batch_block(B):
    # Largest batch block that (a) divides B, (b) keeps the lane-dense output
    # block's second-minor dim a multiple of 8 (or the full batch dim), and
    # (c) leaves >= 2 grid steps when possible so v7x's two TensorCores both
    # get work (no-op on single-core v5e/v6e).
    for bb in (32, 16, 8):
        if B % bb == 0 and B // bb >= 2:
            return bb
    return B


def gpt_block(x, params):
    B, T, C = x.shape
    H4 = 4 * C
    Bb = _choose_batch_block(B)
    assert B % Bb == 0

    # Weights/biases use constant block indices so they are DMA'd once and
    # stay resident in VMEM across grid steps (~50 KB total).
    full2d = lambda shape: pl.BlockSpec(shape, lambda i: (0, 0))

    kernel = functools.partial(gpt_block_kernel, bb=Bb, seq=T,
                               n_head=N_HEAD, head_size=HEAD_SIZE)

    out = pl.pallas_call(
        kernel,
        out_shape=jax.ShapeDtypeStruct((B, T * C), x.dtype),
        grid_spec=pltpu.PrefetchScalarGridSpec(
            num_scalar_prefetch=0,
            grid=(B // Bb,),
            in_specs=[
                pl.BlockSpec((Bb, T, C), lambda i: (i, 0, 0)),   # x
                full2d((1, C)),                                  # ln1 gamma
                full2d((1, C)),                                  # ln1 beta
                full2d((C, C)),                                  # Wq (all heads)
                full2d((C, C)),                                  # Wk
                full2d((C, C)),                                  # Wv
                full2d((C, C)),                                  # Wproj
                full2d((1, C)),                                  # bproj
                full2d((1, C)),                                  # ln2 gamma
                full2d((1, C)),                                  # ln2 beta
                full2d((C, H4)),                                 # W1
                full2d((1, H4)),                                 # b1
                full2d((H4, C)),                                 # W2
                full2d((1, C)),                                  # b2
            ],
            out_specs=pl.BlockSpec((Bb, T * C), lambda i: (i, 0)),
        ),
        compiler_params=pltpu.CompilerParams(
            dimension_semantics=("parallel",)),
    )(x,
      params["ln1_g"], params["ln1_b"],
      params["wq"], params["wk"], params["wv"],
      params["wp"], params["bp"],
      params["ln2_g"], params["ln2_b"],
      params["w1"], params["b1"], params["w2"], params["b2"])

    return out.reshape(B, T, C)


# ------------------------- pure-JAX reference check --------------------------
def gpt_block_ref(x, p):
    B, T, C = x.shape

    def ln(h, g, b):
        mu = jnp.mean(h, axis=-1, keepdims=True)
        var = jnp.mean((h - mu) ** 2, axis=-1, keepdims=True)
        return (h - mu) / jnp.sqrt(var + LN_EPS) * g + b

    h = ln(x, p["ln1_g"], p["ln1_b"])
    q = h @ p["wq"]; k = h @ p["wk"]; v = h @ p["wv"]
    qh = q.reshape(B, T, N_HEAD, HEAD_SIZE)
    kh = k.reshape(B, T, N_HEAD, HEAD_SIZE)
    vh = v.reshape(B, T, N_HEAD, HEAD_SIZE)
    s = jnp.einsum("bthd,bshd->bhts", qh, kh) * C ** (-0.5)
    mask = jnp.tril(jnp.ones((T, T), bool))
    s = jnp.where(mask, s, -jnp.inf)
    w = jax.nn.softmax(s, axis=-1)
    o = jnp.einsum("bhts,bshd->bthd", w, vh).reshape(B, T, C)
    x = x + o @ p["wp"] + p["bp"]
    h2 = ln(x, p["ln2_g"], p["ln2_b"])
    ff = jnp.maximum(h2 @ p["w1"] + p["b1"], 0.0) @ p["w2"] + p["b2"]
    return x + ff


# --------------------------------- main --------------------------------------
if __name__ == "__main__":
    key = jax.random.PRNGKey(0)
    B, T, C = 16, BLOCK_SIZE, N_EMBD   # B=16 -> Bb=8, grid of 2 parallel steps

    keys = jax.random.split(key, 10)
    scale = 0.02
    params = {
        "ln1_g": jnp.ones((1, C), jnp.float32),
        "ln1_b": jnp.zeros((1, C), jnp.float32),
        "wq": scale * jax.random.normal(keys[0], (C, C), jnp.float32),
        "wk": scale * jax.random.normal(keys[1], (C, C), jnp.float32),
        "wv": scale * jax.random.normal(keys[2], (C, C), jnp.float32),
        "wp": scale * jax.random.normal(keys[3], (C, C), jnp.float32),
        "bp": scale * jax.random.normal(keys[4], (1, C), jnp.float32),
        "ln2_g": jnp.ones((1, C), jnp.float32),
        "ln2_b": jnp.zeros((1, C), jnp.float32),
        "w1": scale * jax.random.normal(keys[5], (C, 4 * C), jnp.float32),
        "b1": scale * jax.random.normal(keys[6], (1, 4 * C), jnp.float32),
        "w2": scale * jax.random.normal(keys[7], (4 * C, C), jnp.float32),
        "b2": scale * jax.random.normal(keys[8], (1, C), jnp.float32),
    }

    x = jax.random.normal(keys[9], (B, T, C), jnp.float32)

    out = gpt_block(x, params)
    out = jax.block_until_ready(out)

    ref = gpt_block_ref(x, params)
    assert out.shape == (B, T, C)
    # Tolerance 1e-3: the softmax denominator uses the EUP approx reciprocal.
    assert jnp.allclose(out, ref, atol=1e-3, rtol=1e-3), "mismatch vs reference"

    print("KERNEL_OK")
</pallas_src>

<mosaic_0001>
module attributes {stable_mosaic.version = 11 : i64} {
  func.func @gpt_block_kernel(%arg0: i32, %arg1: memref<8x8x32xf32, #tpu.memory_space<vmem>>, %arg2: memref<1x32xf32, #tpu.memory_space<vmem>>, %arg3: memref<1x32xf32, #tpu.memory_space<vmem>>, %arg4: memref<32x32xf32, #tpu.memory_space<vmem>>, %arg5: memref<32x32xf32, #tpu.memory_space<vmem>>, %arg6: memref<32x32xf32, #tpu.memory_space<vmem>>, %arg7: memref<32x32xf32, #tpu.memory_space<vmem>>, %arg8: memref<1x32xf32, #tpu.memory_space<vmem>>, %arg9: memref<1x32xf32, #tpu.memory_space<vmem>>, %arg10: memref<1x32xf32, #tpu.memory_space<vmem>>, %arg11: memref<32x128xf32, #tpu.memory_space<vmem>>, %arg12: memref<1x128xf32, #tpu.memory_space<vmem>>, %arg13: memref<128x32xf32, #tpu.memory_space<vmem>>, %arg14: memref<1x32xf32, #tpu.memory_space<vmem>>, %arg15: memref<8x256xf32, #tpu.memory_space<vmem>>) attributes {dimension_semantics = [#tpu.dimension_semantics<parallel>], iteration_bounds = array<i64: 2>, scalar_prefetch = 0 : i64, scratch_operands = 0 : i64, tpu.core_type = #tpu.core_type<tc>, window_params = [{transform_indices = @transform_0, window_bounds = array<i64: 8, 8, 32>}, {pipeline_mode = #tpu.pipeline_mode<synchronous>, transform_indices = @transform_1, window_bounds = array<i64: 1, 32>}, {pipeline_mode = #tpu.pipeline_mode<synchronous>, transform_indices = @transform_2, window_bounds = array<i64: 1, 32>}, {pipeline_mode = #tpu.pipeline_mode<synchronous>, transform_indices = @transform_3, window_bounds = array<i64: 32, 32>}, {pipeline_mode = #tpu.pipeline_mode<synchronous>, transform_indices = @transform_4, window_bounds = array<i64: 32, 32>}, {pipeline_mode = #tpu.pipeline_mode<synchronous>, transform_indices = @transform_5, window_bounds = array<i64: 32, 32>}, {pipeline_mode = #tpu.pipeline_mode<synchronous>, transform_indices = @transform_6, window_bounds = array<i64: 32, 32>}, {pipeline_mode = #tpu.pipeline_mode<synchronous>, transform_indices = @transform_7, window_bounds = array<i64: 1, 32>}, {pipeline_mode = #tpu.pipeline_mode<synchronous>, transform_indices = @transform_8, window_bounds = array<i64: 1, 32>}, {pipeline_mode = #tpu.pipeline_mode<synchronous>, transform_indices = @transform_9, window_bounds = array<i64: 1, 32>}, {pipeline_mode = #tpu.pipeline_mode<synchronous>, transform_indices = @transform_10, window_bounds = array<i64: 32, 128>}, {pipeline_mode = #tpu.pipeline_mode<synchronous>, transform_indices = @transform_11, window_bounds = array<i64: 1, 128>}, {pipeline_mode = #tpu.pipeline_mode<synchronous>, transform_indices = @transform_12, window_bounds = array<i64: 128, 32>}, {pipeline_mode = #tpu.pipeline_mode<synchronous>, transform_indices = @transform_13, window_bounds = array<i64: 1, 32>}, {transform_indices = @transform_14, window_bounds = array<i64: 8, 256>}]} {
    %c0 = arith.constant 0 : index
    %c0_0 = arith.constant 0 : index
    %c0_1 = arith.constant 0 : index
    %0 = vector.load %arg1[%c0, %c0_0, %c0_1] : memref<8x8x32xf32, #tpu.memory_space<vmem>>, vector<8x8x32xf32>
    %1 = vector.shape_cast %0 : vector<8x8x32xf32> to vector<64x32xf32>
    %cst = arith.constant dense<0.000000e+00> : vector<64xf32>
    %2 = vector.multi_reduction <add>, %1, %cst [1] : vector<64x32xf32> to vector<64xf32>
    %3 = vector.shape_cast %2 : vector<64xf32> to vector<64x1xf32>
    %cst_2 = arith.constant 3.200000e+01 : f32
    %4 = vector.broadcast %cst_2 : f32 to vector<64x1xf32>
    %5 = arith.divf %3, %4 : vector<64x1xf32>
    %6 = vector.broadcast %5 : vector<64x1xf32> to vector<64x32xf32>
    %7 = arith.subf %1, %6 : vector<64x32xf32>
    %8 = arith.mulf %7, %7 : vector<64x32xf32>
    %cst_3 = arith.constant dense<0.000000e+00> : vector<64xf32>
    %9 = vector.multi_reduction <add>, %8, %cst_3 [1] : vector<64x32xf32> to vector<64xf32>
    %10 = vector.shape_cast %9 : vector<64xf32> to vector<64x1xf32>
    %cst_4 = arith.constant 3.200000e+01 : f32
    %11 = vector.broadcast %cst_4 : f32 to vector<64x1xf32>
    %12 = arith.divf %10, %11 : vector<64x1xf32>
    %cst_5 = arith.constant 9.99999974E-6 : f32
    %13 = vector.broadcast %cst_5 : f32 to vector<64x1xf32>
    %14 = arith.addf %12, %13 : vector<64x1xf32>
    %15 = math.rsqrt %14 : vector<64x1xf32>
    %16 = vector.broadcast %15 : vector<64x1xf32> to vector<64x32xf32>
    %17 = arith.mulf %7, %16 : vector<64x32xf32>
    %c0_6 = arith.constant 0 : index
    %c0_7 = arith.constant 0 : index
    %18 = vector.load %arg2[%c0_6, %c0_7] : memref<1x32xf32, #tpu.memory_space<vmem>>, vector<1x32xf32>
    %19 = vector.broadcast %18 : vector<1x32xf32> to vector<64x32xf32>
    %20 = arith.mulf %17, %19 : vector<64x32xf32>
    %c0_8 = arith.constant 0 : index
    %c0_9 = arith.constant 0 : index
    %21 = vector.load %arg3[%c0_8, %c0_9] : memref<1x32xf32, #tpu.memory_space<vmem>>, vector<1x32xf32>
    %22 = vector.broadcast %21 : vector<1x32xf32> to vector<64x32xf32>
    %23 = arith.addf %20, %22 : vector<64x32xf32>
    %c0_10 = arith.constant 0 : index
    %c0_11 = arith.constant 0 : index
    %24 = vector.load %arg4[%c0_10, %c0_11] : memref<32x32xf32, #tpu.memory_space<vmem>>, vector<32x32xf32>
    %cst_12 = arith.constant dense<0.000000e+00> : vector<64x32xf32>
    %25 = tpu.matmul %23, %24, %cst_12 {dimension_numbers = #tpu.dot_dimension_numbers<[1], [0], [0], [1], [0, 0, 1, 1], [], []>} : vector<64x32xf32>, vector<32x32xf32>, vector<64x32xf32> -> vector<64x32xf32>
    %cst_13 = arith.constant 0.176776692 : f32
    %26 = vector.broadcast %cst_13 : f32 to vector<64x32xf32>
    %27 = arith.mulf %25, %26 : vector<64x32xf32>
    %c0_14 = arith.constant 0 : index
    %c0_15 = arith.constant 0 : index
    %28 = vector.load %arg5[%c0_14, %c0_15] : memref<32x32xf32, #tpu.memory_space<vmem>>, vector<32x32xf32>
    %cst_16 = arith.constant dense<0.000000e+00> : vector<64x32xf32>
    %29 = tpu.matmul %23, %28, %cst_16 {dimension_numbers = #tpu.dot_dimension_numbers<[1], [0], [0], [1], [0, 0, 1, 1], [], []>} : vector<64x32xf32>, vector<32x32xf32>, vector<64x32xf32> -> vector<64x32xf32>
    %c0_17 = arith.constant 0 : index
    %c0_18 = arith.constant 0 : index
    %30 = vector.load %arg6[%c0_17, %c0_18] : memref<32x32xf32, #tpu.memory_space<vmem>>, vector<32x32xf32>
    %cst_19 = arith.constant dense<0.000000e+00> : vector<64x32xf32>
    %31 = tpu.matmul %23, %30, %cst_19 {dimension_numbers = #tpu.dot_dimension_numbers<[1], [0], [0], [1], [0, 0, 1, 1], [], []>} : vector<64x32xf32>, vector<32x32xf32>, vector<64x32xf32> -> vector<64x32xf32>
    %32 = vector.shape_cast %27 : vector<64x32xf32> to vector<8x8x32xf32>
    %33 = vector.shape_cast %29 : vector<64x32xf32> to vector<8x8x32xf32>
    %34 = vector.shape_cast %31 : vector<64x32xf32> to vector<8x8x32xf32>
    %35 = tpu.iota {dimensions = array<i32: 0>} : vector<8x8xi32>
    %36 = tpu.iota {dimensions = array<i32: 1>} : vector<8x8xi32>
    %37 = arith.cmpi sle, %36, %35 : vector<8x8xi32>
    %38 = vector.shape_cast %37 : vector<8x8xi1> to vector<1x8x8xi1>
    %39 = vector.extract_strided_slice %32 {offsets = [0, 0, 0], sizes = [8, 8, 8], strides = [1, 1, 1]} : vector<8x8x32xf32> to vector<8x8x8xf32>
    %40 = vector.extract_strided_slice %33 {offsets = [0, 0, 0], sizes = [8, 8, 8], strides = [1, 1, 1]} : vector<8x8x32xf32> to vector<8x8x8xf32>
    %41 = vector.extract_strided_slice %34 {offsets = [0, 0, 0], sizes = [8, 8, 8], strides = [1, 1, 1]} : vector<8x8x32xf32> to vector<8x8x8xf32>
    "tpu.trace_start"() <{level = 10 : i32, message = "btd,bsd->bts"}> : () -> ()
    %cst_20 = arith.constant dense<0.000000e+00> : vector<8x8x8xf32>
    %42 = tpu.matmul %39, %40, %cst_20 {dimension_numbers = #tpu.dot_dimension_numbers<[2], [2], [1], [1], [0, 0, 0, 1, 1, 1], [0], [0]>} : vector<8x8x8xf32>, vector<8x8x8xf32>, vector<8x8x8xf32> -> vector<8x8x8xf32>
    %cst_21 = arith.constant 0xFF800000 : f32
    "tpu.trace_stop"() : () -> ()
    %43 = vector.shape_cast %38 : vector<1x8x8xi1> to vector<1x8x8xi1>
    %44 = vector.broadcast %43 : vector<1x8x8xi1> to vector<8x8x8xi1>
    %45 = vector.broadcast %cst_21 : f32 to vector<8x8x8xf32>
    %46 = arith.select %44, %42, %45 : vector<8x8x8xi1>, vector<8x8x8xf32>
    %cst_22 = arith.constant dense<0xFF800000> : vector<8x8xf32>
    %47 = vector.multi_reduction <maximumf>, %46, %cst_22 [2] : vector<8x8x8xf32> to vector<8x8xf32>
    %48 = vector.shape_cast %47 : vector<8x8xf32> to vector<8x8x1xf32>
    %49 = vector.broadcast %48 : vector<8x8x1xf32> to vector<8x8x8xf32>
    %50 = arith.subf %46, %49 : vector<8x8x8xf32>
    %51 = math.exp %50 : vector<8x8x8xf32>
    %cst_23 = arith.constant dense<0.000000e+00> : vector<8x8xf32>
    %52 = vector.multi_reduction <add>, %51, %cst_23 [2] : vector<8x8x8xf32> to vector<8x8xf32>
    %53 = vector.shape_cast %52 : vector<8x8xf32> to vector<8x8x1xf32>
    %54 = tpu.reciprocal %53 {approx = true} : vector<8x8x1xf32> -> vector<8x8x1xf32>
    %55 = vector.broadcast %54 : vector<8x8x1xf32> to vector<8x8x8xf32>
    %56 = arith.mulf %51, %55 : vector<8x8x8xf32>
    "tpu.trace_start"() <{level = 10 : i32, message = "bts,bsd->btd"}> : () -> ()
    %cst_24 = arith.constant dense<0.000000e+00> : vector<8x8x8xf32>
    %57 = tpu.matmul %56, %41, %cst_24 {dimension_numbers = #tpu.dot_dimension_numbers<[2], [1], [1], [2], [0, 0, 0, 1, 1, 2], [0], [0]>} : vector<8x8x8xf32>, vector<8x8x8xf32>, vector<8x8x8xf32> -> vector<8x8x8xf32>
    "tpu.trace_stop"() : () -> ()
    %58 = vector.extract_strided_slice %32 {offsets = [0, 0, 8], sizes = [8, 8, 8], strides = [1, 1, 1]} : vector<8x8x32xf32> to vector<8x8x8xf32>
    %59 = vector.extract_strided_slice %33 {offsets = [0, 0, 8], sizes = [8, 8, 8], strides = [1, 1, 1]} : vector<8x8x32xf32> to vector<8x8x8xf32>
    %60 = vector.extract_strided_slice %34 {offsets = [0, 0, 8], sizes = [8, 8, 8], strides = [1, 1, 1]} : vector<8x8x32xf32> to vector<8x8x8xf32>
    "tpu.trace_start"() <{level = 10 : i32, message = "btd,bsd->bts"}> : () -> ()
    %cst_25 = arith.constant dense<0.000000e+00> : vector<8x8x8xf32>
    %61 = tpu.matmul %58, %59, %cst_25 {dimension_numbers = #tpu.dot_dimension_numbers<[2], [2], [1], [1], [0, 0, 0, 1, 1, 1], [0], [0]>} : vector<8x8x8xf32>, vector<8x8x8xf32>, vector<8x8x8xf32> -> vector<8x8x8xf32>
    %cst_26 = arith.constant 0xFF800000 : f32
    "tpu.trace_stop"() : () -> ()
    %62 = vector.shape_cast %38 : vector<1x8x8xi1> to vector<1x8x8xi1>
    %63 = vector.broadcast %62 : vector<1x8x8xi1> to vector<8x8x8xi1>
    %64 = vector.broadcast %cst_26 : f32 to vector<8x8x8xf32>
    %65 = arith.select %63, %61, %64 : vector<8x8x8xi1>, vector<8x8x8xf32>
    %cst_27 = arith.constant dense<0xFF800000> : vector<8x8xf32>
    %66 = vector.multi_reduction <maximumf>, %65, %cst_27 [2] : vector<8x8x8xf32> to vector<8x8xf32>
    %67 = vector.shape_cast %66 : vector<8x8xf32> to vector<8x8x1xf32>
    %68 = vector.broadcast %67 : vector<8x8x1xf32> to vector<8x8x8xf32>
    %69 = arith.subf %65, %68 : vector<8x8x8xf32>
    %70 = math.exp %69 : vector<8x8x8xf32>
    %cst_28 = arith.constant dense<0.000000e+00> : vector<8x8xf32>
    %71 = vector.multi_reduction <add>, %70, %cst_28 [2] : vector<8x8x8xf32> to vector<8x8xf32>
    %72 = vector.shape_cast %71 : vector<8x8xf32> to vector<8x8x1xf32>
    %73 = tpu.reciprocal %72 {approx = true} : vector<8x8x1xf32> -> vector<8x8x1xf32>
    %74 = vector.broadcast %73 : vector<8x8x1xf32> to vector<8x8x8xf32>
    %75 = arith.mulf %70, %74 : vector<8x8x8xf32>
    "tpu.trace_start"() <{level = 10 : i32, message = "bts,bsd->btd"}> : () -> ()
    %cst_29 = arith.constant dense<0.000000e+00> : vector<8x8x8xf32>
    %76 = tpu.matmul %75, %60, %cst_29 {dimension_numbers = #tpu.dot_dimension_numbers<[2], [1], [1], [2], [0, 0, 0, 1, 1, 2], [0], [0]>} : vector<8x8x8xf32>, vector<8x8x8xf32>, vector<8x8x8xf32> -> vector<8x8x8xf32>
    "tpu.trace_stop"() : () -> ()
    %77 = vector.extract_strided_slice %32 {offsets = [0, 0, 16], sizes = [8, 8, 8], strides = [1, 1, 1]} : vector<8x8x32xf32> to vector<8x8x8xf32>
    %78 = vector.extract_strided_slice %33 {offsets = [0, 0, 16], sizes = [8, 8, 8], strides = [1, 1, 1]} : vector<8x8x32xf32> to vector<8x8x8xf32>
    %79 = vector.extract_strided_slice %34 {offsets = [0, 0, 16], sizes = [8, 8, 8], strides = [1, 1, 1]} : vector<8x8x32xf32> to vector<8x8x8xf32>
    "tpu.trace_start"() <{level = 10 : i32, message = "btd,bsd->bts"}> : () -> ()
    %cst_30 = arith.constant dense<0.000000e+00> : vector<8x8x8xf32>
    %80 = tpu.matmul %77, %78, %cst_30 {dimension_numbers = #tpu.dot_dimension_numbers<[2], [2], [1], [1], [0, 0, 0, 1, 1, 1], [0], [0]>} : vector<8x8x8xf32>, vector<8x8x8xf32>, vector<8x8x8xf32> -> vector<8x8x8xf32>
    %cst_31 = arith.constant 0xFF800000 : f32
    "tpu.trace_stop"() : () -> ()
    %81 = vector.shape_cast %38 : vector<1x8x8xi1> to vector<1x8x8xi1>
    %82 = vector.broadcast %81 : vector<1x8x8xi1> to vector<8x8x8xi1>
    %83 = vector.broadcast %cst_31 : f32 to vector<8x8x8xf32>
    %84 = arith.select %82, %80, %83 : vector<8x8x8xi1>, vector<8x8x8xf32>
    %cst_32 = arith.constant dense<0xFF800000> : vector<8x8xf32>
    %85 = vector.multi_reduction <maximumf>, %84, %cst_32 [2] : vector<8x8x8xf32> to vector<8x8xf32>
    %86 = vector.shape_cast %85 : vector<8x8xf32> to vector<8x8x1xf32>
    %87 = vector.broadcast %86 : vector<8x8x1xf32> to vector<8x8x8xf32>
    %88 = arith.subf %84, %87 : vector<8x8x8xf32>
    %89 = math.exp %88 : vector<8x8x8xf32>
    %cst_33 = arith.constant dense<0.000000e+00> : vector<8x8xf32>
    %90 = vector.multi_reduction <add>, %89, %cst_33 [2] : vector<8x8x8xf32> to vector<8x8xf32>
    %91 = vector.shape_cast %90 : vector<8x8xf32> to vector<8x8x1xf32>
    %92 = tpu.reciprocal %91 {approx = true} : vector<8x8x1xf32> -> vector<8x8x1xf32>
    %93 = vector.broadcast %92 : vector<8x8x1xf32> to vector<8x8x8xf32>
    %94 = arith.mulf %89, %93 : vector<8x8x8xf32>
    "tpu.trace_start"() <{level = 10 : i32, message = "bts,bsd->btd"}> : () -> ()
    %cst_34 = arith.constant dense<0.000000e+00> : vector<8x8x8xf32>
    %95 = tpu.matmul %94, %79, %cst_34 {dimension_numbers = #tpu.dot_dimension_numbers<[2], [1], [1], [2], [0, 0, 0, 1, 1, 2], [0], [0]>} : vector<8x8x8xf32>, vector<8x8x8xf32>, vector<8x8x8xf32> -> vector<8x8x8xf32>
    "tpu.trace_stop"() : () -> ()
    %96 = vector.extract_strided_slice %32 {offsets = [0, 0, 24], sizes = [8, 8, 8], strides = [1, 1, 1]} : vector<8x8x32xf32> to vector<8x8x8xf32>
    %97 = vector.extract_strided_slice %33 {offsets = [0, 0, 24], sizes = [8, 8, 8], strides = [1, 1, 1]} : vector<8x8x32xf32> to vector<8x8x8xf32>
    %98 = vector.extract_strided_slice %34 {offsets = [0, 0, 24], sizes = [8, 8, 8], strides = [1, 1, 1]} : vector<8x8x32xf32> to vector<8x8x8xf32>
    "tpu.trace_start"() <{level = 10 : i32, message = "btd,bsd->bts"}> : () -> ()
    %cst_35 = arith.constant dense<0.000000e+00> : vector<8x8x8xf32>
    %99 = tpu.matmul %96, %97, %cst_35 {dimension_numbers = #tpu.dot_dimension_numbers<[2], [2], [1], [1], [0, 0, 0, 1, 1, 1], [0], [0]>} : vector<8x8x8xf32>, vector<8x8x8xf32>, vector<8x8x8xf32> -> vector<8x8x8xf32>
    %cst_36 = arith.constant 0xFF800000 : f32
    "tpu.trace_stop"() : () -> ()
    %100 = vector.shape_cast %38 : vector<1x8x8xi1> to vector<1x8x8xi1>
    %101 = vector.broadcast %100 : vector<1x8x8xi1> to vector<8x8x8xi1>
    %102 = vector.broadcast %cst_36 : f32 to vector<8x8x8xf32>
    %103 = arith.select %101, %99, %102 : vector<8x8x8xi1>, vector<8x8x8xf32>
    %cst_37 = arith.constant dense<0xFF800000> : vector<8x8xf32>
    %104 = vector.multi_reduction <maximumf>, %103, %cst_37 [2] : vector<8x8x8xf32> to vector<8x8xf32>
    %105 = vector.shape_cast %104 : vector<8x8xf32> to vector<8x8x1xf32>
    %106 = vector.broadcast %105 : vector<8x8x1xf32> to vector<8x8x8xf32>
    %107 = arith.subf %103, %106 : vector<8x8x8xf32>
    %108 = math.exp %107 : vector<8x8x8xf32>
    %cst_38 = arith.constant dense<0.000000e+00> : vector<8x8xf32>
    %109 = vector.multi_reduction <add>, %108, %cst_38 [2] : vector<8x8x8xf32> to vector<8x8xf32>
    %110 = vector.shape_cast %109 : vector<8x8xf32> to vector<8x8x1xf32>
    %111 = tpu.reciprocal %110 {approx = true} : vector<8x8x1xf32> -> vector<8x8x1xf32>
    %112 = vector.broadcast %111 : vector<8x8x1xf32> to vector<8x8x8xf32>
    %113 = arith.mulf %108, %112 : vector<8x8x8xf32>
    "tpu.trace_start"() <{level = 10 : i32, message = "bts,bsd->btd"}> : () -> ()
    %cst_39 = arith.constant dense<0.000000e+00> : vector<8x8x8xf32>
    %114 = tpu.matmul %113, %98, %cst_39 {dimension_numbers = #tpu.dot_dimension_numbers<[2], [1], [1], [2], [0, 0, 0, 1, 1, 2], [0], [0]>} : vector<8x8x8xf32>, vector<8x8x8xf32>, vector<8x8x8xf32> -> vector<8x8x8xf32>
    "tpu.trace_stop"() : () -> ()
    %115 = tpu.concatenate %57, %76, %95, %114 in 2 : vector<8x8x8xf32>, vector<8x8x8xf32>, vector<8x8x8xf32>, vector<8x8x8xf32> -> vector<8x8x32xf32>
    %116 = vector.shape_cast %115 : vector<8x8x32xf32> to vector<64x32xf32>
    %c0_40 = arith.constant 0 : index
    %c0_41 = arith.constant 0 : index
    %117 = vector.load %arg7[%c0_40, %c0_41] : memref<32x32xf32, #tpu.memory_space<vmem>>, vector<32x32xf32>
    %cst_42 = arith.constant dense<0.000000e+00> : vector<64x32xf32>
    %118 = tpu.matmul %116, %117, %cst_42 {dimension_numbers = #tpu.dot_dimension_numbers<[1], [0], [0], [1], [0, 0, 1, 1], [], []>} : vector<64x32xf32>, vector<32x32xf32>, vector<64x32xf32> -> vector<64x32xf32>
    %c0_43 = arith.constant 0 : index
    %c0_44 = arith.constant 0 : index
    %119 = vector.load %arg8[%c0_43, %c0_44] : memref<1x32xf32, #tpu.memory_space<vmem>>, vector<1x32xf32>
    %120 = vector.broadcast %119 : vector<1x32xf32> to vector<64x32xf32>
    %121 = arith.addf %118, %120 : vector<64x32xf32>
    %122 = arith.addf %1, %121 : vector<64x32xf32>
    %cst_45 = arith.constant dense<0.000000e+00> : vector<64xf32>
    %123 = vector.multi_reduction <add>, %122, %cst_45 [1] : vector<64x32xf32> to vector<64xf32>
    %124 = vector.shape_cast %123 : vector<64xf32> to vector<64x1xf32>
    %cst_46 = arith.constant 3.200000e+01 : f32
    %125 = vector.broadcast %cst_46 : f32 to vector<64x1xf32>
    %126 = arith.divf %124, %125 : vector<64x1xf32>
    %127 = vector.broadcast %126 : vector<64x1xf32> to vector<64x32xf32>
    %128 = arith.subf %122, %127 : vector<64x32xf32>
    %129 = arith.mulf %128, %128 : vector<64x32xf32>
    %cst_47 = arith.constant dense<0.000000e+00> : vector<64xf32>
    %130 = vector.multi_reduction <add>, %129, %cst_47 [1] : vector<64x32xf32> to vector<64xf32>
    %131 = vector.shape_cast %130 : vector<64xf32> to vector<64x1xf32>
    %cst_48 = arith.constant 3.200000e+01 : f32
    %132 = vector.broadcast %cst_48 : f32 to vector<64x1xf32>
    %133 = arith.divf %131, %132 : vector<64x1xf32>
    %cst_49 = arith.constant 9.99999974E-6 : f32
    %134 = vector.broadcast %cst_49 : f32 to vector<64x1xf32>
    %135 = arith.addf %133, %134 : vector<64x1xf32>
    %136 = math.rsqrt %135 : vector<64x1xf32>
    %137 = vector.broadcast %136 : vector<64x1xf32> to vector<64x32xf32>
    %138 = arith.mulf %128, %137 : vector<64x32xf32>
    %c0_50 = arith.constant 0 : index
    %c0_51 = arith.constant 0 : index
    %139 = vector.load %arg9[%c0_50, %c0_51] : memref<1x32xf32, #tpu.memory_space<vmem>>, vector<1x32xf32>
    %140 = vector.broadcast %139 : vector<1x32xf32> to vector<64x32xf32>
    %141 = arith.mulf %138, %140 : vector<64x32xf32>
    %c0_52 = arith.constant 0 : index
    %c0_53 = arith.constant 0 : index
    %142 = vector.load %arg10[%c0_52, %c0_53] : memref<1x32xf32, #tpu.memory_space<vmem>>, vector<1x32xf32>
    %143 = vector.broadcast %142 : vector<1x32xf32> to vector<64x32xf32>
    %144 = arith.addf %141, %143 : vector<64x32xf32>
    %c0_54 = arith.constant 0 : index
    %c0_55 = arith.constant 0 : index
    %145 = vector.load %arg11[%c0_54, %c0_55] : memref<32x128xf32, #tpu.memory_space<vmem>>, vector<32x128xf32>
    %cst_56 = arith.constant dense<0.000000e+00> : vector<64x128xf32>
    %146 = tpu.matmul %144, %145, %cst_56 {dimension_numbers = #tpu.dot_dimension_numbers<[1], [0], [0], [1], [0, 0, 1, 1], [], []>} : vector<64x32xf32>, vector<32x128xf32>, vector<64x128xf32> -> vector<64x128xf32>
    %c0_57 = arith.constant 0 : index
    %c0_58 = arith.constant 0 : index
    %147 = vector.load %arg12[%c0_57, %c0_58] : memref<1x128xf32, #tpu.memory_space<vmem>>, vector<1x128xf32>
    %148 = vector.broadcast %147 : vector<1x128xf32> to vector<64x128xf32>
    %149 = arith.addf %146, %148 : vector<64x128xf32>
    %cst_59 = arith.constant 0.000000e+00 : f32
    %150 = vector.broadcast %cst_59 : f32 to vector<64x128xf32>
    %151 = arith.maximumf %149, %150 : vector<64x128xf32>
    %c0_60 = arith.constant 0 : index
    %c0_61 = arith.constant 0 : index
    %152 = vector.load %arg13[%c0_60, %c0_61] : memref<128x32xf32, #tpu.memory_space<vmem>>, vector<128x32xf32>
    %cst_62 = arith.constant dense<0.000000e+00> : vector<64x32xf32>
    %153 = tpu.matmul %151, %152, %cst_62 {dimension_numbers = #tpu.dot_dimension_numbers<[1], [0], [0], [1], [0, 0, 1, 1], [], []>} : vector<64x128xf32>, vector<128x32xf32>, vector<64x32xf32> -> vector<64x32xf32>
    %c0_63 = arith.constant 0 : index
    %c0_64 = arith.constant 0 : index
    %154 = vector.load %arg14[%c0_63, %c0_64] : memref<1x32xf32, #tpu.memory_space<vmem>>, vector<1x32xf32>
    %155 = vector.broadcast %154 : vector<1x32xf32> to vector<64x32xf32>
    %156 = arith.addf %153, %155 : vector<64x32xf32>
    %157 = arith.addf %122, %156 : vector<64x32xf32>
    %158 = vector.shape_cast %157 : vector<64x32xf32> to vector<8x8x32xf32>
    %159 = vector.extract_strided_slice %158 {offsets = [0, 0, 0], sizes = [8, 1, 32], strides = [1, 1, 1]} : vector<8x8x32xf32> to vector<8x1x32xf32>
    %160 = vector.shape_cast %159 : vector<8x1x32xf32> to vector<8x32xf32>
    %161 = vector.extract_strided_slice %158 {offsets = [0, 1, 0], sizes = [8, 1, 32], strides = [1, 1, 1]} : vector<8x8x32xf32> to vector<8x1x32xf32>
    %162 = vector.shape_cast %161 : vector<8x1x32xf32> to vector<8x32xf32>
    %163 = vector.extract_strided_slice %158 {offsets = [0, 2, 0], sizes = [8, 1, 32], strides = [1, 1, 1]} : vector<8x8x32xf32> to vector<8x1x32xf32>
    %164 = vector.shape_cast %163 : vector<8x1x32xf32> to vector<8x32xf32>
    %165 = vector.extract_strided_slice %158 {offsets = [0, 3, 0], sizes = [8, 1, 32], strides = [1, 1, 1]} : vector<8x8x32xf32> to vector<8x1x32xf32>
    %166 = vector.shape_cast %165 : vector<8x1x32xf32> to vector<8x32xf32>
    %167 = vector.extract_strided_slice %158 {offsets = [0, 4, 0], sizes = [8, 1, 32], strides = [1, 1, 1]} : vector<8x8x32xf32> to vector<8x1x32xf32>
    %168 = vector.shape_cast %167 : vector<8x1x32xf32> to vector<8x32xf32>
    %169 = vector.extract_strided_slice %158 {offsets = [0, 5, 0], sizes = [8, 1, 32], strides = [1, 1, 1]} : vector<8x8x32xf32> to vector<8x1x32xf32>
    %170 = vector.shape_cast %169 : vector<8x1x32xf32> to vector<8x32xf32>
    %171 = vector.extract_strided_slice %158 {offsets = [0, 6, 0], sizes = [8, 1, 32], strides = [1, 1, 1]} : vector<8x8x32xf32> to vector<8x1x32xf32>
    %172 = vector.shape_cast %171 : vector<8x1x32xf32> to vector<8x32xf32>
    %173 = vector.extract_strided_slice %158 {offsets = [0, 7, 0], sizes = [8, 1, 32], strides = [1, 1, 1]} : vector<8x8x32xf32> to vector<8x1x32xf32>
    %174 = vector.shape_cast %173 : vector<8x1x32xf32> to vector<8x32xf32>
    %175 = tpu.concatenate %160, %162, %164, %166, %168, %170, %172, %174 in 1 : vector<8x32xf32>, vector<8x32xf32>, vector<8x32xf32>, vector<8x32xf32>, vector<8x32xf32>, vector<8x32xf32>, vector<8x32xf32>, vector<8x32xf32> -> vector<8x256xf32>
    %c0_65 = arith.constant 0 : index
    %c0_66 = arith.constant 0 : index
    %176 = vector.load %arg15[%c0_65, %c0_66] : memref<8x256xf32, #tpu.memory_space<vmem>>, vector<8x256xf32>
    tpu.vector_store %arg15[%c0_65, %c0_66], %175 {strides = array<i32>} : memref<8x256xf32, #tpu.memory_space<vmem>>, vector<8x256xf32>,
    return
  }
  func.func @transform_0(%arg0: i32) -> (i32, i32, i32) {
    %c0_i32 = arith.constant 0 : i32
    %c0_i32_0 = arith.constant 0 : i32
    %c0_i32_1 = arith.constant 0 : i32
    return %arg0, %c0_i32, %c0_i32_0 : i32, i32, i32
  }
  func.func @transform_1(%arg0: i32) -> (i32, i32) {
    %c0_i32 = arith.constant 0 : i32
    %c0_i32_0 = arith.constant 0 : i32
    %c0_i32_1 = arith.constant 0 : i32
    return %c0_i32, %c0_i32_0 : i32, i32
  }
  func.func @transform_2(%arg0: i32) -> (i32, i32) {
    %c0_i32 = arith.constant 0 : i32
    %c0_i32_0 = arith.constant 0 : i32
    %c0_i32_1 = arith.constant 0 : i32
    return %c0_i32, %c0_i32_0 : i32, i32
  }
  func.func @transform_3(%arg0: i32) -> (i32, i32) {
    %c0_i32 = arith.constant 0 : i32
    %c0_i32_0 = arith.constant 0 : i32
    %c0_i32_1 = arith.constant 0 : i32
    return %c0_i32, %c0_i32_0 : i32, i32
  }
  func.func @transform_4(%arg0: i32) -> (i32, i32) {
    %c0_i32 = arith.constant 0 : i32
    %c0_i32_0 = arith.constant 0 : i32
    %c0_i32_1 = arith.constant 0 : i32
    return %c0_i32, %c0_i32_0 : i32, i32
  }
  func.func @transform_5(%arg0: i32) -> (i32, i32) {
    %c0_i32 = arith.constant 0 : i32
    %c0_i32_0 = arith.constant 0 : i32
    %c0_i32_1 = arith.constant 0 : i32
    return %c0_i32, %c0_i32_0 : i32, i32
  }
  func.func @transform_6(%arg0: i32) -> (i32, i32) {
    %c0_i32 = arith.constant 0 : i32
    %c0_i32_0 = arith.constant 0 : i32
    %c0_i32_1 = arith.constant 0 : i32
    return %c0_i32, %c0_i32_0 : i32, i32
  }
  func.func @transform_7(%arg0: i32) -> (i32, i32) {
    %c0_i32 = arith.constant 0 : i32
    %c0_i32_0 = arith.constant 0 : i32
    %c0_i32_1 = arith.constant 0 : i32
    return %c0_i32, %c0_i32_0 : i32, i32
  }
  func.func @transform_8(%arg0: i32) -> (i32, i32) {
    %c0_i32 = arith.constant 0 : i32
    %c0_i32_0 = arith.constant 0 : i32
    %c0_i32_1 = arith.constant 0 : i32
    return %c0_i32, %c0_i32_0 : i32, i32
  }
  func.func @transform_9(%arg0: i32) -> (i32, i32) {
    %c0_i32 = arith.constant 0 : i32
    %c0_i32_0 = arith.constant 0 : i32
    %c0_i32_1 = arith.constant 0 : i32
    return %c0_i32, %c0_i32_0 : i32, i32
  }
  func.func @transform_10(%arg0: i32) -> (i32, i32) {
    %c0_i32 = arith.constant 0 : i32
    %c0_i32_0 = arith.constant 0 : i32
    %c0_i32_1 = arith.constant 0 : i32
    return %c0_i32, %c0_i32_0 : i32, i32
  }
  func.func @transform_11(%arg0: i32) -> (i32, i32) {
    %c0_i32 = arith.constant 0 : i32
    %c0_i32_0 = arith.constant 0 : i32
    %c0_i32_1 = arith.constant 0 : i32
    return %c0_i32, %c0_i32_0 : i32, i32
  }
  func.func @transform_12(%arg0: i32) -> (i32, i32) {
    %c0_i32 = arith.constant 0 : i32
    %c0_i32_0 = arith.constant 0 : i32
    %c0_i32_1 = arith.constant 0 : i32
    return %c0_i32, %c0_i32_0 : i32, i32
  }
  func.func @transform_13(%arg0: i32) -> (i32, i32) {
    %c0_i32 = arith.constant 0 : i32
    %c0_i32_0 = arith.constant 0 : i32
    %c0_i32_1 = arith.constant 0 : i32
    return %c0_i32, %c0_i32_0 : i32, i32
  }
  func.func @transform_14(%arg0: i32) -> (i32, i32) {
    %c0_i32 = arith.constant 0 : i32
    %c0_i32_0 = arith.constant 0 : i32
    return %arg0, %c0_i32 : i32, i32
  }
}

</mosaic_0001>

<bundles_post_ra>
// kernel: tpu_custom_call.1
= control target key start
LH: loop header
LB: loop body
LE: loop exit
PB: predicated region body
PF: predicated region fallthrough
CT: control target
= control target key end

     0   :  { %19 = vsyncpa [#allocation3], 0  ;;  %s10196_s0 = inlined_call_operand.vmem [shape: f32[16,8,32], index: 0, kind: input, shape index: {}]   ;;  %s10197_s1 = inlined_call_operand.vmem [shape: f32[1,32], index: 1, kind: input, shape index: {}]   ;;  %s10198_s2 = inlined_call_operand.vmem [shape: f32[1,32], index: 2, kind: input, shape index: {}]   ;;  %s10199_s3 = inlined_call_operand.vmem [shape: f32[32,32], index: 3, kind: input, shape index: {}]   ;;  %s10200_s4 = inlined_call_operand.hbm [shape: f32[32,32], index: 4, kind: input, shape index: {}]   ;;  %s10201_s5 = inlined_call_operand.hbm [shape: f32[32,32], index: 5, kind: input, shape index: {}]   ;;  %s10202_s6 = inlined_call_operand.hbm [shape: f32[32,32], index: 6, kind: input, shape index: {}]   ;;  %s10203_s7 = inlined_call_operand.vmem [shape: f32[1,32], index: 7, kind: input, shape index: {}]   ;;  %s10204_s8 = inlined_call_operand.vmem [shape: f32[1,32], index: 8, kind: input, shape index: {}]   ;;  %s10205_s9 = inlined_call_operand.vmem [shape: f32[1,32], index: 9, kind: input, shape index: {}]   ;;  %s10206_s10 = inlined_call_operand.hbm [shape: f32[32,128], index: 10, kind: input, shape index: {}]   ;;  %s10207_s11 = inlined_call_operand.vmem [shape: f32[1,128], index: 11, kind: input, shape index: {}]   ;;  %s10208_s12 = inlined_call_operand.vmem [shape: f32[128,32], index: 12, kind: input, shape index: {}]   ;;  %s10209_s13 = inlined_call_operand.vmem [shape: f32[1,32], index: 13, kind: input, shape index: {}]   ;;  %s10210_s14 = inlined_call_operand.hbm [shape: f32[16,256], index: 14, kind: output, shape index: {}]  }
   0x1   :  { %20 = vsyncpa [#allocation6], 0 }
   0x2   :  { %21 = vsyncpa [#allocation9], 0 }
   0x3   :  { %22 = vsyncpa [#allocation4], 0 }
   0x4   :  { %24 = vsyncpa [#allocation4 + $0x1], 0  ;;  %s8650_s29 = smov 0   ;;  %s8652_s30 = smov 0  }
   0x5   :  { %s8654_s15 = smov 0   ;;  %s8656_s16 = smov 0  }
   0x6 LB: > { %10216 = sst [smem:[#allocation15_spill]] %s8543_s29  ;;  %s8671_s17 = sadd.s32 4294967295, %s8555_s16   ;;  %s8555_s16 = sphi %s8656_s16, %s10229_s16   ;;  %s8551_s15 = sphi %s8654_s15, %s10231_s15   ;;  %s8547_s30 = sphi %s8652_s30, %s10233_s30   ;;  %s8543_s29 = sphi %s8650_s29, %s10232_s29  }
   0x7   : > { %10217 = sst [smem:[#allocation16_spill]] %s8551_s15  ;;  %s7278_s18 = sadd.s32 4294967294, %s8555_s16  }
   0x8   : > { %s8675_s19 = sadd.s32 1, %s8555_s16   ;;  %s336_s20 = sadd.s32 1, %s8551_s15 }
   0x9   : > { %10218 = sst [smem:[#allocation17_spill]] %s8675_s19  ;;  %s333_s21 = ssub.s32 %s8555_s16, %s8675_s19 }
   0xa   : > { %p346_p0 = scmp.ne.s32.totalorder %s8551_s15, %s8547_s30  ;;  %p334_p1 = scmp.eq.s32.totalorder %s333_s21, 0 }
   0xb   : > { %p347_p2 = scmp.eq.s32.totalorder %s8671_s17, 1  ;;  %p352_p3 = scmp.ne.s32.totalorder %s8547_s30, %s8543_s29 }
   0xc   : > { %p353_p4 = scmp.eq.s32.totalorder %s7278_s18, 1  ;;  %p7279_p7 = scmp.ge.s32.totalorder %s8555_s16, 1 }
   0xd   : > { %s8686_s22 = scalar_select %p334_p1, %s8551_s15, %s336_s20  }
   0xe   : > { %p8688_p5 = por %p347_p2, %p346_p0  ;;  %p8692_p6 = por %p353_p4, %p352_p3 }
   0xf   : > { %10219 = sst [smem:[#allocation18_spill]] %s8686_s22  ;;  %p360_p8 = scmp.lt.s32.totalorder %s8555_s16, 3 }
  0x10   : > { %s10221_s24 = scalar_select %p8692_p6, 1, 0 }
  0x11   : > { %p8153_p9 = scmp.eq.s32.totalorder %s8671_s17, 0  ;;  %p8699_p10 = pnand %p7279_p7, %p360_p8 }
  0x12   : > { %10222 = sst [smem:[#allocation19_spill]] %s10221_s24  ;;  %s8557_s26 = smov [#allocation5]  }
  0x13   : > { %p8136_p11 = pneg %p8699_p10  ;;  %s394_s27 = sshll.u32 %s8557_s26, 4  ;;  %s395_s27 = int_to_ptr.vmem [resolvable:$true] %s394_s27 }
  0x14   : > { %s8558_s18 = smov [#allocation2]   ;;  %s8559_s21 = smov [#allocation7]  }
  0x15   : > { %p8707_p12 = pnand %p8153_p9, %p8136_p11  ;;  %s381_s20 = sshll.u32 %s8558_s18, 4  ;;  %s382_s20 = int_to_ptr.vmem [resolvable:$true] %s381_s20 }
  0x16   : > { %s407_s22 = sshll.u32 %s8559_s21, 4  ;;  %s8390_s15 = scalar_lea.vmem %s395_s27, 512  ;;  %s408_s22 = int_to_ptr.vmem [resolvable:$true] %s407_s22 }
  0x17   : > { %p8381_p13 = pneg %p8707_p12  ;;  %p8391_p0 = scmp.ne.s32.totalorder %s395_s27, %s8390_s15 }
  0x18   : > { %p8398_p3 = scmp.lt.s32.totalorder %s395_s27, %s395_s27  ;;  %p8399_p4 = scmp.lt.s32.totalorder %s8390_s15, %s8390_s15 }
  0x19   : > { %p8393_p1 = pnand %p8391_p0, %p8381_p13 }
  0x1a   : > { %p8400_p7 = por %p8399_p4, %p8398_p3 }
  0x1b   : > { %p8394_p2 = pneg %p8393_p1 }
  0x1d   : > { %p8401_p8 = pnand %p8400_p7, %p8394_p2 }
  0x1f   : > { %8404 = shalt.err (!%p8401_p8)
}
  0x20   : > { %s8560_s26 = smov 128   ;;  %s8561_s18 = smov 8  }
  0x21   : > { %8142 = dma.hbm_to_vmem [thread:$0]  (!%p8707_p12), %s10201_s5, 512, %s395_s27, [#allocation6], %s8560_s26, %s8560_s26, %s8561_s18  }
  0x22   : > { %s8416_s24 = scalar_lea.vmem %s382_s20, 512  ;;  %p8424_p2 = scmp.lt.s32.totalorder %s382_s20, %s382_s20 }
  0x23   : > { %p8417_p11 = scmp.ne.s32.totalorder %s382_s20, %s8416_s24  ;;  %p8425_p3 = scmp.lt.s32.totalorder %s8416_s24, %s8416_s24 }
  0x25   : > { %p8419_p0 = pnand %p8417_p11, %p8381_p13  ;;  %p8426_p4 = por %p8425_p3, %p8424_p2 }
  0x27   : > { %p8420_p1 = pneg %p8419_p0 }
  0x29   : > { %p8427_p7 = pnand %p8426_p4, %p8420_p1 }
  0x2b   : > { %8430 = shalt.err (!%p8427_p7)
}
  0x2c   : > { %8139 = dma.hbm_to_vmem [thread:$0]  (!%p8707_p12), %s10200_s4, 512, %s382_s20, [#allocation3], %s8560_s26, %s8560_s26, %s8561_s18  }
  0x2d   : > { %s8442_s19 = scalar_lea.vmem %s408_s22, 512  ;;  %p8450_p2 = scmp.lt.s32.totalorder %s408_s22, %s408_s22 }
  0x2e   : > { %p8443_p8 = scmp.ne.s32.totalorder %s408_s22, %s8442_s19  ;;  %p8451_p1 = scmp.lt.s32.totalorder %s8442_s19, %s8442_s19 }
  0x30   : > { %p8445_p11 = pnand %p8443_p8, %p8381_p13  ;;  %p8452_p3 = por %p8451_p1, %p8450_p2 }
  0x32   : > { %p8446_p0 = pneg %p8445_p11 }
  0x34   : > { %p8453_p4 = pnand %p8452_p3, %p8446_p0 }
  0x36   : > { %8456 = shalt.err (!%p8453_p4)
}
  0x37   : > { %8145 = dma.hbm_to_vmem [thread:$0]  (!%p8707_p12), %s10202_s6, 512, %s408_s22, [#allocation6], %s8560_s26, %s8560_s26, %s8561_s18  }
  0x38   : > { %s8562_s27 = smov [#allocation8]  }
  0x39   : > { %s429_s20 = sshll.u32 %s8562_s27, 4  ;;  %s430_s20 = int_to_ptr.vmem [resolvable:$true] %s429_s20 }
  0x3a   : > { %s8468_s21 = scalar_lea.vmem %s430_s20, 512  ;;  %p8476_p0 = scmp.lt.s32.totalorder %s430_s20, %s430_s20 }
  0x3b   : > { %p8469_p7 = scmp.ne.s32.totalorder %s430_s20, %s8468_s21  ;;  %p8477_p2 = scmp.lt.s32.totalorder %s8468_s21, %s8468_s21 }
  0x3d   : > { %p8471_p8 = pnand %p8469_p7, %p8381_p13  ;;  %p8478_p1 = por %p8477_p2, %p8476_p0 }
  0x3f   : > { %p8472_p11 = pneg %p8471_p8 }
  0x41   : > { %p8479_p3 = pnand %p8478_p1, %p8472_p11 }
  0x43   : > { %8482 = shalt.err (!%p8479_p3)
}
  0x44   : > { %8148 = dma.hbm_to_vmem [thread:$0]  (!%p8707_p12), %s10206_s10, 512, %s430_s20, [#allocation9], %s8560_s26, %s8560_s26, %s8561_s18  }
  0x45   : > { %463 = sbr.rel (%p8699_p10) target bundleno = 4271 (0x10af), region = 76 }
  0x4a   : > { %8526 = dma.done.wait (%p8153_p9), [#allocation3], 512  }
  0x4b   : > { %8528 = vsyncadd (%p8153_p9), [#allocation3], 4294966784 }
  0x4c   : > { %8530 = dma.done.wait (%p8153_p9), [#allocation6], 1024  }
  0x4d   : > { %8532 = vsyncadd (%p8153_p9), [#allocation6], 4294966272 }
  0x4e   : > { %8534 = dma.done.wait (%p8153_p9), [#allocation9], 512  }
  0x4f   : > { %8536 = vsyncadd (%p8153_p9), [#allocation9], 4294966784  ;;  %s7291_s25 = sshll.u32 %s8671_s17, 3  ;;  %vm535_vm0 = vcmask 261120   ;;  %v674_v56 = vld [vmem:[%s10199_s3 + $0x18] sm:$0xff]  ;;  %v673_v58 = vld [vmem:[%s10199_s3 + $0x10] sm:$0xff] }
  0x50   : > { %p522_p10 = scmp.lt.s32.totalorder %s7291_s25, 15  ;;  %v924_v57 = vld [vmem:[#allocation5 + $0x18] sm:$0xff]  ;;  %7654 = vmatprep.subr.mxu1 %v674_v56  ;;  %v923_v59 = vld [vmem:[#allocation5 + $0x10] sm:$0xff]  ;;  %v672_v60 = vld [vmem:[%s10199_s3 + $0x8] sm:$0xff]  ;;  %vm8564_vm1 = vmmov 0   ;;  %vm1035_vm2 = vcmask 64512  }
  0x51   : > { %7694 = vmatprep.subr.mxu0 %v924_v57  ;;  %7655 = vmatpush3.msra.mxu1 %v674_v56  ;;  %v922_v61 = vld [vmem:[#allocation5 + $0x8] sm:$0xff]  ;;  %v671_v62 = vld [vmem:[%s10199_s3] sm:$0xff]  ;;  %s8565_s24 = smov 120   ;;  %s8566_s27 = smov 112   ;;  %vm6422_vm4 = vcmask 130048   ;;  %vm6431_vm5 = vcmask 195584  }
  0x52   : > { %s10235_s25 = smov (!%p522_p10, %s7291_s25), 15  ;;  %7695 = vmatpush3.msra.mxu0 %v924_v57  ;;  %7656 = vmatprep.subr.mxu1 %v673_v58  ;;  %v921_v63 = vld [vmem:[#allocation5] sm:$0xff]  ;;  %v813_v56 = vld [vmem:[#allocation2 + $0x8] sm:$0xff]  ;;  %s8567_s20 = smov 104   ;;  %vm7015_vm6 = vcmask 1041409   ;;  %vm7018_vm7 = vcmask 1042434  }
  0x53   : > { %s7292_s28 = sshll.u32 %s10235_s25, 3  ;;  %7696 = vmatprep.subr.mxu0 %v923_v59  ;;  %7657 = vmatpush3.msra.mxu1 %v673_v58  ;;  %s8568_s21 = smov 8   ;;  %vm7021_vm8 = vcmask 1043459   ;;  %vm7024_vm9 = vcmask 1044484   ;;  %vm7030_vm10 = vcmask 1046534   ;;  %vm7027_vm11 = vcmask 1045509  }
  0x54   : > { %s8775_s19 = scalar_lea.vmem %s10196_s0, %s7292_s28  ;;  %7697 = vmatpush3.msra.mxu0 %v923_v59  ;;  %7658 = vmatprep.subr.mxu1 %v672_v60  ;;  %s8569_s22 = smov 16   ;;  %vm7033_vm12 = vcmask 1047559   ;;  %vm7156_vm13 = vcmask 785408   ;;  %vm7154_vm14 = vcmask 523264  }
  0x55   : > { %v527_v0 = vld [vmem:[%s8775_s19] sm:$0xff]  ;;  %v529_v1 = vld [vmem:[%s8775_s19 + $0x10] sm:$0xff]  ;;  %v528_v2 = vld [vmem:[%s8775_s19 + $0x8] sm:$0xff]  ;;  %7698 = vmatprep.subr.mxu0 %v922_v61  ;;  %7659 = vmatpush3.msra.mxu1 %v672_v60  ;;  %s8570_s15 = smov 24  }
  0x56   : > { %v536_v3 = vsel %vm535_vm0, %v527_v0, 0.0  ;;  %v542_v4 = vsel %vm535_vm0, %v529_v1, 0.0  ;;  %v530_v5 = vld [vmem:[%s8775_s19 + $0x18] sm:$0xff]  ;;  %v539_v6 = vsel %vm535_vm0, %v528_v2, 0.0  ;;  %v531_v8 = vld [vmem:[%s8775_s19 + $0x20] sm:$0xff]  ;;  %v532_v9 = vld [vmem:[%s8775_s19 + $0x28] sm:$0xff]  ;;  %7699 = vmatpush3.msra.mxu0 %v922_v61  ;;  %7660 = vmatprep.subr.mxu1 %v671_v62 }
  0x57   : > { %537 = vadd.xlane.f32.xlu0 %v536_v3  ;;  %543 = vadd.xlane.f32.xlu1 %v542_v4  ;;  %v545_v7 = vsel %vm535_vm0, %v530_v5, 0.0  ;;  %v548_v10 = vsel %vm535_vm0, %v531_v8, 0.0  ;;  %v551_v11 = vsel %vm535_vm0, %v532_v9, 0.0  ;;  %v533_v12 = vld [vmem:[%s8775_s19 + $0x30] sm:$0xff]  ;;  %v534_v13 = vld [vmem:[%s8775_s19 + $0x38] sm:$0xff]  ;;  %v812_v61 = vld [vmem:[#allocation2] sm:$0xff] }
  0x58   : > { %v554_v14 = vsel %vm535_vm0, %v533_v12, 0.0  ;;  %v557_v15 = vsel %vm535_vm0, %v534_v13, 0.0  ;;  %7700 = vmatprep.subr.mxu0 %v921_v63  ;;  %7661 = vmatpush3.msra.mxu1 %v671_v62 }
  0x59   : > { %7701 = vmatpush3.msra.mxu0 %v921_v63 }
  0x5b   : > { %540 = vadd.xlane.f32.xlu0 %v539_v6  ;;  %546 = vadd.xlane.f32.xlu1 %v545_v7 }
  0x5f   : > { %549 = vadd.xlane.f32.xlu0 %v548_v10  ;;  %552 = vadd.xlane.f32.xlu1 %v551_v11 }
  0x63   : > { %555 = vadd.xlane.f32.xlu0 %v554_v14  ;;  %558 = vadd.xlane.f32.xlu1 %v557_v15 }
  0xe0   : > { %v538_v16 = vpop.xlane.xlu0 %537  ;;  %v544_v17 = vpop.xlane.xlu1 %543 }
  0xe1   : > { %v561_v18 = vmul.f32 0.03125, %v538_v16  ;;  %v563_v19 = vmul.f32 0.03125, %v544_v17 }
  0xe3   : > { %v8793_v20 = vsub.f32 %v527_v0, %v561_v18  ;;  %v8795_v21 = vsub.f32 %v529_v1, %v563_v19  ;;  %v8845_v0 = vld [vmem:[#allocation2 + $0x18] sm:$0xff] }
  0xe4   : > { %v541_v22 = vpop.xlane.xlu0 %540  ;;  %v547_v23 = vpop.xlane.xlu1 %546  ;;  %7674 = vmatprep.subr.mxu1 %v8845_v0 }
  0xe5   : > { %v562_v24 = vmul.f32 0.03125, %v541_v22  ;;  %v564_v25 = vmul.f32 0.03125, %v547_v23  ;;  %v577_v26 = vmul.f32 %v8793_v20, %v8793_v20  ;;  %v579_v27 = vmul.f32 %v8795_v21, %v8795_v21 }
  0xe7   : > { %v8801_v28 = vsub.f32 %v528_v2, %v562_v24  ;;  %v8803_v29 = vsub.f32 %v530_v5, %v564_v25  ;;  %v585_v30 = vsel %vm535_vm0, %v577_v26, 0.0  ;;  %v591_v33 = vsel %vm535_vm0, %v579_v27, 0.0  ;;  %v7293_v27 = vld [vmem:[%s10197_s1] ss:$0 sm:$0xff] }
  0xe8   : > { %586 = vadd.xlane.f32.xlu0 %v585_v30  ;;  %v550_v31 = vpop.xlane.xlu0 %549  ;;  %v553_v32 = vpop.xlane.xlu1 %552 }
  0xe9   : > { %v565_v34 = vmul.f32 0.03125, %v550_v31  ;;  %v566_v35 = vmul.f32 0.03125, %v553_v32  ;;  %v578_v36 = vmul.f32 %v8801_v28, %v8801_v28  ;;  %v580_v37 = vmul.f32 %v8803_v29, %v8803_v29  ;;  %v7294_v32 = vld [vmem:[%s10198_s2] ss:$0 sm:$0xff] }
  0xeb   : > { %v8811_v38 = vsub.f32 %v531_v8, %v565_v34  ;;  %v8813_v39 = vsub.f32 %v532_v9, %v566_v35  ;;  %v588_v40 = vsel %vm535_vm0, %v578_v36, 0.0  ;;  %v594_v43 = vsel %vm535_vm0, %v580_v37, 0.0 }
  0xec   : > { %592 = vadd.xlane.f32.xlu0 %v591_v33  ;;  %589 = vadd.xlane.f32.xlu1 %v588_v40  ;;  %v556_v41 = vpop.xlane.xlu0 %555  ;;  %v559_v42 = vpop.xlane.xlu1 %558 }
  0xed   : > { %v567_v44 = vmul.f32 0.03125, %v556_v41  ;;  %v568_v45 = vmul.f32 0.03125, %v559_v42  ;;  %v581_v46 = vmul.f32 %v8811_v38, %v8811_v38  ;;  %v582_v47 = vmul.f32 %v8813_v39, %v8813_v39 }
  0xef   : > { %v8821_v48 = vsub.f32 %v533_v12, %v567_v44  ;;  %v8823_v49 = vsub.f32 %v534_v13, %v568_v45  ;;  %v597_v50 = vsel %vm535_vm0, %v581_v46, 0.0  ;;  %v600_v51 = vsel %vm535_vm0, %v582_v47, 0.0 }
  0xf0   : > { %595 = vadd.xlane.f32.xlu1 %v594_v43  ;;  %598 = vadd.xlane.f32.xlu0 %v597_v50 }
  0xf1   : > { %v583_v52 = vmul.f32 %v8821_v48, %v8821_v48  ;;  %v584_v53 = vmul.f32 %v8823_v49, %v8823_v49 }
  0xf3   : > { %v603_v54 = vsel %vm535_vm0, %v583_v52, 0.0  ;;  %v606_v55 = vsel %vm535_vm0, %v584_v53, 0.0 }
  0xf4   : > { %601 = vadd.xlane.f32.xlu1 %v600_v51  ;;  %604 = vadd.xlane.f32.xlu0 %v603_v54 }
  0xf8   : > { %607 = vadd.xlane.f32.xlu1 %v606_v55 }
 0x171   : > { %v587_v1 = vpop.xlane.xlu0 %586 }
 0x172   : > { %v609_v2 = vmul.f32 0.03125, %v587_v1 }
 0x174   : > { %v617_v3 = vadd.f32 1e-05, %v609_v2 }
 0x175   : > { %v590_v4 = vpop.xlane.xlu1 %589  ;;  %v593_v5 = vpop.xlane.xlu0 %592 }
 0x176   : > { %8211 = vrsqrt.f32 %v617_v3  ;;  %v610_v6 = vmul.f32 0.03125, %v590_v4  ;;  %v611_v7 = vmul.f32 0.03125, %v593_v5 }
 0x178   : > { %v618_v8 = vadd.f32 1e-05, %v610_v6  ;;  %v619_v9 = vadd.f32 1e-05, %v611_v7 }
 0x179   : > { %v596_v10 = vpop.xlane.xlu1 %595  ;;  %v599_v11 = vpop.xlane.xlu0 %598 }
 0x17a   : > { %8213 = vrsqrt.f32 %v618_v8  ;;  %v612_v12 = vmul.f32 0.03125, %v596_v10  ;;  %v613_v13 = vmul.f32 0.03125, %v599_v11 }
 0x17b   : > { %8215 = vrsqrt.f32 %v619_v9 }
 0x17c   : > { %v620_v14 = vadd.f32 1e-05, %v612_v12  ;;  %v621_v15 = vadd.f32 1e-05, %v613_v13 }
 0x17d   : > { %v602_v16 = vpop.xlane.xlu1 %601  ;;  %v605_v17 = vpop.xlane.xlu0 %604 }
 0x17e   : > { %8217 = vrsqrt.f32 %v620_v14  ;;  %v614_v18 = vmul.f32 0.03125, %v602_v16  ;;  %v615_v19 = vmul.f32 0.03125, %v605_v17 }
 0x17f   : > { %8219 = vrsqrt.f32 %v621_v15 }
 0x180   : > { %v622_v22 = vadd.f32 1e-05, %v614_v18  ;;  %v623_v23 = vadd.f32 1e-05, %v615_v19 }
 0x181   : > { %v608_v24 = vpop.xlane.xlu1 %607 }
 0x182   : > { %8221 = vrsqrt.f32 %v622_v22  ;;  %v616_v25 = vmul.f32 0.03125, %v608_v24 }
 0x183   : > { %v8212_v26 = vpop.eup %8211  ;;  %8223 = vrsqrt.f32 %v623_v23 }
 0x184   : > { %v624_v30 = vadd.f32 1e-05, %v616_v25  ;;  %v633_v31 = vmul.f32 %v8212_v26, %v8793_v20 }
 0x186   : > { %8225 = vrsqrt.f32 %v624_v30  ;;  %v648_v33 = vmul.f32 %v7293_v27, %v633_v31  ;;  %v1030_v31 = vlaneseq }
 0x187   : > { %v8214_v34 = vpop.eup %8213 }
 0x188   : > { %v8216_v35 = vpop.eup %8215  ;;  %v663_v36 = vadd.f32 %v7294_v32, %v648_v33  ;;  %v634_v37 = vmul.f32 %v8214_v34, %v8801_v28  ;;  %v1031_v33 = vshrl.u32 %v1030_v31, 7  ;;  %v1033_v34 = vand.u32 127, %v1030_v31 }
 0x189   : > { %v635_v40 = vmul.f32 %v8216_v35, %v8795_v21  ;;  %v814_v21 = vld [vmem:[#allocation2 + $0x10] sm:$0xff] }
 0x18a   : > { %7662 = vmatprep.mubr.msk.f32.mxu1 %vm535_vm0, %v663_v36  ;;  %7702 = vmatprep.mubr.msk.f32.mxu0 %vm535_vm0, %v663_v36  ;;  %v649_v41 = vmul.f32 %v7293_v27, %v634_v37  ;;  %vm8997_vm3 = vcmp.le.s32.totalorder %v1033_v34, %v1031_v33 }
 0x18b   : > { %v8218_v42 = vpop.eup %8217  ;;  %v650_v20 = vmul.f32 %v7293_v27, %v635_v40 }
 0x18c   : > { %v8220_v43 = vpop.eup %8219  ;;  %v664_v44 = vadd.f32 %v7294_v32, %v649_v41  ;;  %v636_v45 = vmul.f32 %v8218_v42, %v8803_v29 }
 0x18d   : > { %v665_v46 = vadd.f32 %v7294_v32, %v650_v20  ;;  %v637_v47 = vmul.f32 %v8220_v43, %v8811_v38 }
 0x18e   : > { %7663 = vmatmul.mubr.msk.f32.vlgmr.msra.gmra.mxu1 %vm535_vm0, %v664_v44  ;;  %7703 = vmatmul.mubr.msk.f32.vlgmr.msra.gmra.mxu0 %vm535_vm0, %v664_v44  ;;  %v651_v28 = vmul.f32 %v7293_v27, %v636_v45 }
 0x18f   : > { %v8222_v50 = vpop.eup %8221  ;;  %7665 = vmatprep.mubr.msk.f32.mxu1 %vm535_vm0, %v665_v46  ;;  %7705 = vmatprep.mubr.msk.f32.mxu0 %vm535_vm0, %v665_v46  ;;  %v652_v51 = vmul.f32 %v7293_v27, %v637_v47 }
 0x190   : > { %v8224_v52 = vpop.eup %8223  ;;  %v666_v53 = vadd.f32 %v7294_v32, %v651_v28  ;;  %v638_v54 = vmul.f32 %v8222_v50, %v8813_v39  ;;  %7675 = vmatpush3.msra.mxu1 %v8845_v0 }
 0x191   : > { %v667_v29 = vadd.f32 %v7294_v32, %v652_v51  ;;  %v639_v38 = vmul.f32 %v8224_v52, %v8821_v48  ;;  %7676 = vmatprep.subr.mxu1 %v814_v21 }
 0x192   : > { %7666 = vmatmul.mubr.msk.f32.gmra.mxu1 %vm535_vm0, %v666_v53  ;;  %7706 = vmatmul.mubr.msk.f32.gmra.mxu0 %vm535_vm0, %v666_v53  ;;  %v653_v55 = vmul.f32 %v7293_v27, %v638_v54 }
 0x193   : > { %v8226_v57 = vpop.eup %8225  ;;  %7668 = vmatprep.mubr.msk.f32.mxu1 %vm535_vm0, %v667_v29  ;;  %7708 = vmatprep.mubr.msk.f32.mxu0 %vm535_vm0, %v667_v29  ;;  %v654_v58 = vmul.f32 %v7293_v27, %v639_v38 }
 0x194   : > { %v668_v59 = vadd.f32 %v7294_v32, %v653_v55  ;;  %7677 = vmatpush3.msra.mxu1 %v814_v21  ;;  %v640_v39 = vmul.f32 %v8226_v57, %v8823_v49  ;;  %v8563_v49 = vmov 0.0  }
 0x195   : > { %v669_v60 = vadd.f32 %v7294_v32, %v654_v58  ;;  %7678 = vmatprep.subr.mxu1 %v813_v56  ;;  %7734 = vmatprep.subr.mxu0 %v8563_v49 }
 0x196   : > { %7669 = vmatmul.mubr.msk.f32.gmra.mxu1 %vm535_vm0, %v668_v59  ;;  %7709 = vmatmul.mubr.msk.f32.gmra.mxu0 %vm535_vm0, %v668_v59  ;;  %v655_v48 = vmul.f32 %v7293_v27, %v640_v39 }
 0x197   : > { %7671 = vmatprep.mubr.msk.f32.mxu1 %vm535_vm0, %v669_v60  ;;  %7711 = vmatprep.mubr.msk.f32.mxu0 %vm535_vm0, %v669_v60 }
 0x198   : > { %v670_v62 = vadd.f32 %v7294_v32, %v655_v48  ;;  %7679 = vmatpush3.msra.mxu1 %v813_v56 }
 0x199   : > { %7680 = vmatprep.subr.mxu1 %v812_v61 }
 0x19a   : > { %7672 = vmatmul.mubr.msk.f32.gmra.mxu1 %vm535_vm0, %v670_v62  ;;  %7712 = vmatmul.mubr.msk.f32.gmra.mxu0 %vm535_vm0, %v670_v62 }
 0x19b   : > { %7682 = vmatprep.mubr.msk.f32.mxu1 %vm535_vm0, %v663_v36  ;;  %7681 = vmatpush3.msra.mxu1 %v812_v61 }
 0x19c   : > { %7714 = vmatprep.subr.mxu1 %v8563_v49  ;;  %7736 = vmatprep.mubr.msk.f32.mxu0 %vm8564_vm1, %v8563_v49 }
 0x19e   : > { %7683 = vmatmul.mubr.msk.f32.vlgmr.msra.gmra.mxu1 %vm535_vm0, %v664_v44 }
 0x19f   : > { %7685 = vmatprep.mubr.msk.f32.mxu1 %vm535_vm0, %v665_v46 }
 0x1a2   : > { %7686 = vmatmul.mubr.msk.f32.gmra.mxu1 %vm535_vm0, %v666_v53 }
 0x1a3   : > { %7688 = vmatprep.mubr.msk.f32.mxu1 %vm535_vm0, %v667_v29 }
 0x1a6   : > { %7689 = vmatmul.mubr.msk.f32.gmra.mxu1 %vm535_vm0, %v668_v59 }
 0x1a7   : > { %7691 = vmatprep.mubr.msk.f32.mxu1 %vm535_vm0, %v669_v60 }
 0x1aa   : > { %7692 = vmatmul.mubr.msk.f32.gmra.mxu1 %vm535_vm0, %v670_v62 }
 0x1ab   : > { %7716 = vmatprep.mubr.msk.f32.mxu1 %vm8564_vm1, %v8563_v49 }
 0x24e   : > { %v7664_v63 = vpop.f32.mrf.mxu1  ;;  %v8935_v18 = vpop.f32.mrf.mxu0 }
 0x24f   : > { %v8912_v12 = vmul.f32 0.17677669, %v7664_v63 }
 0x250   : > { %v765_v0 = vpop.f32.mrf.mxu1  ;;  %v8957_v24 = vpop.f32.mrf.mxu0 }
 0x251   : > { %v8899_v9 = vmul.f32 0.17677669, %v765_v0 }
 0x252   : > { %v7667_v1 = vpop.f32.mrf.mxu1  ;;  %v8989_v27 = vpop.f32.mrf.mxu0 }
 0x253   : > { %v8947_v22 = vmul.f32 0.17677669, %v7667_v1 }
 0x254   : > { %v775_v2 = vpop.f32.mrf.mxu1  ;;  %v8991_v30 = vpop.f32.mrf.mxu0 }
 0x255   : > { %v8925_v15 = vmul.f32 0.17677669, %v775_v2 }
 0x256   : > { %v7670_v3 = vpop.f32.mrf.mxu1  ;;  %v8993_v32 = vpop.f32.mrf.mxu0 }
 0x257   : > { %v8966_v25 = vmul.f32 0.17677669, %v7670_v3 }
 0x258   : > { %v785_v4 = vpop.f32.mrf.mxu1  ;;  %v8995_v35 = vpop.f32.mrf.mxu0 }
 0x259   : > { %v8927_v16 = vmul.f32 0.17677669, %v785_v4 }
 0x25a   : > { %v7673_v5 = vpop.f32.mrf.mxu1  ;;  %v9003_v41 = vpop.f32.mrf.mxu0 }
 0x25b   : > { %v8980_v26 = vmul.f32 0.17677669, %v7673_v5 }
 0x25c   : > { %v795_v6 = vpop.f32.mrf.mxu1  ;;  %v9008_v45 = vpop.f32.mrf.mxu0 }
 0x25d   : > { %v8949_v23 = vmul.f32 0.17677669, %v795_v6 }
 0x25e   : > { %v8893_v7 = vpop.f32.mrf.mxu1 }
 0x260   : > { %v8895_v8 = vpop.f32.mrf.mxu1 }
 0x261   : > { %7715 = vmatpush3.xpose.msk.msra.mxu1 %vm1035_vm2, %v8895_v8 }
 0x262   : > { %v8901_v10 = vpop.f32.mrf.mxu1  ;;  %7719 = vmatprep.subr.mxu1 %v8563_v49 }
 0x264   : > { %v8904_v11 = vpop.f32.mrf.mxu1  ;;  %7717 = vmatmul.mubr.msk.f32.vlgmr.msra.gmra.mxu1 %vm1035_vm2, %v8899_v9 }
 0x265   : > { %7720 = vmatpush3.xpose.msk.msra.mxu1 %vm1035_vm2, %v8893_v7  ;;  %7721 = vmatprep.mubr.msk.f32.mxu1 %vm8564_vm1, %v8563_v49 }
 0x266   : > { %v8914_v13 = vpop.f32.mrf.mxu1  ;;  %7724 = vmatprep.subr.mxu1 %v8563_v49 }
 0x268   : > { %v8917_v14 = vpop.f32.mrf.mxu1  ;;  %7722 = vmatmul.mubr.msk.f32.vlgmr.msra.gmra.mxu1 %vm1035_vm2, %v8912_v12 }
 0x269   : > { %7725 = vmatpush3.xpose.msk.msra.mxu1 %vm1035_vm2, %v8904_v11  ;;  %7735 = vmatpush3.xpose.msk.msra.mxu0 %vm1035_vm2, %v8917_v14 }
 0x26a   : > { %v8929_v17 = vpop.f32.mrf.mxu1  ;;  %7726 = vmatprep.mubr.msk.f32.mxu1 %vm8564_vm1, %v8563_v49  ;;  %7729 = vmatprep.subr.mxu1 %v8563_v49 }
 0x26b   : > { %7744 = vmatprep.subr.mxu0 %v8563_v49 }
 0x26c   : > { %v8937_v19 = vpop.f32.mrf.mxu1  ;;  %7727 = vmatmul.mubr.msk.f32.vlgmr.msra.gmra.mxu1 %vm1035_vm2, %v8925_v15  ;;  %7737 = vmatmul.mubr.msk.f32.vlgmr.msra.gmra.mxu0 %vm1035_vm2, %v8927_v16 }
 0x26d   : > { %7730 = vmatpush3.xpose.msk.msra.mxu1 %vm1035_vm2, %v8901_v10  ;;  %7745 = vmatpush3.xpose.msk.msra.mxu0 %vm1035_vm2, %v8937_v19 }
 0x26e   : > { %7731 = vmatprep.mubr.msk.f32.mxu1 %vm8564_vm1, %v8563_v49  ;;  %7746 = vmatprep.mubr.msk.f32.mxu0 %vm8564_vm1, %v8563_v49 }
 0x26f   : > { %7739 = vmatprep.subr.mxu1 %v8563_v49  ;;  %7754 = vmatprep.subr.mxu0 %v8563_v49 }
 0x270   : > { %7732 = vmatmul.mubr.msk.f32.vlgmr.msra.gmra.mxu1 %vm1035_vm2, %v8947_v22  ;;  %7747 = vmatmul.mubr.msk.f32.vlgmr.msra.gmra.mxu0 %vm1035_vm2, %v8949_v23 }
 0x271   : > { %7740 = vmatpush3.xpose.msk.msra.mxu1 %vm1035_vm2, %v8914_v13  ;;  %7755 = vmatpush3.msra.mxu0 %v8957_v24 }
 0x272   : > { %7741 = vmatprep.mubr.msk.f32.mxu1 %vm8564_vm1, %v8563_v49  ;;  %7749 = vmatprep.subr.mxu1 %v8563_v49 }
 0x273   : > { %7756 = vmatprep.mubr.msk.f32.mxu0 %vm8564_vm1, %v8563_v49  ;;  %7764 = vmatprep.subr.mxu0 %v8563_v49 }
 0x274   : > { %7742 = vmatmul.mubr.msk.f32.vlgmr.msra.gmra.mxu1 %vm1035_vm2, %v8966_v25 }
 0x275   : > { %7750 = vmatpush3.xpose.msk.msra.mxu1 %vm1035_vm2, %v8929_v17  ;;  %7751 = vmatprep.mubr.msk.f32.mxu1 %vm8564_vm1, %v8563_v49 }
 0x276   : > { %7759 = vmatprep.subr.mxu1 %v8563_v49 }
 0x278   : > { %7752 = vmatmul.mubr.msk.f32.vlgmr.msra.gmra.mxu1 %vm1035_vm2, %v8980_v26 }
 0x279   : > { %7760 = vmatpush3.msra.mxu1 %v8935_v18  ;;  %7761 = vmatprep.mubr.msk.f32.mxu1 %vm8564_vm1, %v8563_v49 }
 0x27a   : > { %7769 = vmatprep.subr.mxu1 %v8563_v49 }
 0x324   : > { %v1108_v37 = vpop.f32.mrf.mxu1 }
 0x325   : > { %v1646_v40 = vsel %vm8997_vm3, %v1108_v37, -inf }
 0x326   : > { %v7718_v42 = vpop.f32.mrf.mxu1  ;;  %v1654_v20 = vsel %vm1035_vm2, %v1646_v40, -inf }
 0x327   : > { %1655 = vmax.xlane.f32.xlu0 %v1654_v20 }
 0x328   : > { %v1184_v43 = vpop.f32.mrf.mxu1 }
 0x329   : > { %v1647_v44 = vsel %vm8997_vm3, %v1184_v43, -inf }
 0x32a   : > { %v7723_v46 = vpop.f32.mrf.mxu1  ;;  %v1657_v47 = vsel %vm1035_vm2, %v1647_v44, -inf }
 0x32b   : > { %1658 = vmax.xlane.f32.xlu1 %v1657_v47 }
 0x32c   : > { %v1260_v28 = vpop.f32.mrf.mxu1  ;;  %v1412_v21 = vpop.f32.mrf.mxu0 }
 0x32d   : > { %v1648_v50 = vsel %vm8997_vm3, %v1260_v28, -inf  ;;  %v1650_v54 = vsel %vm8997_vm3, %v1412_v21, -inf }
 0x32e   : > { %v7728_v51 = vpop.f32.mrf.mxu1  ;;  %v7738_v52 = vpop.f32.mrf.mxu0  ;;  %v1660_v53 = vsel %vm1035_vm2, %v1648_v50, -inf  ;;  %v1666_v58 = vsel %vm1035_vm2, %v1650_v54, -inf }
 0x32f   : > { %1661 = vmax.xlane.f32.xlu0 %v1660_v53 }
 0x330   : > { %v1336_v29 = vpop.f32.mrf.mxu1  ;;  %v1564_v38 = vpop.f32.mrf.mxu0 }
 0x331   : > { %v1649_v55 = vsel %vm8997_vm3, %v1336_v29, -inf  ;;  %v1652_v39 = vsel %vm8997_vm3, %v1564_v38, -inf }
 0x332   : > { %v7733_v56 = vpop.f32.mrf.mxu1  ;;  %v7748_v57 = vpop.f32.mrf.mxu0  ;;  %v1663_v59 = vsel %vm1035_vm2, %v1649_v55, -inf  ;;  %v1672_v61 = vsel %vm1035_vm2, %v1652_v39, -inf }
 0x333   : > { %1667 = vmax.xlane.f32.xlu0 %v1666_v58  ;;  %1664 = vmax.xlane.f32.xlu1 %v1663_v59 }
 0x334   : > { %v1488_v60 = vpop.f32.mrf.mxu1 }
 0x335   : > { %v1651_v0 = vsel %vm8997_vm3, %v1488_v60, -inf }
 0x336   : > { %v7743_v48 = vpop.f32.mrf.mxu1  ;;  %v1669_v1 = vsel %vm1035_vm2, %v1651_v0, -inf }
 0x337   : > { %1673 = vmax.xlane.f32.xlu0 %v1672_v61 }
 0x338   : > { %v1640_v62 = vpop.f32.mrf.mxu1 }
 0x339   : > { %v9038_v2 = vsel %vm8997_vm3, %v1640_v62, -inf }
 0x33a   : > { %v7753_v63 = vpop.f32.mrf.mxu1  ;;  %v1675_v3 = vsel %vm1035_vm2, %v9038_v2, -inf }
 0x344   : > { %2406 = vrot.lane.b32.xlu1 %v8893_v7, %s8565_s24 }
 0x348   : > { %2326 = vrot.lane.b32.xlu1 %v8899_v9, %s8565_s24 }
 0x34c   : > { %2404 = vrot.lane.b32.xlu1 %v8912_v12, %s8565_s24 }
 0x34d   : > { %2328 = vrot.lane.b32.xlu0 %v8895_v8, %s8565_s24 }
 0x351   : > { %2484 = vrot.lane.b32.xlu0 %v8904_v11, %s8565_s24 }
 0x370   : > { %1670 = vmax.xlane.f32.xlu1 %v1669_v1 }
 0x374   : > { %1676 = vmax.xlane.f32.xlu1 %v1675_v3 }
 0x385   : > { %2562 = vrot.lane.b32.xlu1 %v8901_v10, %s8565_s24 }
 0x3b0   : > { %v1656_v4 = vpop.xlane.xlu0 %1655 }
 0x3b1   : > { %v1678_v5 = vsub.f32 %v1646_v40, %v1656_v4 }
 0x3b3   : > { %v1686_v6 = vmul.f32 1.442695, %v1678_v5 }
 0x3b4   : > { %v1659_v31 = vpop.xlane.xlu1 %1658 }
 0x3b5   : > { %8227 = vpow2.f32 %v1686_v6  ;;  %v1679_v33 = vsub.f32 %v1647_v44, %v1659_v31 }
 0x3b7   : > { %v1688_v34 = vmul.f32 1.442695, %v1679_v33 }
 0x3b8   : > { %v1662_v37 = vpop.xlane.xlu0 %1661 }
 0x3b9   : > { %8229 = vpow2.f32 %v1688_v34  ;;  %v1680_v42 = vsub.f32 %v1648_v50, %v1662_v37 }
 0x3bb   : > { %v1690_v20 = vmul.f32 1.442695, %v1680_v42 }
 0x3bc   : > { %v1668_v43 = vpop.xlane.xlu0 %1667  ;;  %v1665_v46 = vpop.xlane.xlu1 %1664 }
 0x3bd   : > { %8231 = vpow2.f32 %v1690_v20  ;;  %v1682_v47 = vsub.f32 %v1650_v54, %v1668_v43  ;;  %v1681_v28 = vsub.f32 %v1649_v55, %v1665_v46 }
 0x3bf   : > { %v1694_v21 = vmul.f32 1.442695, %v1682_v47  ;;  %v1692_v51 = vmul.f32 1.442695, %v1681_v28 }
 0x3c0   : > { %v1674_v52 = vpop.xlane.xlu0 %1673  ;;  %v9069_v48 = vpop.permute.xlu1 %2406 }
 0x3c1   : > { %8233 = vpow2.f32 %v1694_v21  ;;  %v1684_v53 = vsub.f32 %v1652_v39, %v1674_v52 }
 0x3c2   : > { %v8228_v40 = vpop.eup %8227  ;;  %8235 = vpow2.f32 %v1692_v51 }
 0x3c3   : > { %v1698_v29 = vmul.f32 1.442695, %v1684_v53  ;;  %v1702_v44 = vsel %vm1035_vm2, %v8228_v40, 0.0 }
 0x3c4   : > { %1703 = vadd.xlane.f32.xlu0 %v1702_v44  ;;  %v9075_v61 = vpop.permute.xlu1 %2326 }
 0x3c5   : > { %8237 = vpow2.f32 %v1698_v29 }
 0x3c6   : > { %v9045_v38 = vpop.eup %8229 }
 0x3c7   : > { %v1705_v50 = vsel %vm1035_vm2, %v9045_v38, 0.0 }
 0x3c8   : > { %1706 = vadd.xlane.f32.xlu1 %v1705_v50  ;;  %v9079_v62 = vpop.permute.xlu1 %2404 }
 0x3ca   : > { %v9049_v54 = vpop.eup %8231 }
 0x3cb   : > { %v1708_v55 = vsel %vm1035_vm2, %v9049_v54, 0.0 }
 0x3cc   : > { %1709 = vadd.xlane.f32.xlu0 %v1708_v55 }
 0x3ce   : > { %v9053_v56 = vpop.eup %8233 }
 0x3cf   : > { %v9055_v57 = vpop.eup %8235  ;;  %v1714_v58 = vsel %vm1035_vm2, %v9053_v56, 0.0 }
 0x3d0   : > { %v1711_v59 = vsel %vm1035_vm2, %v9055_v57, 0.0  ;;  %1715 = vadd.xlane.f32.xlu0 %v1714_v58 }
 0x3d1   : > { %1712 = vadd.xlane.f32.xlu1 %v1711_v59 }
 0x3d2   : > { %v9061_v39 = vpop.eup %8237 }
 0x3d3   : > { %v1720_v60 = vsel %vm1035_vm2, %v9061_v39, 0.0 }
 0x3d4   : > { %1721 = vadd.xlane.f32.xlu0 %v1720_v60 }
 0x3e2   : > { %2560 = vrot.lane.b32.xlu1 %v8947_v22, %s8565_s24 }
 0x3e6   : > { %2718 = vrot.lane.b32.xlu1 %v8914_v13, %s8565_s24 }
 0x3ea   : > { %2482 = vrot.lane.b32.xlu0 %v8925_v15, %s8565_s24 }
 0x3ee   : > { %2640 = vrot.lane.b32.xlu0 %v8917_v14, %s8565_s24 }
 0x3f2   : > { %2638 = vrot.lane.b32.xlu0 %v8927_v16, %s8565_s24 }
 0x3f6   : > { %2796 = vrot.lane.b32.xlu0 %v8937_v19, %s8565_s24 }
 0x3f9   : > { %v1671_v63 = vpop.xlane.xlu1 %1670 }
 0x3fa   : > { %v1683_v1 = vsub.f32 %v1651_v0, %v1671_v63  ;;  %2794 = vrot.lane.b32.xlu0 %v8949_v23, %s8565_s24 }
 0x3fc   : > { %v1696_v3 = vmul.f32 1.442695, %v1683_v1 }
 0x3fd   : > { %v1677_v4 = vpop.xlane.xlu1 %1676 }
 0x3fe   : > { %8239 = vpow2.f32 %v1696_v3  ;;  %v1685_v5 = vsub.f32 %v9038_v2, %v1677_v4  ;;  %v2329_v2 = vpop.permute.xlu0 %2328 }
 0x400   : > { %v1700_v6 = vmul.f32 1.442695, %v1685_v5 }
 0x401   : > { %v9100_v42 = vpop.permute.xlu1 %2562 }
 0x402   : > { %8241 = vpow2.f32 %v1700_v6  ;;  %v2485_v37 = vpop.permute.xlu0 %2484 }
 0x40b   : > { %v9086_v31 = vpop.eup %8239 }
 0x40c   : > { %v1717_v33 = vsel %vm1035_vm2, %v9086_v31, 0.0 }
 0x40d   : > { %1718 = vadd.xlane.f32.xlu1 %v1717_v33 }
 0x40f   : > { %v9090_v34 = vpop.eup %8241 }
 0x410   : > { %v1723_v0 = vsel %vm1035_vm2, %v9090_v34, 0.0 }
 0x411   : > { %1724 = vadd.xlane.f32.xlu1 %v1723_v0 }
 0x422   : > { %2716 = vrot.lane.b32.xlu1 %v8966_v25, %s8565_s24 }
 0x426   : > { %2874 = vrot.lane.b32.xlu1 %v8929_v17, %s8565_s24 }
 0x42a   : > { %2872 = vrot.lane.b32.xlu1 %v8980_v26, %s8565_s24 }
 0x44d   : > { %v1704_v20 = vpop.xlane.xlu0 %1703 }
 0x44e   : > { %8243 = vrcp.f32 %v1704_v20 }
 0x451   : > { %v1707_v43 = vpop.xlane.xlu1 %1706 }
 0x452   : > { %8245 = vrcp.f32 %v1707_v43 }
 0x455   : > { %v1710_v46 = vpop.xlane.xlu0 %1709 }
 0x456   : > { %8247 = vrcp.f32 %v1710_v46 }
 0x459   : > { %v1716_v47 = vpop.xlane.xlu0 %1715 }
 0x45a   : > { %v1713_v28 = vpop.xlane.xlu1 %1712  ;;  %8249 = vrcp.f32 %v1716_v47 }
 0x45b   : > { %v8244_v21 = vpop.eup %8243  ;;  %8251 = vrcp.f32 %v1713_v28 }
 0x45c   : > { %v1734_v51 = vmul.f32 %v8244_v21, %v8228_v40 }
 0x45d   : > { %v1722_v52 = vpop.xlane.xlu0 %1721 }
 0x45e   : > { %8253 = vrcp.f32 %v1722_v52  ;;  %7757 = vmatmul.mubr.msk.f32.vlgmr.msra.gmra.mxu0 %vm1035_vm2, %v1734_v51 }
 0x45f   : > { %v8246_v53 = vpop.eup %8245  ;;  %7765 = vmatpush3.msra.mxu0 %v8991_v30  ;;  %7766 = vmatprep.mubr.msk.f32.mxu0 %vm8564_vm1, %v8563_v49 }
 0x460   : > { %v1735_v29 = vmul.f32 %v8246_v53, %v9045_v38  ;;  %7774 = vmatprep.subr.mxu0 %v8563_v49 }
 0x461   : > { %v2483_v50 = vpop.permute.xlu0 %2482 }
 0x462   : > { %7762 = vmatmul.mubr.msk.f32.vlgmr.msra.gmra.mxu1 %vm1035_vm2, %v1735_v29 }
 0x463   : > { %v8248_v44 = vpop.eup %8247  ;;  %7770 = vmatpush3.msra.mxu1 %v8989_v27  ;;  %7771 = vmatprep.mubr.msk.f32.mxu1 %vm8564_vm1, %v8563_v49 }
 0x464   : > { %v1736_v40 = vmul.f32 %v8248_v44, %v9049_v54  ;;  %7779 = vmatprep.subr.mxu1 %v8563_v49 }
 0x465   : > { %v2641_v60 = vpop.permute.xlu0 %2640 }
 0x466   : > { %7767 = vmatmul.mubr.msk.f32.vlgmr.msra.gmra.mxu0 %vm1035_vm2, %v1736_v40 }
 0x467   : > { %v8250_v55 = vpop.eup %8249  ;;  %7775 = vmatpush3.msra.mxu0 %v8995_v35  ;;  %7776 = vmatprep.mubr.msk.f32.mxu0 %vm8564_vm1, %v8563_v49 }
 0x468   : > { %v8252_v38 = vpop.eup %8251  ;;  %7784 = vmatprep.subr.mxu0 %v8563_v49  ;;  %v1738_v58 = vmul.f32 %v8250_v55, %v9053_v56 }
 0x469   : > { %v1737_v59 = vmul.f32 %v8252_v38, %v9055_v57  ;;  %v2639_v56 = vpop.permute.xlu0 %2638 }
 0x46a   : > { %7777 = vmatmul.mubr.msk.f32.vlgmr.msra.gmra.mxu0 %vm1035_vm2, %v1738_v58 }
 0x46b   : > { %v8254_v54 = vpop.eup %8253  ;;  %7772 = vmatmul.mubr.msk.f32.vlgmr.msra.gmra.mxu1 %vm1035_vm2, %v1737_v59  ;;  %7785 = vmatpush3.msra.mxu0 %v9008_v45 }
 0x46c   : > { %7780 = vmatpush3.msra.mxu1 %v8993_v32  ;;  %7786 = vmatprep.mubr.msk.f32.mxu0 %vm8564_vm1, %v8563_v49  ;;  %v1740_v63 = vmul.f32 %v8254_v54, %v9061_v39 }
 0x46d   : > { %7794 = vmatprep.subr.mxu0 %v8563_v49  ;;  %7781 = vmatprep.mubr.msk.f32.mxu1 %vm8564_vm1, %v8563_v49  ;;  %v2797_v57 = vpop.permute.xlu0 %2796 }
 0x46e   : > { %7787 = vmatmul.mubr.msk.f32.vlgmr.msra.gmra.mxu0 %vm1035_vm2, %v1740_v63  ;;  %7789 = vmatprep.subr.mxu1 %v8563_v49 }
 0x46f   : > { %7795 = vmatpush3.xpose.msk.msra.mxu0 %vm1035_vm2, %v2329_v2  ;;  %7796 = vmatprep.mubr.msk.f32.mxu0 %vm8564_vm1, %v8563_v49 }
 0x470   : > { %7804 = vmatprep.subr.mxu0 %v8563_v49 }
 0x471   : > { %v2795_v39 = vpop.permute.xlu0 %2794 }
 0x472   : > { %7797 = vmatmul.mubr.msk.f32.vlgmr.msra.gmra.mxu0 %vm1035_vm2, %v9075_v61  ;;  %v2561_v61 = vpop.permute.xlu1 %2560 }
 0x473   : > { %7805 = vmatpush3.xpose.msk.msra.mxu0 %vm1035_vm2, %v2485_v37  ;;  %7806 = vmatprep.mubr.msk.f32.mxu0 %vm8564_vm1, %v8563_v49 }
 0x474   : > { %7814 = vmatprep.subr.mxu0 %v8563_v49 }
 0x476   : > { %7807 = vmatmul.mubr.msk.f32.vlgmr.msra.gmra.mxu0 %vm1035_vm2, %v2483_v50  ;;  %v2719_v1 = vpop.permute.xlu1 %2718 }
 0x477   : > { %7815 = vmatpush3.xpose.msk.msra.mxu0 %vm1035_vm2, %v2641_v60  ;;  %7816 = vmatprep.mubr.msk.f32.mxu0 %vm8564_vm1, %v8563_v49 }
 0x478   : > { %7824 = vmatprep.subr.mxu0 %v8563_v49 }
 0x47a   : > { %7817 = vmatmul.mubr.msk.f32.vlgmr.msra.gmra.mxu0 %vm1035_vm2, %v2639_v56 }
 0x47b   : > { %7825 = vmatpush3.xpose.msk.msra.mxu0 %vm1035_vm2, %v2797_v57  ;;  %7826 = vmatprep.mubr.msk.f32.mxu0 %vm8564_vm1, %v8563_v49 }
 0x47c   : > { %7834 = vmatprep.subr.mxu0 %v8563_v49 }
 0x47e   : > { %7827 = vmatmul.mubr.msk.f32.vlgmr.msra.gmra.mxu0 %vm1035_vm2, %v2795_v39 }
 0x47f   : > { %7836 = vmatprep.mubr.msk.f32.mxu0 %vm8564_vm1, %v8563_v49 }
 0x496   : > { %v1719_v3 = vpop.xlane.xlu1 %1718 }
 0x497   : > { %8255 = vrcp.f32 %v1719_v3 }
 0x49a   : > { %v1725_v4 = vpop.xlane.xlu1 %1724 }
 0x49b   : > { %8257 = vrcp.f32 %v1725_v4 }
 0x4a4   : > { %v8256_v5 = vpop.eup %8255 }
 0x4a5   : > { %v1739_v6 = vmul.f32 %v8256_v5, %v9086_v31  ;;  %v2717_v31 = vpop.permute.xlu1 %2716 }
 0x4a7   : > { %7782 = vmatmul.mubr.msk.f32.vlgmr.msra.gmra.mxu1 %vm1035_vm2, %v1739_v6 }
 0x4a8   : > { %v8258_v33 = vpop.eup %8257  ;;  %7790 = vmatpush3.msra.mxu1 %v9003_v41  ;;  %7791 = vmatprep.mubr.msk.f32.mxu1 %vm8564_vm1, %v8563_v49 }
 0x4a9   : > { %7799 = vmatprep.subr.mxu1 %v8563_v49  ;;  %v1741_v0 = vmul.f32 %v8258_v33, %v9090_v34 }
 0x4ab   : > { %7792 = vmatmul.mubr.msk.f32.vlgmr.msra.gmra.mxu1 %vm1035_vm2, %v1741_v0 }
 0x4ac   : > { %7800 = vmatpush3.xpose.msk.msra.mxu1 %vm1035_vm2, %v9069_v48  ;;  %7801 = vmatprep.mubr.msk.f32.mxu1 %vm8564_vm1, %v8563_v49  ;;  %v2875_v48 = vpop.permute.xlu1 %2874 }
 0x4ad   : > { %7809 = vmatprep.subr.mxu1 %v8563_v49 }
 0x4af   : > { %7802 = vmatmul.mubr.msk.f32.vlgmr.msra.gmra.mxu1 %vm1035_vm2, %v9079_v62 }
 0x4b0   : > { %7810 = vmatpush3.xpose.msk.msra.mxu1 %vm1035_vm2, %v9100_v42  ;;  %7811 = vmatprep.mubr.msk.f32.mxu1 %vm8564_vm1, %v8563_v49  ;;  %v2873_v62 = vpop.permute.xlu1 %2872 }
 0x4b1   : > { %7819 = vmatprep.subr.mxu1 %v8563_v49 }
 0x4b3   : > { %7812 = vmatmul.mubr.msk.f32.vlgmr.msra.gmra.mxu1 %vm1035_vm2, %v2561_v61 }
 0x4b4   : > { %7820 = vmatpush3.xpose.msk.msra.mxu1 %vm1035_vm2, %v2719_v1  ;;  %7821 = vmatprep.mubr.msk.f32.mxu1 %vm8564_vm1, %v8563_v49 }
 0x4b5   : > { %7829 = vmatprep.subr.mxu1 %v8563_v49 }
 0x4b7   : > { %7822 = vmatmul.mubr.msk.f32.vlgmr.msra.gmra.mxu1 %vm1035_vm2, %v2717_v31 }
 0x4b8   : > { %7830 = vmatpush3.xpose.msk.msra.mxu1 %vm1035_vm2, %v2875_v48  ;;  %7831 = vmatprep.mubr.msk.f32.mxu1 %vm8564_vm1, %v8563_v49 }
 0x4b9   : > { %7839 = vmatprep.subr.mxu1 %v8563_v49 }
 0x4bb   : > { %7832 = vmatmul.mubr.msk.f32.vlgmr.msra.gmra.mxu1 %vm1035_vm2, %v2873_v62 }
 0x4bc   : > { %7841 = vmatprep.mubr.msk.f32.mxu1 %vm8564_vm1, %v8563_v49 }
 0x51e   : > { %v9189_v34 = vpop.f32.mrf.mxu0 }
 0x520   : > { %v7758_v2 = vpop.f32.mrf.mxu0 }
 0x522   : > { %v9191_v37 = vpop.f32.mrf.mxu1 }
 0x524   : > { %v7763_v42 = vpop.f32.mrf.mxu1 }
 0x526   : > { %v9193_v20 = vpop.f32.mrf.mxu0 }
 0x528   : > { %v7768_v43 = vpop.f32.mrf.mxu0 }
 0x52a   : > { %v9195_v46 = vpop.f32.mrf.mxu0 }
 0x52b   : > { %v9197_v47 = vpop.f32.mrf.mxu1 }
 0x52c   : > { %v7778_v28 = vpop.f32.mrf.mxu0 }
 0x52d   : > { %v7773_v21 = vpop.f32.mrf.mxu1 }
 0x52e   : > { %v9199_v51 = vpop.f32.mrf.mxu0 }
 0x530   : > { %v7788_v52 = vpop.f32.mrf.mxu0 }
 0x532   : > { %v2400_v53 = vpop.f32.mrf.mxu0 }
 0x533   : > { %v2950_v29 = vsel %vm8997_vm3, %v2400_v53, -inf }
 0x534   : > { %v7798_v44 = vpop.f32.mrf.mxu0  ;;  %v2958_v40 = vsel %vm1035_vm2, %v2950_v29, -inf }
 0x535   : > { %2959 = vmax.xlane.f32.xlu0 %v2958_v40 }
 0x536   : > { %v2556_v50 = vpop.f32.mrf.mxu0 }
 0x537   : > { %v2952_v55 = vsel %vm8997_vm3, %v2556_v50, -inf }
 0x538   : > { %v7808_v38 = vpop.f32.mrf.mxu0  ;;  %v2964_v58 = vsel %vm1035_vm2, %v2952_v55, -inf }
 0x539   : > { %2965 = vmax.xlane.f32.xlu0 %v2964_v58 }
 0x53a   : > { %v2712_v59 = vpop.f32.mrf.mxu0 }
 0x53b   : > { %v2954_v48 = vsel %vm8997_vm3, %v2712_v59, -inf }
 0x53c   : > { %v7818_v54 = vpop.f32.mrf.mxu0  ;;  %v2970_v28 = vsel %vm1035_vm2, %v2954_v48, -inf }
 0x53e   : > { %v2868_v60 = vpop.f32.mrf.mxu0 }
 0x53f   : > { %v2956_v21 = vsel %vm8997_vm3, %v2868_v60, -inf }
 0x540   : > { %v7828_v63 = vpop.f32.mrf.mxu0  ;;  %v2976_v44 = vsel %vm1035_vm2, %v2956_v21, -inf }
 0x567   : > { %v9207_v56 = vpop.f32.mrf.mxu1 }
 0x569   : > { %v7783_v57 = vpop.f32.mrf.mxu1 }
 0x56b   : > { %v9209_v39 = vpop.f32.mrf.mxu1 }
 0x56d   : > { %v7793_v61 = vpop.f32.mrf.mxu1 }
 0x56f   : > { %v2478_v1 = vpop.f32.mrf.mxu1 }
 0x570   : > { %v2951_v3 = vsel %vm8997_vm3, %v2478_v1, -inf }
 0x571   : > { %v7803_v4 = vpop.f32.mrf.mxu1  ;;  %v2961_v5 = vsel %vm1035_vm2, %v2951_v3, -inf }
 0x572   : > { %2962 = vmax.xlane.f32.xlu1 %v2961_v5 }
 0x573   : > { %v2634_v6 = vpop.f32.mrf.mxu1 }
 0x574   : > { %v2953_v33 = vsel %vm8997_vm3, %v2634_v6, -inf }
 0x575   : > { %v7813_v0 = vpop.f32.mrf.mxu1  ;;  %v2967_v31 = vsel %vm1035_vm2, %v2953_v33, -inf }
 0x576   : > { %2968 = vmax.xlane.f32.xlu0 %v2967_v31 }
 0x577   : > { %v2790_v62 = vpop.f32.mrf.mxu1 }
 0x578   : > { %v2955_v2 = vsel %vm8997_vm3, %v2790_v62, -inf }
 0x579   : > { %v7823_v42 = vpop.f32.mrf.mxu1  ;;  %v2973_v43 = vsel %vm1035_vm2, %v2955_v2, -inf }
 0x57a   : > { %2974 = vmax.xlane.f32.xlu1 %v2973_v43  ;;  %2971 = vmax.xlane.f32.xlu0 %v2970_v28 }
 0x57b   : > { %v2946_v52 = vpop.f32.mrf.mxu1 }
 0x57c   : > { %v9254_v59 = vsel %vm8997_vm3, %v2946_v52, -inf }
 0x57d   : > { %v7833_v53 = vpop.f32.mrf.mxu1  ;;  %v2979_v63 = vsel %vm1035_vm2, %v9254_v59, -inf }
 0x57e   : > { %2977 = vmax.xlane.f32.xlu0 %v2976_v44 }
 0x58b   : > { %3124 = vrot.lane.b32.xlu1 %v8935_v18, %s8565_s24 }
 0x58f   : > { %3201 = vrot.lane.b32.xlu1 %v8991_v30, %s8565_s24 }
 0x593   : > { %3278 = vrot.lane.b32.xlu1 %v8989_v27, %s8565_s24 }
 0x594   : > { %3047 = vrot.lane.b32.xlu0 %v8957_v24, %s8565_s24 }
 0x597   : > { %3432 = vrot.lane.b32.xlu1 %v8993_v32, %s8565_s24 }
 0x598   : > { %3355 = vrot.lane.b32.xlu0 %v8995_v35, %s8565_s24 }
 0x59b   : > { %3586 = vrot.lane.b32.xlu1 %v9003_v41, %s8565_s24 }
 0x59c   : > { %3509 = vrot.lane.b32.xlu0 %v9008_v45, %s8565_s24  ;;  %s8571_s24 = smov 64  }
 0x59f   : > { %3742 = vrot.lane.b32.xlu1 %v8893_v7, %s8566_s27 }
 0x5a0   : > { %3664 = vrot.lane.b32.xlu0 %v8895_v8, %s8566_s27 }
 0x5a3   : > { %3740 = vrot.lane.b32.xlu1 %v8912_v12, %s8566_s27 }
 0x5a4   : > { %3662 = vrot.lane.b32.xlu0 %v8899_v9, %s8566_s27 }
 0x5a8   : > { %3820 = vrot.lane.b32.xlu0 %v8904_v11, %s8566_s27 }
 0x5be   : > { %v2960_v40 = vpop.xlane.xlu0 %2959 }
 0x5bf   : > { %v2982_v50 = vsub.f32 %v2950_v29, %v2960_v40 }
 0x5c1   : > { %v2990_v38 = vmul.f32 1.442695, %v2982_v50 }
 0x5c2   : > { %v2966_v58 = vpop.xlane.xlu0 %2965 }
 0x5c3   : > { %8259 = vpow2.f32 %v2990_v38  ;;  %v2984_v54 = vsub.f32 %v2952_v55, %v2966_v58 }
 0x5c5   : > { %v2994_v60 = vmul.f32 1.442695, %v2984_v54 }
 0x5c7   : > { %8261 = vpow2.f32 %v2994_v60  ;;  %2980 = vmax.xlane.f32.xlu1 %v2979_v63 }
 0x5d0   : > { %v9258_v57 = vpop.eup %8259 }
 0x5d1   : > { %v3006_v61 = vsel %vm1035_vm2, %v9258_v57, 0.0 }
 0x5d2   : > { %3007 = vadd.xlane.f32.xlu0 %v3006_v61 }
 0x5d4   : > { %v9262_v29 = vpop.eup %8261 }
 0x5d5   : > { %v3012_v1 = vsel %vm1035_vm2, %v9262_v29, 0.0 }
 0x5d6   : > { %3013 = vadd.xlane.f32.xlu0 %v3012_v1 }
 0x5d8   : > { %3898 = vrot.lane.b32.xlu1 %v8901_v10, %s8566_s27 }
 0x5fb   : > { %v2963_v55 = vpop.xlane.xlu1 %2962 }
 0x5fc   : > { %v2983_v4 = vsub.f32 %v2951_v3, %v2963_v55 }
 0x5fe   : > { %v2992_v5 = vmul.f32 1.442695, %v2983_v4 }
 0x5ff   : > { %v2969_v6 = vpop.xlane.xlu0 %2968 }
 0x600   : > { %8263 = vpow2.f32 %v2992_v5  ;;  %v2985_v0 = vsub.f32 %v2953_v33, %v2969_v6 }
 0x602   : > { %v2996_v31 = vmul.f32 1.442695, %v2985_v0 }
 0x603   : > { %v2975_v62 = vpop.xlane.xlu1 %2974  ;;  %v2972_v42 = vpop.xlane.xlu0 %2971 }
 0x604   : > { %8265 = vpow2.f32 %v2996_v31  ;;  %v2987_v43 = vsub.f32 %v2955_v2, %v2975_v62  ;;  %v2986_v28 = vsub.f32 %v2954_v48, %v2972_v42 }
 0x606   : > { %v3000_v52 = vmul.f32 1.442695, %v2987_v43  ;;  %v2998_v53 = vmul.f32 1.442695, %v2986_v28 }
 0x607   : > { %v3125_v44 = vpop.permute.xlu1 %3124  ;;  %v2978_v40 = vpop.xlane.xlu0 %2977 }
 0x608   : > { %8267 = vpow2.f32 %v3000_v52  ;;  %v2988_v50 = vsub.f32 %v2956_v21, %v2978_v40  ;;  %7840 = vmatpush3.msra.mxu1 %v3125_v44 }
 0x609   : > { %8269 = vpow2.f32 %v2998_v53  ;;  %7849 = vmatprep.subr.mxu1 %v8563_v49 }
 0x60a   : > { %v3002_v3 = vmul.f32 1.442695, %v2988_v50 }
 0x60b   : > { %v3048_v38 = vpop.permute.xlu0 %3047  ;;  %v3202_v55 = vpop.permute.xlu1 %3201 }
 0x60c   : > { %8271 = vpow2.f32 %v3002_v3  ;;  %7835 = vmatpush3.msra.mxu0 %v3048_v38 }
 0x60d   : > { %v9269_v33 = vpop.eup %8263  ;;  %7844 = vmatprep.subr.mxu0 %v8563_v49 }
 0x60e   : > { %v3009_v48 = vsel %vm1035_vm2, %v9269_v33, 0.0 }
 0x60f   : > { %3010 = vadd.xlane.f32.xlu1 %v3009_v48  ;;  %v3279_v4 = vpop.permute.xlu1 %3278  ;;  %v3356_v6 = vpop.permute.xlu0 %3355 }
 0x611   : > { %v9274_v2 = vpop.eup %8265 }
 0x612   : > { %v3015_v21 = vsel %vm1035_vm2, %v9274_v2, 0.0 }
 0x613   : > { %3016 = vadd.xlane.f32.xlu1 %v3015_v21  ;;  %v3433_v5 = vpop.permute.xlu1 %3432  ;;  %v9306_v31 = vpop.permute.xlu0 %3509 }
 0x615   : > { %v9278_v58 = vpop.eup %8267 }
 0x616   : > { %v9280_v54 = vpop.eup %8269  ;;  %v3021_v60 = vsel %vm1035_vm2, %v9278_v58, 0.0 }
 0x617   : > { %3022 = vadd.xlane.f32.xlu1 %v3021_v60  ;;  %v3018_v63 = vsel %vm1035_vm2, %v9280_v54, 0.0  ;;  %v9302_v0 = vpop.permute.xlu1 %3586  ;;  %v9310_v42 = vpop.permute.xlu0 %3664 }
 0x618   : > { %3019 = vadd.xlane.f32.xlu0 %v3018_v63 }
 0x619   : > { %v9286_v61 = vpop.eup %8271 }
 0x61a   : > { %v3024_v1 = vsel %vm1035_vm2, %v9286_v61, 0.0 }
 0x61b   : > { %v9308_v62 = vpop.permute.xlu1 %3742  ;;  %v9314_v52 = vpop.permute.xlu0 %3662 }
 0x61c   : > { %3025 = vadd.xlane.f32.xlu0 %v3024_v1 }
 0x61f   : > { %v9312_v43 = vpop.permute.xlu1 %3740  ;;  %v9317_v40 = vpop.permute.xlu0 %3820 }
 0x628   : > { %3896 = vrot.lane.b32.xlu1 %v8947_v22, %s8566_s27 }
 0x62c   : > { %4054 = vrot.lane.b32.xlu1 %v8914_v13, %s8566_s27 }
 0x632   : > { %3818 = vrot.lane.b32.xlu0 %v8925_v15, %s8566_s27 }
 0x636   : > { %3976 = vrot.lane.b32.xlu0 %v8917_v14, %s8566_s27 }
 0x63a   : > { %3974 = vrot.lane.b32.xlu0 %v8927_v16, %s8566_s27 }
 0x63e   : > { %4132 = vrot.lane.b32.xlu0 %v8937_v19, %s8566_s27 }
 0x642   : > { %4130 = vrot.lane.b32.xlu0 %v8949_v23, %s8566_s27 }
 0x650   : > { %v2981_v28 = vpop.xlane.xlu1 %2980 }
 0x651   : > { %v2989_v53 = vsub.f32 %v9254_v59, %v2981_v28 }
 0x653   : > { %v3004_v44 = vmul.f32 1.442695, %v2989_v53 }
 0x655   : > { %8273 = vpow2.f32 %v3004_v44 }
 0x65b   : > { %v3008_v50 = vpop.xlane.xlu0 %3007 }
 0x65c   : > { %8275 = vrcp.f32 %v3008_v50 }
 0x65f   : > { %v3014_v3 = vpop.xlane.xlu0 %3013 }
 0x660   : > { %8277 = vrcp.f32 %v3014_v3 }
 0x662   : > { %v9319_v38 = vpop.eup %8273 }
 0x663   : > { %v3027_v48 = vsel %vm1035_vm2, %v9319_v38, 0.0 }
 0x664   : > { %3028 = vadd.xlane.f32.xlu1 %v3027_v48 }
 0x669   : > { %v8276_v21 = vpop.eup %8275 }
 0x66a   : > { %v3038_v60 = vmul.f32 %v8276_v21, %v9258_v57  ;;  %v9339_v57 = vpop.permute.xlu1 %3898 }
 0x66c   : > { %7837 = vmatmul.mubr.msk.f32.vlgmr.msra.gmra.mxu0 %vm1035_vm2, %v3038_v60 }
 0x66d   : > { %v8278_v59 = vpop.eup %8277  ;;  %7845 = vmatpush3.msra.mxu0 %v3202_v55  ;;  %7846 = vmatprep.mubr.msk.f32.mxu0 %vm8564_vm1, %v8563_v49 }
 0x66e   : > { %7854 = vmatprep.subr.mxu0 %v8563_v49  ;;  %v3040_v63 = vmul.f32 %v8278_v59, %v9262_v29 }
 0x670   : > { %7847 = vmatmul.mubr.msk.f32.vlgmr.msra.gmra.mxu0 %vm1035_vm2, %v3040_v63 }
 0x671   : > { %7855 = vmatpush3.msra.mxu0 %v3356_v6  ;;  %7856 = vmatprep.mubr.msk.f32.mxu0 %vm8564_vm1, %v8563_v49 }
 0x672   : > { %7864 = vmatprep.subr.mxu0 %v8563_v49 }
 0x675   : > { %4052 = vrot.lane.b32.xlu1 %v8966_v25, %s8566_s27 }
 0x679   : > { %4210 = vrot.lane.b32.xlu1 %v8929_v17, %s8566_s27 }
 0x67d   : > { %4208 = vrot.lane.b32.xlu1 %v8980_v26, %s8566_s27 }
 0x698   : > { %v3011_v29 = vpop.xlane.xlu1 %3010 }
 0x699   : > { %8279 = vrcp.f32 %v3011_v29 }
 0x69c   : > { %v3017_v1 = vpop.xlane.xlu1 %3016 }
 0x69d   : > { %8281 = vrcp.f32 %v3017_v1 }
 0x6a0   : > { %v3023_v55 = vpop.xlane.xlu1 %3022 }
 0x6a1   : > { %8283 = vrcp.f32 %v3023_v55  ;;  %v3020_v6 = vpop.xlane.xlu0 %3019 }
 0x6a2   : > { %8285 = vrcp.f32 %v3020_v6 }
 0x6a5   : > { %v3026_v28 = vpop.xlane.xlu0 %3025 }
 0x6a6   : > { %v8280_v53 = vpop.eup %8279  ;;  %8287 = vrcp.f32 %v3026_v28 }
 0x6a7   : > { %v3039_v44 = vmul.f32 %v8280_v53, %v9269_v33 }
 0x6a9   : > { %7842 = vmatmul.mubr.msk.f32.vlgmr.msra.gmra.mxu1 %vm1035_vm2, %v3039_v44  ;;  %v3819_v48 = vpop.permute.xlu0 %3818 }
 0x6aa   : > { %v8282_v50 = vpop.eup %8281  ;;  %7850 = vmatpush3.msra.mxu1 %v3279_v4  ;;  %7851 = vmatprep.mubr.msk.f32.mxu1 %vm8564_vm1, %v8563_v49 }
 0x6ab   : > { %7859 = vmatprep.subr.mxu1 %v8563_v49  ;;  %v3041_v3 = vmul.f32 %v8282_v50, %v9274_v2 }
 0x6ad   : > { %7852 = vmatmul.mubr.msk.f32.vlgmr.msra.gmra.mxu1 %vm1035_vm2, %v3041_v3  ;;  %v3977_v59 = vpop.permute.xlu0 %3976 }
 0x6ae   : > { %v8284_v21 = vpop.eup %8283  ;;  %7860 = vmatpush3.msra.mxu1 %v3433_v5  ;;  %7861 = vmatprep.mubr.msk.f32.mxu1 %vm8564_vm1, %v8563_v49 }
 0x6af   : > { %v8286_v33 = vpop.eup %8285  ;;  %7869 = vmatprep.subr.mxu1 %v8563_v49  ;;  %v3043_v4 = vmul.f32 %v8284_v21, %v9278_v58 }
 0x6b0   : > { %v3042_v60 = vmul.f32 %v8286_v33, %v9280_v54 }
 0x6b1   : > { %7862 = vmatmul.mubr.msk.f32.vlgmr.msra.gmra.mxu1 %vm1035_vm2, %v3043_v4  ;;  %v3975_v58 = vpop.permute.xlu0 %3974 }
 0x6b2   : > { %7857 = vmatmul.mubr.msk.f32.vlgmr.msra.gmra.mxu0 %vm1035_vm2, %v3042_v60  ;;  %7870 = vmatpush3.msra.mxu1 %v9302_v0  ;;  %v3897_v0 = vpop.permute.xlu1 %3896 }
 0x6b3   : > { %v8288_v2 = vpop.eup %8287  ;;  %7865 = vmatpush3.msra.mxu0 %v9306_v31  ;;  %7866 = vmatprep.mubr.msk.f32.mxu0 %vm8564_vm1, %v8563_v49 }
 0x6b4   : > { %7874 = vmatprep.subr.mxu0 %v8563_v49  ;;  %v3044_v5 = vmul.f32 %v8288_v2, %v9286_v61  ;;  %7871 = vmatprep.mubr.msk.f32.mxu1 %vm8564_vm1, %v8563_v49 }
 0x6b5   : > { %7879 = vmatprep.subr.mxu1 %v8563_v49  ;;  %v4133_v54 = vpop.permute.xlu0 %4132 }
 0x6b6   : > { %7867 = vmatmul.mubr.msk.f32.vlgmr.msra.gmra.mxu0 %vm1035_vm2, %v3044_v5  ;;  %v4055_v31 = vpop.permute.xlu1 %4054 }
 0x6b7   : > { %7875 = vmatpush3.xpose.msk.msra.mxu0 %vm1035_vm2, %v9310_v42  ;;  %7876 = vmatprep.mubr.msk.f32.mxu0 %vm8564_vm1, %v8563_v49 }
 0x6b8   : > { %7884 = vmatprep.subr.mxu0 %v8563_v49 }
 0x6b9   : > { %v4131_v61 = vpop.permute.xlu0 %4130 }
 0x6ba   : > { %7877 = vmatmul.mubr.msk.f32.vlgmr.msra.gmra.mxu0 %vm1035_vm2, %v9314_v52 }
 0x6bb   : > { %7885 = vmatpush3.xpose.msk.msra.mxu0 %vm1035_vm2, %v9317_v40  ;;  %7886 = vmatprep.mubr.msk.f32.mxu0 %vm8564_vm1, %v8563_v49 }
 0x6bc   : > { %7894 = vmatprep.subr.mxu0 %v8563_v49 }
 0x6be   : > { %7887 = vmatmul.mubr.msk.f32.vlgmr.msra.gmra.mxu0 %vm1035_vm2, %v3819_v48 }
 0x6bf   : > { %7895 = vmatpush3.xpose.msk.msra.mxu0 %vm1035_vm2, %v3977_v59  ;;  %7896 = vmatprep.mubr.msk.f32.mxu0 %vm8564_vm1, %v8563_v49 }
 0x6c0   : > { %7904 = vmatprep.subr.mxu0 %v8563_v49 }
 0x6c2   : > { %7897 = vmatmul.mubr.msk.f32.vlgmr.msra.gmra.mxu0 %vm1035_vm2, %v3975_v58 }
 0x6c3   : > { %7905 = vmatpush3.xpose.msk.msra.mxu0 %vm1035_vm2, %v4133_v54  ;;  %7906 = vmatprep.mubr.msk.f32.mxu0 %vm8564_vm1, %v8563_v49 }
 0x6c4   : > { %7914 = vmatprep.subr.mxu0 %v8563_v49 }
 0x6c6   : > { %7907 = vmatmul.mubr.msk.f32.vlgmr.msra.gmra.mxu0 %vm1035_vm2, %v4131_v61 }
 0x6c7   : > { %7916 = vmatprep.mubr.msk.f32.mxu0 %vm8564_vm1, %v8563_v49 }
 0x6ed   : > { %v3029_v42 = vpop.xlane.xlu1 %3028 }
 0x6ee   : > { %8289 = vrcp.f32 %v3029_v42 }
 0x6f1   : > { %v4053_v63 = vpop.permute.xlu1 %4052 }
 0x6fb   : > { %v8290_v52 = vpop.eup %8289 }
 0x6fc   : > { %v3045_v40 = vmul.f32 %v8290_v52, %v9319_v38 }
 0x6fe   : > { %7872 = vmatmul.mubr.msk.f32.vlgmr.msra.gmra.mxu1 %vm1035_vm2, %v3045_v40 }
 0x6ff   : > { %7880 = vmatpush3.xpose.msk.msra.mxu1 %vm1035_vm2, %v9308_v62  ;;  %7881 = vmatprep.mubr.msk.f32.mxu1 %vm8564_vm1, %v8563_v49  ;;  %v4211_v62 = vpop.permute.xlu1 %4210 }
 0x700   : > { %7889 = vmatprep.subr.mxu1 %v8563_v49 }
 0x702   : > { %7882 = vmatmul.mubr.msk.f32.vlgmr.msra.gmra.mxu1 %vm1035_vm2, %v9312_v43 }
 0x703   : > { %7890 = vmatpush3.xpose.msk.msra.mxu1 %vm1035_vm2, %v9339_v57  ;;  %7891 = vmatprep.mubr.msk.f32.mxu1 %vm8564_vm1, %v8563_v49  ;;  %v4209_v43 = vpop.permute.xlu1 %4208 }
 0x704   : > { %7899 = vmatprep.subr.mxu1 %v8563_v49 }
 0x706   : > { %7892 = vmatmul.mubr.msk.f32.vlgmr.msra.gmra.mxu1 %vm1035_vm2, %v3897_v0 }
 0x707   : > { %7900 = vmatpush3.xpose.msk.msra.mxu1 %vm1035_vm2, %v4055_v31  ;;  %7901 = vmatprep.mubr.msk.f32.mxu1 %vm8564_vm1, %v8563_v49 }
 0x708   : > { %7909 = vmatprep.subr.mxu1 %v8563_v49 }
 0x70a   : > { %7902 = vmatmul.mubr.msk.f32.vlgmr.msra.gmra.mxu1 %vm1035_vm2, %v4053_v63 }
 0x70b   : > { %7910 = vmatpush3.xpose.msk.msra.mxu1 %vm1035_vm2, %v4211_v62  ;;  %7911 = vmatprep.mubr.msk.f32.mxu1 %vm8564_vm1, %v8563_v49 }
 0x70c   : > { %7919 = vmatprep.subr.mxu1 %v8563_v49 }
 0x70e   : > { %7912 = vmatmul.mubr.msk.f32.vlgmr.msra.gmra.mxu1 %vm1035_vm2, %v4209_v43 }
 0x70f   : > { %7921 = vmatprep.mubr.msk.f32.mxu1 %vm8564_vm1, %v8563_v49 }
 0x72c   : > { %v9417_v38 = vpop.f32.mrf.mxu0 }
 0x72e   : > { %v7838_v57 = vpop.f32.mrf.mxu0 }
 0x730   : > { %v9419_v29 = vpop.f32.mrf.mxu0 }
 0x732   : > { %v7848_v1 = vpop.f32.mrf.mxu0 }
 0x769   : > { %v9421_v55 = vpop.f32.mrf.mxu1 }
 0x76b   : > { %v7843_v6 = vpop.f32.mrf.mxu1 }
 0x76d   : > { %v9423_v28 = vpop.f32.mrf.mxu1 }
 0x76f   : > { %v7853_v53 = vpop.f32.mrf.mxu1 }
 0x771   : > { %v9425_v44 = vpop.f32.mrf.mxu1 }
 0x772   : > { %v9427_v50 = vpop.f32.mrf.mxu0 }
 0x773   : > { %v7863_v3 = vpop.f32.mrf.mxu1 }
 0x774   : > { %v7858_v48 = vpop.f32.mrf.mxu0 }
 0x776   : > { %v9429_v21 = vpop.f32.mrf.mxu0 }
 0x778   : > { %v7868_v33 = vpop.f32.mrf.mxu0 }
 0x77a   : > { %v3736_v4 = vpop.f32.mrf.mxu0 }
 0x77b   : > { %v4286_v60 = vsel %vm8997_vm3, %v3736_v4, -inf }
 0x77c   : > { %v7878_v2 = vpop.f32.mrf.mxu0  ;;  %v4294_v59 = vsel %vm1035_vm2, %v4286_v60, -inf }
 0x77d   : > { %4295 = vmax.xlane.f32.xlu0 %v4294_v59 }
 0x77e   : > { %v3892_v5 = vpop.f32.mrf.mxu0 }
 0x77f   : > { %v4288_v58 = vsel %vm8997_vm3, %v3892_v5, -inf }
 0x780   : > { %v7888_v54 = vpop.f32.mrf.mxu0  ;;  %v4300_v61 = vsel %vm1035_vm2, %v4288_v58, -inf }
 0x781   : > { %4301 = vmax.xlane.f32.xlu0 %v4300_v61 }
 0x782   : > { %v4048_v0 = vpop.f32.mrf.mxu0 }
 0x783   : > { %v4290_v33 = vsel %vm8997_vm3, %v4048_v0, -inf }
 0x784   : > { %v7898_v31 = vpop.f32.mrf.mxu0  ;;  %v4306_v54 = vsel %vm1035_vm2, %v4290_v33, -inf }
 0x786   : > { %v4204_v42 = vpop.f32.mrf.mxu0 }
 0x787   : > { %v4292_v61 = vsel %vm8997_vm3, %v4204_v42, -inf }
 0x788   : > { %v7908_v52 = vpop.f32.mrf.mxu0 }
 0x7be   : > { %v9437_v40 = vpop.f32.mrf.mxu1 }
 0x7c0   : > { %v7873_v63 = vpop.f32.mrf.mxu1 }
 0x7c1   : > { %v4312_v63 = vsel %vm1035_vm2, %v4292_v61, -inf }
 0x7c2   : > { %v3814_v62 = vpop.f32.mrf.mxu1 }
 0x7c3   : > { %v4287_v43 = vsel %vm8997_vm3, %v3814_v62, -inf }
 0x7c4   : > { %v7883_v57 = vpop.f32.mrf.mxu1  ;;  %v4297_v1 = vsel %vm1035_vm2, %v4287_v43, -inf }
 0x7c5   : > { %4298 = vmax.xlane.f32.xlu1 %v4297_v1 }
 0x7c6   : > { %v3970_v6 = vpop.f32.mrf.mxu1 }
 0x7c7   : > { %v4289_v53 = vsel %vm8997_vm3, %v3970_v6, -inf }
 0x7c8   : > { %v7893_v3 = vpop.f32.mrf.mxu1  ;;  %v4303_v48 = vsel %vm1035_vm2, %v4289_v53, -inf }
 0x7c9   : > { %4304 = vmax.xlane.f32.xlu0 %v4303_v48 }
 0x7ca   : > { %v4126_v4 = vpop.f32.mrf.mxu1 }
 0x7cb   : > { %v4291_v2 = vsel %vm8997_vm3, %v4126_v4, -inf }
 0x7cc   : > { %v7903_v59 = vpop.f32.mrf.mxu1  ;;  %v4309_v5 = vsel %vm1035_vm2, %v4291_v2, -inf }
 0x7cd   : > { %4310 = vmax.xlane.f32.xlu1 %v4309_v5  ;;  %4307 = vmax.xlane.f32.xlu0 %v4306_v54 }
 0x7ce   : > { %v4282_v31 = vpop.f32.mrf.mxu1 }
 0x7d0   : > { %v7913_v52 = vpop.f32.mrf.mxu1 }
 0x7d1   : > { %4313 = vmax.xlane.f32.xlu0 %v4312_v63 }
 0x7de   : > { %4458 = vrot.lane.b32.xlu1 %v8935_v18, %s8566_s27 }
 0x7e2   : > { %4534 = vrot.lane.b32.xlu1 %v8991_v30, %s8566_s27 }
 0x7e6   : > { %4610 = vrot.lane.b32.xlu1 %v8989_v27, %s8566_s27 }
 0x7e7   : > { %4382 = vrot.lane.b32.xlu0 %v8957_v24, %s8566_s27 }
 0x7ea   : > { %4762 = vrot.lane.b32.xlu1 %v8993_v32, %s8566_s27 }
 0x7eb   : > { %4686 = vrot.lane.b32.xlu0 %v8995_v35, %s8566_s27 }
 0x7ee   : > { %4914 = vrot.lane.b32.xlu1 %v9003_v41, %s8566_s27 }
 0x7ef   : > { %4838 = vrot.lane.b32.xlu0 %v9008_v45, %s8566_s27  ;;  %s8572_s27 = smov 32  }
 0x7f2   : > { %5070 = vrot.lane.b32.xlu1 %v8893_v7, %s8567_s20  ;;  %v9482_v7 = vsel %vm8997_vm3, %v4282_v31, -inf }
 0x7f3   : > { %4992 = vrot.lane.b32.xlu0 %v8895_v8, %s8567_s20 }
 0x7f6   : > { %5068 = vrot.lane.b32.xlu1 %v8912_v12, %s8567_s20 }
 0x7f7   : > { %4990 = vrot.lane.b32.xlu0 %v8899_v9, %s8567_s20  ;;  %v4315_v9 = vsel %vm1035_vm2, %v9482_v7, -inf }
 0x7fb   : > { %5148 = vrot.lane.b32.xlu0 %v8904_v11, %s8567_s20 }
 0x806   : > { %v4296_v0 = vpop.xlane.xlu0 %4295 }
 0x807   : > { %v4318_v42 = vsub.f32 %v4286_v60, %v4296_v0 }
 0x809   : > { %v4326_v62 = vmul.f32 1.442695, %v4318_v42 }
 0x80a   : > { %v4302_v57 = vpop.xlane.xlu0 %4301 }
 0x80b   : > { %8291 = vpow2.f32 %v4326_v62  ;;  %v4320_v1 = vsub.f32 %v4288_v58, %v4302_v57 }
 0x80d   : > { %v4330_v6 = vmul.f32 1.442695, %v4320_v1 }
 0x80f   : > { %8293 = vpow2.f32 %v4330_v6 }
 0x818   : > { %v9484_v8 = vpop.eup %8291 }
 0x819   : > { %v4342_v11 = vsel %vm1035_vm2, %v9484_v8, 0.0 }
 0x81a   : > { %4316 = vmax.xlane.f32.xlu1 %v4315_v9  ;;  %4343 = vadd.xlane.f32.xlu0 %v4342_v11 }
 0x81c   : > { %v9490_v12 = vpop.eup %8293 }
 0x81d   : > { %v4348_v60 = vsel %vm1035_vm2, %v9490_v12, 0.0 }
 0x81e   : > { %4349 = vadd.xlane.f32.xlu0 %v4348_v60 }
 0x82b   : > { %5226 = vrot.lane.b32.xlu1 %v8901_v10, %s8567_s20 }
 0x84e   : > { %v4299_v58 = vpop.xlane.xlu1 %4298 }
 0x84f   : > { %v4319_v3 = vsub.f32 %v4287_v43, %v4299_v58 }
 0x851   : > { %v4328_v48 = vmul.f32 1.442695, %v4319_v3 }
 0x852   : > { %v4305_v4 = vpop.xlane.xlu0 %4304 }
 0x853   : > { %8295 = vpow2.f32 %v4328_v48  ;;  %v4321_v59 = vsub.f32 %v4289_v53, %v4305_v4 }
 0x855   : > { %v4332_v5 = vmul.f32 1.442695, %v4321_v59 }
 0x856   : > { %v4311_v54 = vpop.xlane.xlu1 %4310  ;;  %v4308_v31 = vpop.xlane.xlu0 %4307 }
 0x857   : > { %8297 = vpow2.f32 %v4332_v5  ;;  %v4323_v52 = vsub.f32 %v4291_v2, %v4311_v54  ;;  %v4322_v63 = vsub.f32 %v4290_v33, %v4308_v31 }
 0x859   : > { %v4336_v0 = vmul.f32 1.442695, %v4323_v52  ;;  %v4334_v42 = vmul.f32 1.442695, %v4322_v63 }
 0x85a   : > { %v4459_v62 = vpop.permute.xlu1 %4458  ;;  %v4314_v57 = vpop.xlane.xlu0 %4313 }
 0x85b   : > { %8299 = vpow2.f32 %v4336_v0  ;;  %v4324_v1 = vsub.f32 %v4292_v61, %v4314_v57  ;;  %7920 = vmatpush3.msra.mxu1 %v4459_v62 }
 0x85c   : > { %8301 = vpow2.f32 %v4334_v42  ;;  %7929 = vmatprep.subr.mxu1 %v8563_v49 }
 0x85d   : > { %v4338_v10 = vmul.f32 1.442695, %v4324_v1 }
 0x85e   : > { %v4383_v43 = vpop.permute.xlu0 %4382  ;;  %v4535_v48 = vpop.permute.xlu1 %4534 }
 0x85f   : > { %8303 = vpow2.f32 %v4338_v10  ;;  %7915 = vmatpush3.msra.mxu0 %v4383_v43 }
 0x860   : > { %v9497_v53 = vpop.eup %8295  ;;  %7924 = vmatprep.subr.mxu0 %v8563_v49 }
 0x861   : > { %v4345_v33 = vsel %vm1035_vm2, %v9497_v53, 0.0 }
 0x862   : > { %4346 = vadd.xlane.f32.xlu1 %v4345_v33  ;;  %v4611_v4 = vpop.permute.xlu1 %4610  ;;  %v4687_v59 = vpop.permute.xlu0 %4686 }
 0x864   : > { %v9502_v2 = vpop.eup %8297 }
 0x865   : > { %v4351_v61 = vsel %vm1035_vm2, %v9502_v2, 0.0 }
 0x866   : > { %4352 = vadd.xlane.f32.xlu1 %v4351_v61  ;;  %v4763_v5 = vpop.permute.xlu1 %4762  ;;  %v9526_v54 = vpop.permute.xlu0 %4838 }
 0x868   : > { %v9506_v6 = vpop.eup %8299 }
 0x869   : > { %v9508_v9 = vpop.eup %8301  ;;  %v4357_v11 = vsel %vm1035_vm2, %v9506_v6, 0.0 }
 0x86a   : > { %4358 = vadd.xlane.f32.xlu1 %v4357_v11  ;;  %v4354_v60 = vsel %vm1035_vm2, %v9508_v9, 0.0 }
 0x86b   : > { %4355 = vadd.xlane.f32.xlu0 %v4354_v60 }
 0x86c   : > { %v9514_v58 = vpop.eup %8303 }
 0x86d   : > { %v4360_v3 = vsel %vm1035_vm2, %v9514_v58, 0.0 }
 0x86f   : > { %4361 = vadd.xlane.f32.xlu0 %v4360_v3 }
 0x87b   : > { %5224 = vrot.lane.b32.xlu1 %v8947_v22, %s8567_s20  ;;  %v9532_v22 = vpop.permute.xlu1 %4914 }
 0x87f   : > { %5382 = vrot.lane.b32.xlu1 %v8914_v13, %s8567_s20  ;;  %v9534_v13 = vpop.permute.xlu0 %4992 }
 0x883   : > { %v9540_v31 = vpop.permute.xlu0 %4990 }
 0x885   : > { %5146 = vrot.lane.b32.xlu0 %v8925_v15, %s8567_s20  ;;  %v9538_v15 = vpop.permute.xlu1 %5070 }
 0x887   : > { %v9544_v52 = vpop.permute.xlu0 %5148 }
 0x889   : > { %5304 = vrot.lane.b32.xlu0 %v8917_v14, %s8567_s20  ;;  %v9542_v14 = vpop.permute.xlu1 %5068 }
 0x88d   : > { %5302 = vrot.lane.b32.xlu0 %v8927_v16, %s8567_s20 }
 0x891   : > { %5460 = vrot.lane.b32.xlu0 %v8937_v19, %s8567_s20 }
 0x895   : > { %5458 = vrot.lane.b32.xlu0 %v8949_v23, %s8567_s20 }
 0x8a3   : > { %v4317_v63 = vpop.xlane.xlu1 %4316  ;;  %v4344_v16 = vpop.xlane.xlu0 %4343 }
 0x8a4   : > { %v4325_v0 = vsub.f32 %v9482_v7, %v4317_v63  ;;  %8305 = vrcp.f32 %v4344_v16 }
 0x8a6   : > { %v4340_v19 = vmul.f32 1.442695, %v4325_v0 }
 0x8a7   : > { %v4350_v42 = vpop.xlane.xlu0 %4349 }
 0x8a8   : > { %8307 = vpow2.f32 %v4340_v19 }
 0x8a9   : > { %8309 = vrcp.f32 %v4350_v42 }
 0x8b1   : > { %v8306_v62 = vpop.eup %8305 }
 0x8b2   : > { %v4374_v23 = vmul.f32 %v8306_v62, %v9484_v8  ;;  %v9567_v8 = vpop.permute.xlu1 %5226 }
 0x8b4   : > { %7917 = vmatmul.mubr.msk.f32.vlgmr.msra.gmra.mxu0 %vm1035_vm2, %v4374_v23 }
 0x8b5   : > { %v9549_v57 = vpop.eup %8307  ;;  %7925 = vmatpush3.msra.mxu0 %v4535_v48  ;;  %7926 = vmatprep.mubr.msk.f32.mxu0 %vm8564_vm1, %v8563_v49 }
 0x8b6   : > { %v8310_v1 = vpop.eup %8309  ;;  %v4363_v7 = vsel %vm1035_vm2, %v9549_v57, 0.0  ;;  %7934 = vmatprep.subr.mxu0 %v8563_v49 }
 0x8b7   : > { %4364 = vadd.xlane.f32.xlu1 %v4363_v7  ;;  %v4376_v10 = vmul.f32 %v8310_v1, %v9490_v12 }
 0x8b9   : > { %7927 = vmatmul.mubr.msk.f32.vlgmr.msra.gmra.mxu0 %vm1035_vm2, %v4376_v10 }
 0x8ba   : > { %7935 = vmatpush3.msra.mxu0 %v4687_v59  ;;  %7936 = vmatprep.mubr.msk.f32.mxu0 %vm8564_vm1, %v8563_v49 }
 0x8bb   : > { %7944 = vmatprep.subr.mxu0 %v8563_v49 }
 0x8c8   : > { %5380 = vrot.lane.b32.xlu1 %v8966_v25, %s8567_s20 }
 0x8cc   : > { %5538 = vrot.lane.b32.xlu1 %v8929_v17, %s8567_s20 }
 0x8d0   : > { %5536 = vrot.lane.b32.xlu1 %v8980_v26, %s8567_s20 }
 0x8eb   : > { %v4347_v12 = vpop.xlane.xlu1 %4346 }
 0x8ec   : > { %8311 = vrcp.f32 %v4347_v12 }
 0x8ef   : > { %v4353_v43 = vpop.xlane.xlu1 %4352 }
 0x8f0   : > { %8313 = vrcp.f32 %v4353_v43 }
 0x8f3   : > { %v4359_v33 = vpop.xlane.xlu1 %4358 }
 0x8f4   : > { %8315 = vrcp.f32 %v4359_v33  ;;  %v4356_v61 = vpop.xlane.xlu0 %4355 }
 0x8f5   : > { %8317 = vrcp.f32 %v4356_v61 }
 0x8f8   : > { %v4362_v11 = vpop.xlane.xlu0 %4361 }
 0x8f9   : > { %v8312_v60 = vpop.eup %8311  ;;  %8319 = vrcp.f32 %v4362_v11 }
 0x8fa   : > { %v4375_v25 = vmul.f32 %v8312_v60, %v9497_v53 }
 0x8fc   : > { %7922 = vmatmul.mubr.msk.f32.vlgmr.msra.gmra.mxu1 %vm1035_vm2, %v4375_v25  ;;  %v5147_v3 = vpop.permute.xlu0 %5146 }
 0x8fd   : > { %v8314_v17 = vpop.eup %8313  ;;  %7930 = vmatpush3.msra.mxu1 %v4611_v4  ;;  %7931 = vmatprep.mubr.msk.f32.mxu1 %vm8564_vm1, %v8563_v49 }
 0x8fe   : > { %7939 = vmatprep.subr.mxu1 %v8563_v49  ;;  %v4377_v26 = vmul.f32 %v8314_v17, %v9502_v2 }
 0x900   : > { %7932 = vmatmul.mubr.msk.f32.vlgmr.msra.gmra.mxu1 %vm1035_vm2, %v4377_v26  ;;  %v5305_v63 = vpop.permute.xlu0 %5304 }
 0x901   : > { %v8316_v48 = vpop.eup %8315  ;;  %7940 = vmatpush3.msra.mxu1 %v4763_v5  ;;  %7941 = vmatprep.mubr.msk.f32.mxu1 %vm8564_vm1, %v8563_v49 }
 0x902   : > { %v8318_v53 = vpop.eup %8317  ;;  %7949 = vmatprep.subr.mxu1 %v8563_v49  ;;  %v4379_v4 = vmul.f32 %v8316_v48, %v9506_v6 }
 0x903   : > { %v4378_v59 = vmul.f32 %v8318_v53, %v9508_v9 }
 0x904   : > { %7942 = vmatmul.mubr.msk.f32.vlgmr.msra.gmra.mxu1 %vm1035_vm2, %v4379_v4  ;;  %v5303_v6 = vpop.permute.xlu0 %5302 }
 0x905   : > { %7937 = vmatmul.mubr.msk.f32.vlgmr.msra.gmra.mxu0 %vm1035_vm2, %v4378_v59  ;;  %7950 = vmatpush3.msra.mxu1 %v9532_v22 }
 0x906   : > { %v8320_v2 = vpop.eup %8319  ;;  %7945 = vmatpush3.msra.mxu0 %v9526_v54  ;;  %7946 = vmatprep.mubr.msk.f32.mxu0 %vm8564_vm1, %v8563_v49  ;;  %v5225_v54 = vpop.permute.xlu1 %5224 }
 0x907   : > { %7954 = vmatprep.subr.mxu0 %v8563_v49  ;;  %v4380_v5 = vmul.f32 %v8320_v2, %v9514_v58  ;;  %7951 = vmatprep.mubr.msk.f32.mxu1 %vm8564_vm1, %v8563_v49 }
 0x908   : > { %7959 = vmatprep.subr.mxu1 %v8563_v49  ;;  %v5461_v9 = vpop.permute.xlu0 %5460 }
 0x909   : > { %7947 = vmatmul.mubr.msk.f32.vlgmr.msra.gmra.mxu0 %vm1035_vm2, %v4380_v5 }
 0x90a   : > { %7955 = vmatpush3.xpose.msk.msra.mxu0 %vm1035_vm2, %v9534_v13  ;;  %7956 = vmatprep.mubr.msk.f32.mxu0 %vm8564_vm1, %v8563_v49  ;;  %v5383_v22 = vpop.permute.xlu1 %5382 }
 0x90b   : > { %7964 = vmatprep.subr.mxu0 %v8563_v49 }
 0x90c   : > { %v5459_v58 = vpop.permute.xlu0 %5458 }
 0x90d   : > { %7957 = vmatmul.mubr.msk.f32.vlgmr.msra.gmra.mxu0 %vm1035_vm2, %v9540_v31 }
 0x90e   : > { %7965 = vmatpush3.xpose.msk.msra.mxu0 %vm1035_vm2, %v9544_v52  ;;  %7966 = vmatprep.mubr.msk.f32.mxu0 %vm8564_vm1, %v8563_v49 }
 0x90f   : > { %7974 = vmatprep.subr.mxu0 %v8563_v49 }
 0x911   : > { %7967 = vmatmul.mubr.msk.f32.vlgmr.msra.gmra.mxu0 %vm1035_vm2, %v5147_v3 }
 0x912   : > { %7975 = vmatpush3.xpose.msk.msra.mxu0 %vm1035_vm2, %v5305_v63  ;;  %7976 = vmatprep.mubr.msk.f32.mxu0 %vm8564_vm1, %v8563_v49 }
 0x913   : > { %7984 = vmatprep.subr.mxu0 %v8563_v49 }
 0x915   : > { %7977 = vmatmul.mubr.msk.f32.vlgmr.msra.gmra.mxu0 %vm1035_vm2, %v5303_v6 }
 0x916   : > { %7985 = vmatpush3.xpose.msk.msra.mxu0 %vm1035_vm2, %v5461_v9  ;;  %7986 = vmatprep.mubr.msk.f32.mxu0 %vm8564_vm1, %v8563_v49 }
 0x917   : > { %7994 = vmatprep.subr.mxu0 %v8563_v49 }
 0x919   : > { %7987 = vmatmul.mubr.msk.f32.vlgmr.msra.gmra.mxu0 %vm1035_vm2, %v5459_v58 }
 0x91a   : > { %7996 = vmatprep.mubr.msk.f32.mxu0 %vm8564_vm1, %v8563_v49 }
 0x940   : > { %v4365_v13 = vpop.xlane.xlu1 %4364 }
 0x941   : > { %8321 = vrcp.f32 %v4365_v13 }
 0x944   : > { %v5381_v16 = vpop.permute.xlu1 %5380 }
 0x94e   : > { %v8322_v31 = vpop.eup %8321 }
 0x94f   : > { %v4381_v52 = vmul.f32 %v8322_v31, %v9549_v57 }
 0x951   : > { %7952 = vmatmul.mubr.msk.f32.vlgmr.msra.gmra.mxu1 %vm1035_vm2, %v4381_v52 }
 0x952   : > { %7960 = vmatpush3.xpose.msk.msra.mxu1 %vm1035_vm2, %v9538_v15  ;;  %7961 = vmatprep.mubr.msk.f32.mxu1 %vm8564_vm1, %v8563_v49  ;;  %v5539_v15 = vpop.permute.xlu1 %5538 }
 0x953   : > { %7969 = vmatprep.subr.mxu1 %v8563_v49 }
 0x955   : > { %7962 = vmatmul.mubr.msk.f32.vlgmr.msra.gmra.mxu1 %vm1035_vm2, %v9542_v14 }
 0x956   : > { %7970 = vmatpush3.xpose.msk.msra.mxu1 %vm1035_vm2, %v9567_v8  ;;  %7971 = vmatprep.mubr.msk.f32.mxu1 %vm8564_vm1, %v8563_v49  ;;  %v5537_v14 = vpop.permute.xlu1 %5536 }
 0x957   : > { %7979 = vmatprep.subr.mxu1 %v8563_v49 }
 0x959   : > { %7972 = vmatmul.mubr.msk.f32.vlgmr.msra.gmra.mxu1 %vm1035_vm2, %v5225_v54 }
 0x95a   : > { %7980 = vmatpush3.xpose.msk.msra.mxu1 %vm1035_vm2, %v5383_v22  ;;  %7981 = vmatprep.mubr.msk.f32.mxu1 %vm8564_vm1, %v8563_v49 }
 0x95b   : > { %7989 = vmatprep.subr.mxu1 %v8563_v49 }
 0x95d   : > { %7982 = vmatmul.mubr.msk.f32.vlgmr.msra.gmra.mxu1 %vm1035_vm2, %v5381_v16 }
 0x95e   : > { %7990 = vmatpush3.xpose.msk.msra.mxu1 %vm1035_vm2, %v5539_v15  ;;  %7991 = vmatprep.mubr.msk.f32.mxu1 %vm8564_vm1, %v8563_v49 }
 0x95f   : > { %7999 = vmatprep.subr.mxu1 %v8563_v49 }
 0x961   : > { %7992 = vmatmul.mubr.msk.f32.vlgmr.msra.gmra.mxu1 %vm1035_vm2, %v5537_v14 }
 0x962   : > { %8001 = vmatprep.mubr.msk.f32.mxu1 %vm8564_vm1, %v8563_v49 }
 0x974   : > { %v9645_v0 = vpop.f32.mrf.mxu0 }
 0x976   : > { %v7918_v19 = vpop.f32.mrf.mxu0 }
 0x979   : > { %v9647_v42 = vpop.f32.mrf.mxu0 }
 0x97b   : > { %v7928_v62 = vpop.f32.mrf.mxu0 }
 0x9bc   : > { %v9649_v23 = vpop.f32.mrf.mxu1 }
 0x9be   : > { %v7923_v57 = vpop.f32.mrf.mxu1 }
 0x9c0   : > { %v9651_v1 = vpop.f32.mrf.mxu1 }
 0x9c2   : > { %v7933_v7 = vpop.f32.mrf.mxu1 }
 0x9c4   : > { %v9653_v10 = vpop.f32.mrf.mxu1 }
 0x9c5   : > { %v9655_v8 = vpop.f32.mrf.mxu0 }
 0x9c6   : > { %v7943_v12 = vpop.f32.mrf.mxu1 }
 0x9c7   : > { %v7938_v43 = vpop.f32.mrf.mxu0 }
 0x9c9   : > { %v9657_v33 = vpop.f32.mrf.mxu0 }
 0x9cb   : > { %v7948_v61 = vpop.f32.mrf.mxu0 }
 0x9cd   : > { %v5064_v11 = vpop.f32.mrf.mxu0 }
 0x9ce   : > { %v5614_v60 = vsel %vm8997_vm3, %v5064_v11, -inf }
 0x9cf   : > { %v5622_v25 = vsel %vm1035_vm2, %v5614_v60, -inf  ;;  %v7958_v17 = vpop.f32.mrf.mxu0 }
 0x9d0   : > { %5623 = vmax.xlane.f32.xlu0 %v5622_v25 }
 0x9d1   : > { %v5220_v26 = vpop.f32.mrf.mxu0 }
 0x9d2   : > { %v5616_v3 = vsel %vm8997_vm3, %v5220_v26, -inf }
 0x9d3   : > { %v5628_v48 = vsel %vm1035_vm2, %v5616_v3, -inf  ;;  %v7968_v53 = vpop.f32.mrf.mxu0 }
 0x9d4   : > { %5629 = vmax.xlane.f32.xlu0 %v5628_v48 }
 0x9d5   : > { %v5376_v4 = vpop.f32.mrf.mxu0 }
 0x9d6   : > { %v5618_v15 = vsel %vm8997_vm3, %v5376_v4, -inf }
 0x9d7   : > { %v7978_v59 = vpop.f32.mrf.mxu0  ;;  %v5634_v62 = vsel %vm1035_vm2, %v5618_v15, -inf }
 0x9d9   : > { %v5532_v2 = vpop.f32.mrf.mxu0 }
 0x9da   : > { %v5620_v12 = vsel %vm8997_vm3, %v5532_v2, -inf }
 0x9db   : > { %v7988_v63 = vpop.f32.mrf.mxu0  ;;  %v5640_v11 = vsel %vm1035_vm2, %v5620_v12, -inf }
 0xa11   : > { %v9665_v5 = vpop.f32.mrf.mxu1 }
 0xa13   : > { %v7953_v6 = vpop.f32.mrf.mxu1 }
 0xa15   : > { %v5142_v9 = vpop.f32.mrf.mxu1 }
 0xa16   : > { %v5615_v58 = vsel %vm8997_vm3, %v5142_v9, -inf }
 0xa17   : > { %v5625_v54 = vsel %vm1035_vm2, %v5615_v58, -inf  ;;  %v7963_v22 = vpop.f32.mrf.mxu1 }
 0xa18   : > { %5626 = vmax.xlane.f32.xlu1 %v5625_v54 }
 0xa19   : > { %v5298_v13 = vpop.f32.mrf.mxu1 }
 0xa1a   : > { %v5617_v31 = vsel %vm8997_vm3, %v5298_v13, -inf }
 0xa1b   : > { %v5631_v52 = vsel %vm1035_vm2, %v5617_v31, -inf  ;;  %v7973_v16 = vpop.f32.mrf.mxu1 }
 0xa1c   : > { %5632 = vmax.xlane.f32.xlu0 %v5631_v52 }
 0xa1d   : > { %v5454_v14 = vpop.f32.mrf.mxu1 }
 0xa1e   : > { %v5619_v19 = vsel %vm8997_vm3, %v5454_v14, -inf }
 0xa1f   : > { %v5637_v57 = vsel %vm1035_vm2, %v5619_v19, -inf  ;;  %v7983_v7 = vpop.f32.mrf.mxu1 }
 0xa20   : > { %5638 = vmax.xlane.f32.xlu1 %v5637_v57  ;;  %5635 = vmax.xlane.f32.xlu0 %v5634_v62 }
 0xa21   : > { %v5610_v43 = vpop.f32.mrf.mxu1 }
 0xa22   : > { %v5621_v61 = vsel %vm8997_vm3, %v5610_v43, -inf }
 0xa23   : > { %v5643_v25 = vsel %vm1035_vm2, %v5621_v61, -inf  ;;  %v7993_v17 = vpop.f32.mrf.mxu1 }
 0xa24   : > { %5644 = vmax.xlane.f32.xlu1 %v5643_v25  ;;  %5641 = vmax.xlane.f32.xlu0 %v5640_v11 }
 0xa35   : > { %5786 = vrot.lane.b32.xlu1 %v8935_v18, %s8567_s20 }
 0xa39   : > { %5862 = vrot.lane.b32.xlu1 %v8991_v30, %s8567_s20 }
 0xa3a   : > { %5710 = vrot.lane.b32.xlu0 %v8957_v24, %s8567_s20 }
 0xa3d   : > { %5938 = vrot.lane.b32.xlu1 %v8989_v27, %s8567_s20 }
 0xa3e   : > { %6014 = vrot.lane.b32.xlu0 %v8995_v35, %s8567_s20 }
 0xa41   : > { %6090 = vrot.lane.b32.xlu1 %v8993_v32, %s8567_s20 }
 0xa59   : > { %v5624_v36 = vpop.xlane.xlu0 %5623 }
 0xa5a   : > { %v5646_v26 = vsub.f32 %v5614_v60, %v5624_v36 }
 0xa5c   : > { %v5654_v48 = vmul.f32 1.442695, %v5646_v26 }
 0xa5d   : > { %v5630_v53 = vpop.xlane.xlu0 %5629 }
 0xa5e   : > { %8323 = vpow2.f32 %v5654_v48  ;;  %v5648_v18 = vsub.f32 %v5616_v3, %v5630_v53 }
 0xa60   : > { %v5658_v4 = vmul.f32 1.442695, %v5648_v18 }
 0xa62   : > { %8325 = vpow2.f32 %v5658_v4 }
 0xa6b   : > { %v9697_v30 = vpop.eup %8323 }
 0xa6c   : > { %v5670_v24 = vsel %vm1035_vm2, %v9697_v30, 0.0 }
 0xa6d   : > { %5671 = vadd.xlane.f32.xlu0 %v5670_v24 }
 0xa6f   : > { %v9701_v27 = vpop.eup %8325 }
 0xa70   : > { %v5676_v35 = vsel %vm1035_vm2, %v9701_v27, 0.0 }
 0xa71   : > { %5677 = vadd.xlane.f32.xlu0 %v5676_v35 }
 0xaa1   : > { %v5627_v32 = vpop.xlane.xlu1 %5626 }
 0xaa2   : > { %v5647_v60 = vsub.f32 %v5615_v58, %v5627_v32 }
 0xaa4   : > { %v5656_v59 = vmul.f32 1.442695, %v5647_v60 }
 0xaa5   : > { %v5633_v2 = vpop.xlane.xlu0 %5632 }
 0xaa6   : > { %8327 = vpow2.f32 %v5656_v59  ;;  %v5649_v3 = vsub.f32 %v5617_v31, %v5633_v2 }
 0xaa8   : > { %v5660_v63 = vmul.f32 1.442695, %v5649_v3 }
 0xaa9   : > { %v5639_v6 = vpop.xlane.xlu1 %5638  ;;  %v5636_v9 = vpop.xlane.xlu0 %5635 }
 0xaaa   : > { %8329 = vpow2.f32 %v5660_v63  ;;  %v5651_v54 = vsub.f32 %v5619_v19, %v5639_v6  ;;  %v5650_v22 = vsub.f32 %v5618_v15, %v5636_v9 }
 0xaac   : > { %v5664_v13 = vmul.f32 1.442695, %v5651_v54  ;;  %v5662_v52 = vmul.f32 1.442695, %v5650_v22 }
 0xaad   : > { %v5645_v16 = vpop.xlane.xlu1 %5644  ;;  %v5642_v14 = vpop.xlane.xlu0 %5641 }
 0xaae   : > { %8331 = vpow2.f32 %v5664_v13  ;;  %v5653_v62 = vsub.f32 %v5621_v61, %v5645_v16  ;;  %v5652_v57 = vsub.f32 %v5620_v12, %v5642_v14 }
 0xaaf   : > { %8333 = vpow2.f32 %v5662_v52 }
 0xab0   : > { %v5668_v7 = vmul.f32 1.442695, %v5653_v62  ;;  %v5666_v58 = vmul.f32 1.442695, %v5652_v57 }
 0xab1   : > { %v5787_v43 = vpop.permute.xlu1 %5786  ;;  %v5711_v11 = vpop.permute.xlu0 %5710 }
 0xab2   : > { %8335 = vpow2.f32 %v5668_v7  ;;  %7995 = vmatpush3.msra.mxu0 %v5711_v11  ;;  %8000 = vmatpush3.msra.mxu1 %v5787_v43 }
 0xab3   : > { %v9705_v31 = vpop.eup %8327  ;;  %8337 = vpow2.f32 %v5666_v58  ;;  %8004 = vmatprep.subr.mxu0 %v8563_v49  ;;  %8009 = vmatprep.subr.mxu1 %v8563_v49 }
 0xab4   : > { %v5673_v15 = vsel %vm1035_vm2, %v9705_v31, 0.0 }
 0xab5   : > { %5674 = vadd.xlane.f32.xlu1 %v5673_v15  ;;  %v6441_v15 = vld [vmem:[#allocation7 + $0x8] sm:$0xff] }
 0xab7   : > { %v9711_v19 = vpop.eup %8329 }
 0xab8   : > { %v5679_v12 = vsel %vm1035_vm2, %v9711_v19, 0.0 }
 0xab9   : > { %5680 = vadd.xlane.f32.xlu1 %v5679_v12 }
 0xabb   : > { %v9715_v61 = vpop.eup %8331 }
 0xabc   : > { %v9717_v25 = vpop.eup %8333  ;;  %v5685_v17 = vsel %vm1035_vm2, %v9715_v61, 0.0 }
 0xabd   : > { %5686 = vadd.xlane.f32.xlu1 %v5685_v17  ;;  %v5682_v36 = vsel %vm1035_vm2, %v9717_v25, 0.0 }
 0xabe   : > { %5683 = vadd.xlane.f32.xlu0 %v5682_v36 }
 0xabf   : > { %v9723_v26 = vpop.eup %8335 }
 0xac0   : > { %v9725_v48 = vpop.eup %8337  ;;  %v5691_v53 = vsel %vm1035_vm2, %v9723_v26, 0.0 }
 0xac1   : > { %5692 = vadd.xlane.f32.xlu1 %v5691_v53  ;;  %v5688_v18 = vsel %vm1035_vm2, %v9725_v48, 0.0 }
 0xac2   : > { %5689 = vadd.xlane.f32.xlu0 %v5688_v18 }
 0xad2   : > { %6242 = vrot.lane.b32.xlu1 %v9003_v41, %s8567_s20  ;;  %v6015_v41 = vpop.permute.xlu0 %6014 }
 0xad6   : > { %6328 = vrot.lane.b32.xlu1 %v9421_v55, %s8568_s21 }
 0xad8   : > { %6166 = vrot.lane.b32.xlu0 %v9008_v45, %s8567_s20  ;;  %s8573_s20 = smov 96  }
 0xada   : > { %6360 = vrot.lane.b32.xlu1 %v9649_v23, %s8569_s22 }
 0xadc   : > { %6326 = vrot.lane.b32.xlu0 %v9417_v38, %s8568_s21 }
 0xade   : > { %6332 = vrot.lane.b32.xlu1 %v9423_v28, %s8568_s21  ;;  %v5863_v28 = vpop.permute.xlu1 %5862 }
 0xae0   : > { %6358 = vrot.lane.b32.xlu0 %v9645_v0, %s8569_s22 }
 0xae2   : > { %6364 = vrot.lane.b32.xlu1 %v9651_v1, %s8569_s22 }
 0xae4   : > { %6330 = vrot.lane.b32.xlu0 %v9419_v29, %s8568_s21 }
 0xae6   : > { %6336 = vrot.lane.b32.xlu1 %v9425_v44, %s8568_s21 }
 0xae8   : > { %6362 = vrot.lane.b32.xlu0 %v9647_v42, %s8569_s22 }
 0xaea   : > { %6368 = vrot.lane.b32.xlu1 %v9653_v10, %s8569_s22 }
 0xaec   : > { %6334 = vrot.lane.b32.xlu0 %v9427_v50, %s8568_s21 }
 0xaee   : > { %6340 = vrot.lane.b32.xlu1 %v9437_v40, %s8568_s21 }
 0xaf0   : > { %6366 = vrot.lane.b32.xlu0 %v9655_v8, %s8569_s22 }
 0xaf2   : > { %6372 = vrot.lane.b32.xlu1 %v9665_v5, %s8569_s22 }
 0xaf4   : > { %6338 = vrot.lane.b32.xlu0 %v9429_v21, %s8568_s21  ;;  %v5939_v21 = vpop.permute.xlu1 %5938  ;;  %s518_s21 = sand.u32 1, %s8547_s30  }
 0xaf5   : > { %s7164_s29 = scalar_lea.sflag [#allocation4], %s518_s21 }
 0xaf6   : > { %v5672_v45 = vpop.xlane.xlu0 %5671 }
 0xaf7   : > { %8339 = vrcp.f32 %v5672_v45 }
 0xaf8   : > { %6370 = vrot.lane.b32.xlu0 %v9657_v33, %s8569_s22  ;;  %v6091_v40 = vpop.permute.xlu1 %6090  ;;  %s7290_s22 = sshll.u32 %s518_s21, 4 }
 0xaf9   : > { %s520_s25 = scalar_lea.vmem [#allocation10], %s7290_s22 }
 0xafa   : > { %v5678_v38 = vpop.xlane.xlu0 %5677  ;;  %s7178_s28 = sshll.u32 %s520_s25, 4  ;;  %s7179_s28 = int_to_ptr.vmem [resolvable:$true] %s7178_s28 }
 0xafb   : > { %8341 = vrcp.f32 %v5678_v38 }
 0xb04   : > { %v8340_v29 = vpop.eup %8339 }
 0xb05   : > { %v5702_v55 = vmul.f32 %v8340_v29, %v9697_v30 }
 0xb07   : > { %7997 = vmatmul.mubr.msk.f32.vlgmr.msra.gmra.mxu0 %vm1035_vm2, %v5702_v55 }
 0xb08   : > { %v8342_v44 = vpop.eup %8341  ;;  %8005 = vmatpush3.msra.mxu0 %v5863_v28  ;;  %8006 = vmatprep.mubr.msk.f32.mxu0 %vm8564_vm1, %v8563_v49 }
 0xb09   : > { %8014 = vmatprep.subr.mxu0 %v8563_v49  ;;  %v5704_v50 = vmul.f32 %v8342_v44, %v9701_v27 }
 0xb0b   : > { %8007 = vmatmul.mubr.msk.f32.vlgmr.msra.gmra.mxu0 %vm1035_vm2, %v5704_v50 }
 0xb0c   : > { %8015 = vmatpush3.msra.mxu0 %v6015_v41  ;;  %8016 = vmatprep.mubr.msk.f32.mxu0 %vm8564_vm1, %v8563_v49 }
 0xb0d   : > { %8024 = vmatprep.subr.mxu0 %v8563_v49 }
 0xb3e   : > { %v5675_v0 = vpop.xlane.xlu1 %5674 }
 0xb3f   : > { %8343 = vrcp.f32 %v5675_v0 }
 0xb42   : > { %v5681_v42 = vpop.xlane.xlu1 %5680 }
 0xb43   : > { %8345 = vrcp.f32 %v5681_v42 }
 0xb46   : > { %v5687_v23 = vpop.xlane.xlu1 %5686 }
 0xb47   : > { %8347 = vrcp.f32 %v5687_v23  ;;  %v5684_v1 = vpop.xlane.xlu0 %5683 }
 0xb48   : > { %8349 = vrcp.f32 %v5684_v1 }
 0xb4a   : > { %v5693_v10 = vpop.xlane.xlu1 %5692 }
 0xb4b   : > { %8351 = vrcp.f32 %v5693_v10  ;;  %v5690_v8 = vpop.xlane.xlu0 %5689 }
 0xb4c   : > { %v8344_v33 = vpop.eup %8343  ;;  %8353 = vrcp.f32 %v5690_v8 }
 0xb4d   : > { %v5703_v5 = vmul.f32 %v8344_v33, %v9705_v31  ;;  %v6442_v31 = vld [vmem:[#allocation7 + $0x10] sm:$0xff] }
 0xb4e   : > { %v6243_v2 = vpop.permute.xlu1 %6242 }
 0xb4f   : > { %v6167_v4 = vpop.permute.xlu0 %6166  ;;  %8002 = vmatmul.mubr.msk.f32.vlgmr.msra.gmra.mxu1 %vm1035_vm2, %v5703_v5 }
 0xb50   : > { %v8346_v30 = vpop.eup %8345  ;;  %8010 = vmatpush3.msra.mxu1 %v5939_v21  ;;  %8011 = vmatprep.mubr.msk.f32.mxu1 %vm8564_vm1, %v8563_v49 }
 0xb51   : > { %8019 = vmatprep.subr.mxu1 %v8563_v49  ;;  %v5705_v24 = vmul.f32 %v8346_v30, %v9711_v19 }
 0xb53   : > { %v9767_v27 = vpop.permute.xlu0 %6326  ;;  %8012 = vmatmul.mubr.msk.f32.vlgmr.msra.gmra.mxu1 %vm1035_vm2, %v5705_v24 }
 0xb54   : > { %v8348_v35 = vpop.eup %8347  ;;  %8020 = vmatpush3.msra.mxu1 %v6091_v40  ;;  %8021 = vmatprep.mubr.msk.f32.mxu1 %vm8564_vm1, %v8563_v49  ;;  %v6414_v28 = vsel %vm1035_vm2, %v9189_v34, %v9767_v27  ;;  %v6329_v40 = vpop.permute.xlu1 %6328 }
 0xb55   : > { %v8350_v32 = vpop.eup %8349  ;;  %8029 = vmatprep.subr.mxu1 %v8563_v49  ;;  %v5707_v60 = vmul.f32 %v8348_v35, %v9715_v61  ;;  %v6440_v61 = vld [vmem:[#allocation7] sm:$0xff]  ;;  %v6415_v5 = vsel %vm1035_vm2, %v9191_v37, %v6329_v40 }
 0xb56   : > { %v5706_v59 = vmul.f32 %v8350_v32, %v9717_v25 }
 0xb57   : > { %v9775_v3 = vpop.permute.xlu0 %6358  ;;  %8022 = vmatmul.mubr.msk.f32.vlgmr.msra.gmra.mxu1 %vm1035_vm2, %v5707_v60 }
 0xb58   : > { %v8352_v63 = vpop.eup %8351  ;;  %8017 = vmatmul.mubr.msk.f32.vlgmr.msra.gmra.mxu0 %vm1035_vm2, %v5706_v59  ;;  %8030 = vmatpush3.msra.mxu1 %v6243_v2  ;;  %v6423_v44 = vsel %vm6422_vm4, %v6414_v28, %v9775_v3  ;;  %v6361_v0 = vpop.permute.xlu1 %6360 }
 0xb59   : > { %v8354_v6 = vpop.eup %8353  ;;  %8025 = vmatpush3.msra.mxu0 %v6167_v4  ;;  %8031 = vmatprep.mubr.msk.f32.mxu1 %vm8564_vm1, %v8563_v49  ;;  %v5709_v9 = vmul.f32 %v8352_v63, %v9723_v26  ;;  %v6424_v4 = vsel %vm6422_vm4, %v6415_v5, %v6361_v0 }
 0xb5a   : > { %8026 = vmatprep.mubr.msk.f32.mxu0 %vm8564_vm1, %v8563_v49  ;;  %v5708_v54 = vmul.f32 %v8354_v6, %v9725_v48 }
 0xb5b   : > { %v6331_v22 = vpop.permute.xlu0 %6330  ;;  %8032 = vmatmul.mubr.msk.f32.vlgmr.msra.gmra.mxu1 %vm1035_vm2, %v5709_v9 }
 0xb5c   : > { %8027 = vmatmul.mubr.msk.f32.vlgmr.msra.gmra.mxu0 %vm1035_vm2, %v5708_v54  ;;  %v6416_v13 = vsel %vm1035_vm2, %v9193_v20, %v6331_v22  ;;  %v6443_v20 = vld [vmem:[#allocation7 + $0x18] sm:$0xff]  ;;  %v6333_v42 = vpop.permute.xlu1 %6332 }
 0xb5d   : > { %8034 = vmatprep.subr.mxu0 %v6443_v20  ;;  %v6417_v35 = vsel %vm1035_vm2, %v9197_v47, %v6333_v42  ;;  %v8378_v42 = vld [vmem:[%s8775_s19 + $0x30] sm:$0xff] }
 0xb5e   : > { %8035 = vmatpush3.msra.mxu0 %v6443_v20 }
 0xb5f   : > { %v6363_v52 = vpop.permute.xlu0 %6362  ;;  %8036 = vmatprep.subr.mxu0 %v6442_v31 }
 0xb60   : > { %v9790_v16 = vsel %vm6422_vm4, %v6416_v13, %v6363_v52  ;;  %8037 = vmatpush3.msra.mxu0 %v6442_v31  ;;  %v6365_v23 = vpop.permute.xlu1 %6364 }
 0xb61   : > { %8038 = vmatprep.subr.mxu0 %v6441_v15  ;;  %v6426_v32 = vsel %vm6422_vm4, %v6417_v35, %v6365_v23 }
 0xb62   : > { %8039 = vmatpush3.msra.mxu0 %v6441_v15 }
 0xb63   : > { %v6335_v14 = vpop.permute.xlu0 %6334  ;;  %8040 = vmatprep.subr.mxu0 %v6440_v61 }
 0xb64   : > { %v6418_v62 = vsel %vm1035_vm2, %v9195_v46, %v6335_v14  ;;  %8041 = vmatpush3.msra.mxu0 %v6440_v61  ;;  %v6337_v1 = vpop.permute.xlu1 %6336 }
 0xb65   : > { %v6419_v59 = vsel %vm1035_vm2, %v9207_v56, %v6337_v1 }
 0xb67   : > { %v6367_v49 = vpop.permute.xlu0 %6366 }
 0xb68   : > { %v9795_v57 = vsel %vm6422_vm4, %v6418_v62, %v6367_v49  ;;  %v6369_v10 = vpop.permute.xlu1 %6368  ;;  %v8371_v49 = vld [vmem:[%s8775_s19 + $0x8] sm:$0xff] }
 0xb69   : > { %v6428_v2 = vsel %vm6422_vm4, %v6419_v59, %v6369_v10 }
 0xb6b   : > { %v6339_v7 = vpop.permute.xlu0 %6338 }
 0xb6c   : > { %v6420_v58 = vsel %vm1035_vm2, %v9199_v51, %v6339_v7  ;;  %v6341_v8 = vpop.permute.xlu1 %6340 }
 0xb6d   : > { %v6421_v9 = vsel %vm1035_vm2, %v9209_v39, %v6341_v8  ;;  %v7415_v39 = vld [vmem:[%s10203_s7] ss:$0 sm:$0xff] }
 0xb6f   : > { %v6371_v43 = vpop.permute.xlu0 %6370 }
 0xb70   : > { %v9800_v11 = vsel %vm6422_vm4, %v6420_v58, %v6371_v43  ;;  %v6373_v33 = vpop.permute.xlu1 %6372  ;;  %v8372_v43 = vld [vmem:[%s8775_s19] sm:$0xff] }
 0xb71   : > { %v6430_v54 = vsel %vm6422_vm4, %v6421_v9, %v6373_v33 }
 0xbc7   : > { %v5782_v46 = vpop.f32.mrf.mxu0 }
 0xbc8   : > { %6390 = vrot.lane.b32.xlu0 %v5782_v46, %s8570_s15  ;;  %v8373_v46 = vld [vmem:[%s8775_s19 + $0x18] sm:$0xff] }
 0xbc9   : > { %v7998_v19 = vpop.f32.mrf.mxu0 }
 0xbcb   : > { %v5934_v12 = vpop.f32.mrf.mxu0 }
 0xbcc   : > { %6394 = vrot.lane.b32.xlu0 %v5934_v12, %s8570_s15 }
 0xbcd   : > { %v8008_v51 = vpop.f32.mrf.mxu0 }
 0xc0f   : > { %v5858_v25 = vpop.f32.mrf.mxu1 }
 0xc10   : > { %6392 = vrot.lane.b32.xlu1 %v5858_v25, %s8570_s15  ;;  %v8374_v25 = vld [vmem:[%s8775_s19 + $0x10] sm:$0xff] }
 0xc11   : > { %v8003_v17 = vpop.f32.mrf.mxu1 }
 0xc13   : > { %v6010_v36 = vpop.f32.mrf.mxu1 }
 0xc14   : > { %6396 = vrot.lane.b32.xlu1 %v6010_v36, %s8570_s15 }
 0xc15   : > { %v8013_v26 = vpop.f32.mrf.mxu1 }
 0xc17   : > { %v6162_v48 = vpop.f32.mrf.mxu1 }
 0xc18   : > { %v6086_v53 = vpop.f32.mrf.mxu0  ;;  %6400 = vrot.lane.b32.xlu1 %v6162_v48, %s8570_s15 }
 0xc19   : > { %6398 = vrot.lane.b32.xlu0 %v6086_v53, %s8570_s15  ;;  %v8023_v18 = vpop.f32.mrf.mxu1  ;;  %v8375_v53 = vld [vmem:[%s8775_s19 + $0x28] sm:$0xff] }
 0xc1a   : > { %v8018_v41 = vpop.f32.mrf.mxu0 }
 0xc1b   : > { %v6314_v45 = vpop.f32.mrf.mxu1 }
 0xc1c   : > { %v6238_v38 = vpop.f32.mrf.mxu0  ;;  %6404 = vrot.lane.b32.xlu1 %v6314_v45, %s8570_s15 }
 0xc1d   : > { %6402 = vrot.lane.b32.xlu0 %v6238_v38, %s8570_s15  ;;  %v8033_v29 = vpop.f32.mrf.mxu1  ;;  %v8376_v38 = vld [vmem:[%s8775_s19 + $0x20] sm:$0xff]  ;;  %s7441_s15 = sshll.u32 %s8671_s17, 8  ;;  %s8574_s17 = smov [#allocation10]  }
 0xc1e   : > { %v8028_v55 = vpop.f32.mrf.mxu0  ;;  %s10160_s18 = scalar_lea.hbm %s10210_s14, %s7441_s15 }
 0xc3a   : > { %v6391_v50 = vpop.permute.xlu0 %6390 }
 0xc3b   : > { %v6432_v21 = vsel %vm6431_vm5, %v6423_v44, %v6391_v50 }
 0xc3c   : > { %8042 = vmatprep.mubr.msk.f32.mxu0 %vm535_vm0, %v6432_v21  ;;  %v8377_v21 = vld [vmem:[%s8775_s19 + $0x38] sm:$0xff] }
 0xc3e   : > { %v6395_v34 = vpop.permute.xlu0 %6394 }
 0xc3f   : > { %v6434_v27 = vsel %vm6431_vm5, %v9790_v16, %v6395_v34 }
 0xc82   : > { %v6393_v30 = vpop.permute.xlu1 %6392 }
 0xc83   : > { %v6433_v24 = vsel %vm6431_vm5, %v6424_v4, %v6393_v30 }
 0xc84   : > { %8043 = vmatmul.mubr.msk.f32.vlgmr.msra.gmra.mxu0 %vm535_vm0, %v6433_v24 }
 0xc85   : > { %8045 = vmatprep.mubr.msk.f32.mxu0 %vm535_vm0, %v6434_v27 }
 0xc86   : > { %v6397_v60 = vpop.permute.xlu1 %6396 }
 0xc87   : > { %v6435_v37 = vsel %vm6431_vm5, %v6426_v32, %v6397_v60 }
 0xc88   : > { %8046 = vmatmul.mubr.msk.f32.gmra.mxu0 %vm535_vm0, %v6435_v37 }
 0xc8a   : > { %v6401_v3 = vpop.permute.xlu1 %6400 }
 0xc8b   : > { %v6437_v63 = vsel %vm6431_vm5, %v6428_v2, %v6401_v3  ;;  %v6399_v6 = vpop.permute.xlu0 %6398 }
 0xc8c   : > { %v6436_v47 = vsel %vm6431_vm5, %v9795_v57, %v6399_v6 }
 0xc8d   : > { %8048 = vmatprep.mubr.msk.f32.mxu0 %vm535_vm0, %v6436_v47 }
 0xc8e   : > { %8049 = vmatmul.mubr.msk.f32.gmra.mxu0 %vm535_vm0, %v6437_v63  ;;  %v6405_v56 = vpop.permute.xlu1 %6404 }
 0xc8f   : > { %v6439_v22 = vsel %vm6431_vm5, %v6430_v54, %v6405_v56  ;;  %v6403_v13 = vpop.permute.xlu0 %6402 }
 0xc90   : > { %v6438_v52 = vsel %vm6431_vm5, %v9800_v11, %v6403_v13 }
 0xc91   : > { %8051 = vmatprep.mubr.msk.f32.mxu0 %vm535_vm0, %v6438_v52 }
 0xc92   : > { %8052 = vmatmul.mubr.msk.f32.gmra.mxu0 %vm535_vm0, %v6439_v22 }
 0xd44   : > { %v8044_v16 = vpop.f32.mrf.mxu0 }
 0xd45   : > { %v6547_v14 = vadd.f32 %v8044_v16, %v7415_v39 }
 0xd46   : > { %v6541_v62 = vpop.f32.mrf.mxu0 }
 0xd47   : > { %v9842_v57 = vadd.f32 %v8371_v49, %v6547_v14  ;;  %v6542_v7 = vadd.f32 %v7415_v39, %v6541_v62 }
 0xd48   : > { %v8047_v58 = vpop.f32.mrf.mxu0 }
 0xd49   : > { %v9845_v11 = vadd.f32 %v8372_v43, %v6542_v7  ;;  %v6557_v20 = vadd.f32 %v8047_v58, %v7415_v39  ;;  %v6591_v31 = vsel %vm535_vm0, %v9842_v57, 0.0 }
 0xd4a   : > { %6592 = vadd.xlane.f32.xlu1 %v6591_v31  ;;  %v6551_v15 = vpop.f32.mrf.mxu0 }
 0xd4b   : > { %v9850_v19 = vadd.f32 %v8373_v46, %v6557_v20  ;;  %v6552_v12 = vadd.f32 %v7415_v39, %v6551_v15  ;;  %v6588_v51 = vsel %vm535_vm0, %v9845_v11, 0.0 }
 0xd4c   : > { %6589 = vadd.xlane.f32.xlu0 %v6588_v51 }
 0xd4d   : > { %v9855_v17 = vadd.f32 %v8374_v25, %v6552_v12  ;;  %v6597_v26 = vsel %vm535_vm0, %v9850_v19, 0.0 }
 0xd4e   : > { %v8050_v61 = vpop.f32.mrf.mxu0 }
 0xd4f   : > { %v6567_v36 = vadd.f32 %v8050_v61, %v7415_v39  ;;  %v6594_v44 = vsel %vm535_vm0, %v9855_v17, 0.0 }
 0xd50   : > { %v6561_v48 = vpop.f32.mrf.mxu0  ;;  %6598 = vadd.xlane.f32.xlu0 %v6597_v26  ;;  %v6725_v26 = vld [vmem:[#allocation8 + $0x18] sm:$0xff] }
 0xd51   : > { %v9860_v18 = vadd.f32 %v8375_v53, %v6567_v36  ;;  %v6562_v41 = vadd.f32 %v7415_v39, %v6561_v48  ;;  %8054 = vmatprep.subr.mxu1 %v6725_v26  ;;  %v6724_v48 = vld [vmem:[#allocation8 + $0x10] sm:$0xff]  ;;  %v6723_v53 = vld [vmem:[#allocation8 + $0x8] sm:$0xff] }
 0xd52   : > { %v8053_v45 = vpop.f32.mrf.mxu0  ;;  %8055 = vmatpush3.msra.mxu1 %v6725_v26 }
 0xd53   : > { %v9863_v29 = vadd.f32 %v8376_v38, %v6562_v41  ;;  %v6577_v55 = vadd.f32 %v8053_v45, %v7415_v39  ;;  %v6603_v28 = vsel %vm535_vm0, %v9860_v18, 0.0  ;;  %8056 = vmatprep.subr.mxu1 %v6724_v48  ;;  %v6722_v41 = vld [vmem:[#allocation8] sm:$0xff]  ;;  %v6885_v45 = vld [vmem:[%s10208_s12 + $0x78] sm:$0xff]  ;;  %v6884_v38 = vld [vmem:[%s10208_s12 + $0x70] sm:$0xff] }
 0xd54   : > { %6604 = vadd.xlane.f32.xlu1 %v6603_v28  ;;  %v6571_v50 = vpop.f32.mrf.mxu0  ;;  %6595 = vadd.xlane.f32.xlu0 %v6594_v44  ;;  %v6882_v28 = vld [vmem:[%s10208_s12 + $0x60] sm:$0xff]  ;;  %v6881_v44 = vld [vmem:[%s10208_s12 + $0x58] sm:$0xff] }
 0xd55   : > { %v9870_v40 = vadd.f32 %v8377_v21, %v6577_v55  ;;  %v6572_v0 = vadd.f32 %v7415_v39, %v6571_v50  ;;  %v6600_v10 = vsel %vm535_vm0, %v9863_v29, 0.0  ;;  %8057 = vmatpush3.msra.mxu1 %v6724_v48  ;;  %8074 = vmatprep.subr.mxu0 %v6885_v45  ;;  %v6883_v55 = vld [vmem:[%s10208_s12 + $0x68] sm:$0xff]  ;;  %v6880_v50 = vld [vmem:[%s10208_s12 + $0x50] sm:$0xff] }
 0xd56   : > { %8058 = vmatprep.subr.mxu1 %v6723_v53  ;;  %8075 = vmatpush3.msra.mxu0 %v6885_v45  ;;  %v6879_v21 = vld [vmem:[%s10208_s12 + $0x48] sm:$0xff] }
 0xd57   : > { %v9873_v23 = vadd.f32 %v8378_v42, %v6572_v0  ;;  %v6609_v1 = vsel %vm535_vm0, %v9870_v40, 0.0  ;;  %8059 = vmatpush3.msra.mxu1 %v6723_v53  ;;  %8076 = vmatprep.subr.mxu0 %v6884_v38  ;;  %v6878_v0 = vld [vmem:[%s10208_s12 + $0x40] sm:$0xff]  ;;  %v6877_v42 = vld [vmem:[%s10208_s12 + $0x38] sm:$0xff] }
 0xd58   : > { %6610 = vadd.xlane.f32.xlu1 %v6609_v1  ;;  %6601 = vadd.xlane.f32.xlu0 %v6600_v10  ;;  %v6876_v1 = vld [vmem:[%s10208_s12 + $0x30] sm:$0xff]  ;;  %v6875_v10 = vld [vmem:[%s10208_s12 + $0x28] sm:$0xff] }
 0xd59   : > { %v6606_v8 = vsel %vm535_vm0, %v9873_v23, 0.0  ;;  %8060 = vmatprep.subr.mxu1 %v6722_v41  ;;  %8077 = vmatpush3.msra.mxu0 %v6884_v38 }
 0xd5a   : > { %8061 = vmatpush3.msra.mxu1 %v6722_v41  ;;  %8078 = vmatprep.subr.mxu0 %v6883_v55 }
 0xd5b   : > { %8079 = vmatpush3.msra.mxu0 %v6883_v55 }
 0xd5c   : > { %6607 = vadd.xlane.f32.xlu0 %v6606_v8  ;;  %8080 = vmatprep.subr.mxu0 %v6882_v28  ;;  %v6874_v8 = vld [vmem:[%s10208_s12 + $0x20] sm:$0xff] }
 0xd5d   : > { %8081 = vmatpush3.msra.mxu0 %v6882_v28 }
 0xd5e   : > { %8082 = vmatprep.subr.mxu0 %v6881_v44 }
 0xd5f   : > { %8083 = vmatpush3.msra.mxu0 %v6881_v44 }
 0xd60   : > { %8084 = vmatprep.subr.mxu0 %v6880_v50 }
 0xd61   : > { %8085 = vmatpush3.msra.mxu0 %v6880_v50 }
 0xd62   : > { %8086 = vmatprep.subr.mxu0 %v6879_v21 }
 0xd63   : > { %8087 = vmatpush3.msra.mxu0 %v6879_v21 }
 0xd64   : > { %8088 = vmatprep.subr.mxu0 %v6878_v0 }
 0xd65   : > { %8089 = vmatpush3.msra.mxu0 %v6878_v0 }
 0xd66   : > { %8090 = vmatprep.subr.mxu0 %v6877_v42 }
 0xd67   : > { %8091 = vmatpush3.msra.mxu0 %v6877_v42 }
 0xd68   : > { %8092 = vmatprep.subr.mxu0 %v6876_v1 }
 0xd69   : > { %8093 = vmatpush3.msra.mxu0 %v6876_v1 }
 0xd6a   : > { %8094 = vmatprep.subr.mxu0 %v6875_v10 }
 0xd6b   : > { %8095 = vmatpush3.msra.mxu0 %v6875_v10 }
 0xd6c   : > { %8096 = vmatprep.subr.mxu0 %v6874_v8 }
 0xd6d   : > { %8097 = vmatpush3.msra.mxu0 %v6874_v8 }
 0xdd3   : > { %v6593_v33 = vpop.xlane.xlu1 %6592 }
 0xdd4   : > { %v6613_v5 = vmul.f32 0.03125, %v6593_v33 }
 0xdd5   : > { %v6590_v34 = vpop.xlane.xlu0 %6589 }
 0xdd6   : > { %v9882_v4 = vsub.f32 %v9842_v57, %v6613_v5  ;;  %v6612_v30 = vmul.f32 0.03125, %v6590_v34 }
 0xdd8   : > { %v9885_v24 = vsub.f32 %v9845_v11, %v6612_v30  ;;  %v6629_v27 = vmul.f32 %v9882_v4, %v9882_v4 }
 0xdd9   : > { %v6599_v35 = vpop.xlane.xlu0 %6598 }
 0xdda   : > { %v6615_v32 = vmul.f32 0.03125, %v6599_v35  ;;  %v6639_v60 = vsel %vm535_vm0, %v6629_v27, 0.0  ;;  %v6628_v37 = vmul.f32 %v9885_v24, %v9885_v24 }
 0xddb   : > { %6640 = vadd.xlane.f32.xlu1 %v6639_v60 }
 0xddc   : > { %v9893_v59 = vsub.f32 %v9850_v19, %v6615_v32  ;;  %v6636_v2 = vsel %vm535_vm0, %v6628_v37, 0.0 }
 0xddd   : > { %v6605_v3 = vpop.xlane.xlu1 %6604  ;;  %6637 = vadd.xlane.f32.xlu0 %v6636_v2  ;;  %v6596_v63 = vpop.xlane.xlu0 %6595 }
 0xdde   : > { %v6617_v6 = vmul.f32 0.03125, %v6605_v3  ;;  %v6614_v47 = vmul.f32 0.03125, %v6596_v63  ;;  %v6631_v9 = vmul.f32 %v9893_v59, %v9893_v59 }
 0xde0   : > { %v9899_v54 = vsub.f32 %v9860_v18, %v6617_v6  ;;  %v9902_v56 = vsub.f32 %v9855_v17, %v6614_v47  ;;  %v6645_v22 = vsel %vm535_vm0, %v6631_v9, 0.0 }
 0xde1   : > { %v6611_v13 = vpop.xlane.xlu1 %6610  ;;  %6646 = vadd.xlane.f32.xlu1 %v6645_v22  ;;  %v6602_v52 = vpop.xlane.xlu0 %6601 }
 0xde2   : > { %v6619_v39 = vmul.f32 0.03125, %v6611_v13  ;;  %v6616_v16 = vmul.f32 0.03125, %v6602_v52  ;;  %v6633_v14 = vmul.f32 %v9899_v54, %v9899_v54  ;;  %v6630_v62 = vmul.f32 %v9902_v56, %v9902_v56 }
 0xde4   : > { %v9910_v49 = vsub.f32 %v9870_v40, %v6619_v39  ;;  %v9913_v7 = vsub.f32 %v9863_v29, %v6616_v16  ;;  %v6651_v58 = vsel %vm535_vm0, %v6633_v14, 0.0  ;;  %v6642_v43 = vsel %vm535_vm0, %v6630_v62, 0.0 }
 0xde5   : > { %6652 = vadd.xlane.f32.xlu1 %v6651_v58  ;;  %6643 = vadd.xlane.f32.xlu0 %v6642_v43  ;;  %v6608_v20 = vpop.xlane.xlu0 %6607 }
 0xde6   : > { %v6618_v31 = vmul.f32 0.03125, %v6608_v20  ;;  %v6635_v15 = vmul.f32 %v9910_v49, %v9910_v49  ;;  %v6632_v46 = vmul.f32 %v9913_v7, %v9913_v7 }
 0xde8   : > { %v9922_v12 = vsub.f32 %v9873_v23, %v6618_v31  ;;  %v6657_v51 = vsel %vm535_vm0, %v6635_v15, 0.0  ;;  %v6648_v61 = vsel %vm535_vm0, %v6632_v46, 0.0  ;;  %v7424_v31 = vld [vmem:[%s10204_s8] ss:$0 sm:$0xff] }
 0xde9   : > { %6658 = vadd.xlane.f32.xlu1 %v6657_v51  ;;  %6649 = vadd.xlane.f32.xlu0 %v6648_v61 }
 0xdea   : > { %v6634_v25 = vmul.f32 %v9922_v12, %v9922_v12 }
 0xdec   : > { %v6654_v36 = vsel %vm535_vm0, %v6634_v25, 0.0 }
 0xded   : > { %6655 = vadd.xlane.f32.xlu0 %v6654_v36  ;;  %v7425_v36 = vld [vmem:[%s10205_s9] ss:$0 sm:$0xff] }
 0xe64   : > { %v6641_v33 = vpop.xlane.xlu1 %6640 }
 0xe65   : > { %v6661_v5 = vmul.f32 0.03125, %v6641_v33 }
 0xe66   : > { %v6638_v34 = vpop.xlane.xlu0 %6637 }
 0xe67   : > { %v6669_v30 = vadd.f32 1e-05, %v6661_v5  ;;  %v6660_v27 = vmul.f32 0.03125, %v6638_v34 }
 0xe69   : > { %8355 = vrsqrt.f32 %v6669_v30  ;;  %v6668_v35 = vadd.f32 1e-05, %v6660_v27  ;;  %v6873_v30 = vld [vmem:[%s10208_s12 + $0x18] sm:$0xff]  ;;  %v6871_v27 = vld [vmem:[%s10208_s12 + $0x8] sm:$0xff] }
 0xe6a   : > { %v6647_v32 = vpop.xlane.xlu1 %6646  ;;  %8098 = vmatprep.subr.mxu0 %v6873_v30 }
 0xe6b   : > { %8357 = vrsqrt.f32 %v6668_v35  ;;  %v6663_v60 = vmul.f32 0.03125, %v6647_v32  ;;  %8099 = vmatpush3.msra.mxu0 %v6873_v30  ;;  %v6870_v35 = vld [vmem:[%s10208_s12] sm:$0xff] }
 0xe6c   : > { %v7426_v32 = vld [vmem:[%s10207_s11] ss:$0 sm:$0xff] }
 0xe6d   : > { %v6671_v37 = vadd.f32 1e-05, %v6663_v60 }
 0xe6e   : > { %v6653_v2 = vpop.xlane.xlu1 %6652  ;;  %v6644_v3 = vpop.xlane.xlu0 %6643 }
 0xe6f   : > { %8359 = vrsqrt.f32 %v6671_v37  ;;  %v6665_v63 = vmul.f32 0.03125, %v6653_v2  ;;  %v6662_v6 = vmul.f32 0.03125, %v6644_v3 }
 0xe71   : > { %v6673_v47 = vadd.f32 1e-05, %v6665_v63  ;;  %v6670_v9 = vadd.f32 1e-05, %v6662_v6 }
 0xe72   : > { %v6659_v22 = vpop.xlane.xlu1 %6658  ;;  %v6650_v13 = vpop.xlane.xlu0 %6649 }
 0xe73   : > { %8361 = vrsqrt.f32 %v6673_v47  ;;  %v6667_v52 = vmul.f32 0.03125, %v6659_v22  ;;  %v6664_v39 = vmul.f32 0.03125, %v6650_v13 }
 0xe74   : > { %8363 = vrsqrt.f32 %v6670_v9 }
 0xe75   : > { %v6675_v16 = vadd.f32 1e-05, %v6667_v52  ;;  %v6672_v14 = vadd.f32 1e-05, %v6664_v39 }
 0xe76   : > { %v8356_v62 = vpop.eup %8355  ;;  %v6656_v58 = vpop.xlane.xlu0 %6655 }
 0xe77   : > { %v6685_v43 = vmul.f32 %v8356_v62, %v9882_v4  ;;  %8365 = vrsqrt.f32 %v6675_v16  ;;  %v6666_v20 = vmul.f32 0.03125, %v6656_v58 }
 0xe78   : > { %v8358_v15 = vpop.eup %8357  ;;  %8367 = vrsqrt.f32 %v6672_v14 }
 0xe79   : > { %v6674_v46 = vadd.f32 1e-05, %v6666_v20  ;;  %v6684_v51 = vmul.f32 %v8358_v15, %v9885_v24  ;;  %v6700_v61 = vmul.f32 %v7424_v31, %v6685_v43 }
 0xe7b   : > { %8369 = vrsqrt.f32 %v6674_v46  ;;  %v6699_v25 = vmul.f32 %v7424_v31, %v6684_v51  ;;  %v6715_v48 = vadd.f32 %v7425_v36, %v6700_v61 }
 0xe7c   : > { %v8360_v26 = vpop.eup %8359 }
 0xe7d   : > { %v6714_v4 = vadd.f32 %v7425_v36, %v6699_v25  ;;  %v6687_v53 = vmul.f32 %v8360_v26, %v9893_v59 }
 0xe7f   : > { %8062 = vmatprep.mubr.msk.f32.mxu1 %vm535_vm0, %v6714_v4  ;;  %v6702_v38 = vmul.f32 %v7424_v31, %v6687_v53 }
 0xe80   : > { %v8362_v41 = vpop.eup %8361  ;;  %8063 = vmatmul.mubr.msk.f32.vlgmr.msra.gmra.mxu1 %vm535_vm0, %v6715_v48 }
 0xe81   : > { %v8364_v45 = vpop.eup %8363  ;;  %v6689_v55 = vmul.f32 %v8362_v41, %v9899_v54  ;;  %v6717_v42 = vadd.f32 %v7425_v36, %v6702_v38 }
 0xe82   : > { %v6686_v24 = vmul.f32 %v8364_v45, %v9902_v56 }
 0xe83   : > { %v6704_v1 = vmul.f32 %v7424_v31, %v6689_v55 }
 0xe84   : > { %v8366_v28 = vpop.eup %8365  ;;  %v6701_v44 = vmul.f32 %v7424_v31, %v6686_v24 }
 0xe85   : > { %v8368_v50 = vpop.eup %8367  ;;  %v6691_v10 = vmul.f32 %v8366_v28, %v9910_v49  ;;  %v6719_v54 = vadd.f32 %v7425_v36, %v6704_v1 }
 0xe86   : > { %v6716_v21 = vadd.f32 %v7425_v36, %v6701_v44  ;;  %v6688_v0 = vmul.f32 %v8368_v50, %v9913_v7 }
 0xe87   : > { %v6706_v34 = vmul.f32 %v7424_v31, %v6691_v10 }
 0xe88   : > { %v8370_v59 = vpop.eup %8369  ;;  %8065 = vmatprep.mubr.msk.f32.mxu1 %vm535_vm0, %v6716_v21  ;;  %v6703_v8 = vmul.f32 %v7424_v31, %v6688_v0 }
 0xe89   : > { %8066 = vmatmul.mubr.msk.f32.gmra.mxu1 %vm535_vm0, %v6717_v42  ;;  %v6690_v56 = vmul.f32 %v8370_v59, %v9922_v12  ;;  %v6721_v49 = vadd.f32 %v7425_v36, %v6706_v34  ;;  %v6872_v12 = vld [vmem:[%s10208_s12 + $0x10] sm:$0xff] }
 0xe8a   : > { %v6718_v33 = vadd.f32 %v7425_v36, %v6703_v8  ;;  %8100 = vmatprep.subr.mxu0 %v6872_v12 }
 0xe8b   : > { %v6705_v5 = vmul.f32 %v7424_v31, %v6690_v56  ;;  %8101 = vmatpush3.msra.mxu0 %v6872_v12 }
 0xe8c   : > { %8068 = vmatprep.mubr.msk.f32.mxu1 %vm535_vm0, %v6718_v33  ;;  %8102 = vmatprep.subr.mxu0 %v6871_v27 }
 0xe8d   : > { %8069 = vmatmul.mubr.msk.f32.gmra.mxu1 %vm535_vm0, %v6719_v54  ;;  %v6720_v7 = vadd.f32 %v7425_v36, %v6705_v5  ;;  %8103 = vmatpush3.msra.mxu0 %v6871_v27  ;;  %v10005_v36 = vld [vmem:[%s10209_s13] ss:$0 sm:$0xff] }
 0xe8e   : > { %8104 = vmatprep.subr.mxu0 %v6870_v35 }
 0xe8f   : > { %8071 = vmatprep.mubr.msk.f32.mxu1 %vm535_vm0, %v6720_v7  ;;  %8105 = vmatpush3.msra.mxu0 %v6870_v35 }
 0xe91   : > { %8072 = vmatmul.mubr.msk.f32.gmra.mxu1 %vm535_vm0, %v6721_v49 }
 0xf40   : > { %v8064_v60 = vpop.f32.mrf.mxu1 }
 0xf41   : > { %v6829_v37 = vadd.f32 %v8064_v60, %v7426_v32 }
 0xf42   : > { %v6823_v2 = vpop.f32.mrf.mxu1 }
 0xf43   : > { %v6824_v3 = vadd.f32 %v7426_v32, %v6823_v2  ;;  %v6863_v6 = vmax.f32 %v6829_v37, 0.0 }
 0xf45   : > { %v6862_v63 = vmax.f32 %v6824_v3, 0.0 }
 0xf47   : > { %8106 = vmatprep.mubr.f32.mxu0 %v6862_v63 }
 0xf48   : > { %8107 = vmatmul.mubr.f32.vlgmr.msra.gmra.mxu0 %v6863_v6 }
 0xf49   : > { %v8067_v47 = vpop.f32.mrf.mxu1 }
 0xf4a   : > { %v6839_v9 = vadd.f32 %v8067_v47, %v7426_v32 }
 0xf4b   : > { %v6833_v22 = vpop.f32.mrf.mxu1 }
 0xf4c   : > { %v6834_v13 = vadd.f32 %v7426_v32, %v6833_v22  ;;  %v6865_v16 = vmax.f32 %v6839_v9, 0.0 }
 0xf4d   : > { %v8070_v52 = vpop.f32.mrf.mxu1 }
 0xf4e   : > { %v6864_v39 = vmax.f32 %v6834_v13, 0.0  ;;  %v6849_v14 = vadd.f32 %v8070_v52, %v7426_v32 }
 0xf4f   : > { %v6843_v62 = vpop.f32.mrf.mxu1 }
 0xf50   : > { %v6844_v58 = vadd.f32 %v7426_v32, %v6843_v62  ;;  %8109 = vmatprep.mubr.f32.mxu0 %v6864_v39  ;;  %v6867_v31 = vmax.f32 %v6849_v14, 0.0 }
 0xf51   : > { %v8073_v43 = vpop.f32.mrf.mxu1  ;;  %8110 = vmatmul.mubr.f32.gmra.mxu0 %v6865_v16 }
 0xf52   : > { %v6866_v20 = vmax.f32 %v6844_v58, 0.0  ;;  %v6859_v15 = vadd.f32 %v8073_v43, %v7426_v32 }
 0xf53   : > { %v6853_v46 = vpop.f32.mrf.mxu1 }
 0xf54   : > { %v6854_v51 = vadd.f32 %v7426_v32, %v6853_v46  ;;  %8112 = vmatprep.mubr.f32.mxu0 %v6866_v20  ;;  %v6869_v25 = vmax.f32 %v6859_v15, 0.0 }
 0xf55   : > { %8113 = vmatmul.mubr.f32.gmra.mxu0 %v6867_v31 }
 0xf56   : > { %v6868_v61 = vmax.f32 %v6854_v51, 0.0 }
 0xf58   : > { %8115 = vmatprep.mubr.f32.mxu0 %v6868_v61 }
 0xf59   : > { %8116 = vmatmul.mubr.f32.gmra.mxu0 %v6869_v25 }
0x1008   : > { %v8108_v26 = vpop.f32.mrf.mxu0 }
0x1009   : > { %v6965_v4 = vadd.f32 %v8108_v26, %v10005_v36 }
0x100a   : > { %v6959_v48 = vpop.f32.mrf.mxu0 }
0x100b   : > { %v6999_v53 = vadd.f32 %v6965_v4, %v9842_v57  ;;  %v6960_v41 = vadd.f32 %v10005_v36, %v6959_v48 }
0x100d   : > { %v6998_v45 = vadd.f32 %v6960_v41, %v9845_v11  ;;  %v7014_v24 = vrot.slane %v6999_v53, 7  ;;  %v7088_v44 = vrot.slane %v6999_v53, 3  ;;  %v7120_v10 = vrot.slane %v6999_v53, 5 }
0x100e   : > { %v7103_v56 = vrot.slane %v6999_v53, 4  ;;  %v7071_v33 = vrot.slane %v6999_v53, 2  ;;  %v7054_v54 = vrot.slane %v6999_v53, 1  ;;  %v7137_v49 = vrot.slane %v6999_v53, 6 }
0x100f   : > { %v7119_v38 = vrot.slane %v6998_v45, 6  ;;  %v10012_v55 = vsel %vm7015_vm6, %v7014_v24, %v6998_v45  ;;  %v7087_v28 = vrot.slane %v6998_v45, 4  ;;  %v7036_v21 = vrot.slane %v6998_v45, 1 }
0x1010   : > { %v7102_v0 = vrot.slane %v6998_v45, 5  ;;  %v7070_v42 = vrot.slane %v6998_v45, 3  ;;  %v7053_v1 = vrot.slane %v6998_v45, 2  ;;  %v7136_v59 = vrot.slane %v6998_v45, 7 }
0x1011   : > { %v8111_v50 = vpop.f32.mrf.mxu0  ;;  %v10016_v11 = vsel %vm7015_vm6, %v7088_v44, %v7087_v28  ;;  %v7121_v7 = vsel %vm7015_vm6, %v7120_v10, %v7119_v38  ;;  %v7037_v12 = vsel %vm7015_vm6, %v6999_v53, %v7036_v21 }
0x1012   : > { %v6975_v57 = vadd.f32 %v8111_v50, %v10005_v36  ;;  %v7104_v27 = vsel %vm7015_vm6, %v7103_v56, %v7102_v0  ;;  %v7072_v35 = vsel %vm7015_vm6, %v7071_v33, %v7070_v42  ;;  %v7055_v32 = vsel %vm7015_vm6, %v7054_v54, %v7053_v1 }
0x1013   : > { %v6969_v8 = vpop.f32.mrf.mxu0  ;;  %v10033_v2 = vsel %vm7015_vm6, %v7137_v49, %v7136_v59 }
0x1014   : > { %v10019_v5 = vadd.f32 %v6975_v57, %v9850_v19  ;;  %v6970_v34 = vadd.f32 %v10005_v36, %v6969_v8 }
0x1015   : > { %v8114_v30 = vpop.f32.mrf.mxu0 }
0x1016   : > { %v10028_v60 = vadd.f32 %v6970_v34, %v9855_v17  ;;  %v6985_v19 = vadd.f32 %v8114_v30, %v10005_v36  ;;  %v7124_v37 = vrot.slane %v10019_v5, 3  ;;  %v7040_v63 = vrot.slane %v10019_v5, 6 }
0x1017   : > { %v6979_v3 = vpop.f32.mrf.mxu0  ;;  %v7107_v6 = vrot.slane %v10019_v5, 2  ;;  %v7057_v47 = vrot.slane %v10019_v5, 7  ;;  %v7141_v9 = vrot.slane %v10019_v5, 4 }
0x1018   : > { %v10040_v17 = vadd.f32 %v6985_v19, %v9860_v18  ;;  %v6980_v22 = vadd.f32 %v10005_v36, %v6979_v3  ;;  %v7122_v13 = vrot.slane %v10028_v60, 4  ;;  %v7038_v52 = vrot.slane %v10028_v60, 7 }
0x1019   : > { %v8117_v39 = vpop.f32.mrf.mxu0  ;;  %v7105_v16 = vrot.slane %v10028_v60, 3  ;;  %v7073_v14 = vrot.slane %v10028_v60, 1  ;;  %v7056_v62 = vsel %vm7018_vm7, %v10028_v60, %v7055_v32  ;;  %v7139_v58 = vrot.slane %v10028_v60, 5 }
0x101a   : > { %v10051_v43 = vadd.f32 %v6980_v22, %v9863_v29  ;;  %v6995_v18 = vadd.f32 %v8117_v39, %v10005_v36  ;;  %v7123_v20 = vsel %vm7018_vm7, %v7122_v13, %v7121_v7  ;;  %v7128_v31 = vrot.slane %v10040_v17, 1 }
0x101b   : > { %v6989_v15 = vpop.f32.mrf.mxu0  ;;  %v7125_v46 = vsel %vm7021_vm8, %v7124_v37, %v7123_v20  ;;  %v7039_v51 = vsel %vm7018_vm7, %v7038_v52, %v7037_v12  ;;  %v7044_v61 = vrot.slane %v10040_v17, 4  ;;  %v7106_v25 = vsel %vm7018_vm7, %v7105_v16, %v7104_v27 }
0x101c   : > { %v10061_v26 = vadd.f32 %v6995_v18, %v9870_v40  ;;  %v6990_v29 = vadd.f32 %v10005_v36, %v6989_v15  ;;  %v7126_v4 = vrot.slane %v10051_v43, 2  ;;  %v7041_v48 = vsel %vm7021_vm8, %v7040_v63, %v7039_v51 }
0x101d   : > { %v7042_v53 = vrot.slane %v10051_v43, 5  ;;  %v7108_v41 = vsel %vm7021_vm8, %v7107_v6, %v7106_v25  ;;  %v7109_v45 = vrot.slane %v10051_v43, 1  ;;  %v7074_v24 = vsel %vm7018_vm7, %v7073_v14, %v7072_v35 }
0x101e   : > { %v10071_v38 = vadd.f32 %v6990_v29, %v9873_v23  ;;  %v7127_v40 = vsel %vm7024_vm9, %v7126_v4, %v7125_v46  ;;  %v7131_v28 = vrot.slane %v10061_v26, 7  ;;  %v7048_v36 = vrot.slane %v10061_v26, 2 }
0x101f   : > { %v7129_v44 = vsel %vm7027_vm11, %v7128_v31, %v7127_v40  ;;  %v7043_v50 = vsel %vm7024_vm9, %v7042_v53, %v7041_v48  ;;  %v7110_v21 = vsel %vm7024_vm9, %v7109_v45, %v7108_v41  ;;  %v7114_v0 = vrot.slane %v10061_v26, 6 }
0x1020   : > { %v7130_v42 = vsel %vm7030_vm10, %v10071_v38, %v7129_v44  ;;  %v7045_v23 = vsel %vm7027_vm11, %v7044_v61, %v7043_v50  ;;  %v7046_v1 = vrot.slane %v10071_v38, 3  ;;  %v7111_v57 = vsel %vm7027_vm11, %v10040_v17, %v7110_v21 }
0x1021   : > { %v7132_v10 = vsel %vm7033_vm12, %v7131_v28, %v7130_v42  ;;  %v7112_v59 = vrot.slane %v10071_v38, 7  ;;  %v7075_v8 = vsel %vm7021_vm8, %v10019_v5, %v7074_v24  ;;  %v7076_v56 = vrot.slane %v10051_v43, 7 }
0x1022   : > { %7133 = vrot.lane.b32.xlu1 %v7132_v10, %s8571_s24  ;;  %v7047_v33 = vsel %vm7030_vm10, %v7046_v1, %v7045_v23  ;;  %v7078_v54 = vrot.slane %v10040_v17, 6  ;;  %v7080_v34 = vrot.slane %v10071_v38, 5  ;;  %v7082_v7 = vrot.slane %v10061_v26, 4 }
0x1023   : > { %v7049_v49 = vsel %vm7033_vm12, %v7048_v36, %v7047_v33  ;;  %v7113_v30 = vsel %vm7030_vm10, %v7112_v59, %v7111_v57  ;;  %v7077_v12 = vsel %vm7024_vm9, %v7076_v56, %v7075_v8  ;;  %v7058_v27 = vsel %vm7021_vm8, %v7057_v47, %v7056_v62 }
0x1024   : > { %7050 = vrot.lane.b32.xlu0 %v7049_v49, %s8572_s27  ;;  %v7115_v35 = vsel %vm7033_vm12, %v7114_v0, %v7113_v30  ;;  %v7079_v32 = vsel %vm7027_vm11, %v7078_v54, %v7077_v12  ;;  %v7059_v19 = vrot.slane %v10051_v43, 6  ;;  %v7061_v37 = vrot.slane %v10040_v17, 5 }
0x1025   : > { %v7081_v3 = vsel %vm7030_vm10, %v7080_v34, %v7079_v32  ;;  %v7063_v63 = vrot.slane %v10071_v38, 4  ;;  %v7065_v6 = vrot.slane %v10061_v26, 3  ;;  %v7140_v22 = vsel %vm7018_vm7, %v7139_v58, %v10033_v2 }
0x1026   : > { %7116 = vrot.lane.b32.xlu1 %v7115_v35, %s8572_s27  ;;  %v7083_v47 = vsel %vm7033_vm12, %v7082_v7, %v7081_v3  ;;  %v7060_v13 = vsel %vm7024_vm9, %v7059_v19, %v7058_v27  ;;  %v7142_v52 = vsel %vm7021_vm8, %v7141_v9, %v7140_v22  ;;  %v7143_v39 = vrot.slane %v10051_v43, 3  ;;  %s8487_s27 = sshll.u32 %s8574_s17, 4  ;;  %s8488_s27 = int_to_ptr.vmem [resolvable:$false] %s8487_s27 }
0x1027   : > { %v7062_v16 = vsel %vm7027_vm11, %v7061_v37, %v7060_v13  ;;  %v7145_v14 = vrot.slane %v10040_v17, 2  ;;  %v7147_v62 = vrot.slane %v10071_v38, 1  ;;  %v7017_v18 = vrot.slane %v10028_v60, 6  ;;  %p8490_p4 = scmp.lt.s32.totalorder %s7179_s28, %s8488_s27 }
0x1028   : > { %7084 = vrot.lane.b32.xlu0 %v7083_v47, %s8573_s20  ;;  %v7064_v2 = vsel %vm7030_vm10, %v7063_v63, %v7062_v16  ;;  %v7144_v58 = vsel %vm7024_vm9, %v7143_v39, %v7142_v52  ;;  %v7020_v20 = vrot.slane %v10019_v5, 5  ;;  %v7023_v9 = vrot.slane %v10051_v43, 4 }
0x1029   : > { %v7066_v31 = vsel %vm7033_vm12, %v7065_v6, %v7064_v2  ;;  %v7146_v15 = vsel %vm7027_vm11, %v7145_v14, %v7144_v58  ;;  %v7019_v46 = vsel %vm7018_vm7, %v7017_v18, %v10012_v55  ;;  %v7026_v51 = vrot.slane %v10040_v17, 3 }
0x102a   : > { %7067 = vrot.lane.b32.xlu1 %v7066_v31, %s8571_s24  ;;  %v7148_v61 = vsel %vm7030_vm10, %v7147_v62, %v7146_v15  ;;  %v7022_v25 = vsel %vm7021_vm8, %v7020_v20, %v7019_v46  ;;  %v7029_v29 = vrot.slane %v10071_v38, 2  ;;  %v7090_v4 = vrot.slane %v10028_v60, 2  ;;  %s8483_s24 = scalar_lea.vmem %s7179_s28, 256 }
0x102b   : > { %v7025_v48 = vsel %vm7024_vm9, %v7023_v9, %v7022_v25  ;;  %v7092_v53 = vrot.slane %v10019_v5, 1  ;;  %v7095_v41 = vrot.slane %v10040_v17, 7  ;;  %v7032_v45 = vrot.slane %v10061_v26, 1  ;;  %p8484_p9 = scmp.ne.s32.totalorder %s7179_s28, %s8483_s24 }
0x102c   : > { %v7028_v55 = vsel %vm7027_vm11, %v7026_v51, %v7025_v48  ;;  %v7091_v24 = vsel %vm7018_vm7, %v7090_v4, %v10016_v11  ;;  %v7097_v40 = vrot.slane %v10071_v38, 6  ;;  %v7149_v28 = vsel %vm7033_vm12, %v10061_v26, %v7148_v61 }
0x102d   : > { %v7031_v60 = vsel %vm7030_vm10, %v7029_v29, %v7028_v55  ;;  %v7093_v36 = vsel %vm7021_vm8, %v7092_v53, %v7091_v24  ;;  %v7099_v11 = vrot.slane %v10061_v26, 5  ;;  %p8485_p12 = pnand %p8484_p9, %p8688_p5 }
0x102e   : > { %7150 = vrot.lane.b32.xlu1 %v7149_v28, %s8573_s20  ;;  %v7034_v5 = vsel %vm7033_vm12, %v7032_v45, %v7031_v60  ;;  %v7094_v17 = vsel %vm7024_vm9, %v10051_v43, %v7093_v36  ;;  %s8489_s20 = scalar_lea.vmem %s8488_s27, 512 }
0x102f   : > { %v7096_v44 = vsel %vm7027_vm11, %v7095_v41, %v7094_v17  ;;  %p8486_p13 = pneg %p8485_p12  ;;  %p8491_p7 = scmp.lt.s32.totalorder %s8489_s20, %s8483_s24 }
0x1030   : > { %v7098_v38 = vsel %vm7030_vm10, %v7097_v40, %v7096_v44 }
0x1031   : > { %v7100_v50 = vsel %vm7033_vm12, %v7099_v11, %v7098_v38  ;;  %p8492_p8 = por %p8491_p7, %p8490_p4 }
0x1033   : > { %p8493_p11 = pnand %p8492_p8, %p8486_p13 }
0x1094   : > { %v7134_v21 = vpop.permute.xlu1 %7133 }
0x1096   : > { %v7051_v0 = vpop.permute.xlu0 %7050 }
0x1097   : > { %v7153_v23 = vsel %vm535_vm0, %v7034_v5, %v7051_v0 }
0x1098   : > { %v7117_v42 = vpop.permute.xlu1 %7116 }
0x1099   : > { %v7158_v43 = vsel %vm535_vm0, %v7100_v50, %v7117_v42 }
0x109a   : > { %v7085_v57 = vpop.permute.xlu0 %7084  ;;  %v7159_v59 = vsel %vm7154_vm14, %v7158_v43, %v7134_v21 }
0x109c   : > { %v7068_v1 = vpop.permute.xlu1 %7067 }
0x109d   : > { %v7155_v10 = vsel %vm7154_vm14, %v7153_v23, %v7068_v1 }
0x109e   : > { %v7157_v26 = vsel %vm7156_vm13, %v7155_v10, %v7085_v57 }
0x109f   : > { %7161 = vst [vmem:[%s520_s25] sm:$0xff] %v7157_v26 }
0x10a0   : > { %v7151_v8 = vpop.permute.xlu1 %7150 }
0x10a1   : > { %v7160_v56 = vsel %vm7156_vm13, %v7159_v59, %v7151_v8 }
0x10a2   : > { %7162 = vst [vmem:[%s520_s25 + $0x8] sm:$0xff] %v7160_v56 }
0x10a3   : > { %8496 = shalt.err (!%p8493_p11)
}
0x10a4   : > { %s8497_s22 = scalar_lea.hbm %s10160_s18, 256  ;;  %s8501_s25 = scalar_lea.hbm %s10210_s14, 512 }
0x10a5   : > { %p8498_p0 = scmp.ne.s32.totalorder %s10160_s18, %s8497_s22  ;;  %p8502_p3 = scmp.lt.s32.totalorder %s10160_s18, %s10210_s14 }
0x10a6   : > { %p8503_p10 = scmp.lt.s32.totalorder %s8501_s25, %s8497_s22 }
0x10a7   : > { %p8499_p2 = pnand %p8498_p0, %p8688_p5 }
0x10a8   : > { %p8504_p9 = por %p8503_p10, %p8502_p3 }
0x10a9   : > { %p8500_p1 = pneg %p8499_p2 }
0x10ab   : > { %p8505_p12 = pnand %p8504_p9, %p8500_p1 }
0x10ad   : > { %8508 = shalt.err (!%p8505_p12)
}
0x10ae   : > { %8134 = dma.vmem_to_hbm [thread:$0]  (%p8688_p5), %s7179_s28, 256, %s10160_s18, %s7164_s29  }
0x10af PF: > { %s10227_s24 = sld [smem:[#allocation15_spill]]  ;;  %p8161_p13 = scmp.ge.s32.totalorder %s8555_s16, 2 }
0x10b1   : > { %p8150_p4 = pnand %p8161_p13, %p8692_p6 }
0x10b3   : > { %p8151_p7 = pneg %p8150_p4 }
0x10b5   : > { %s7190_s27 = sand.u32 1, %s10227_s24  }
0x10b6   : > { %s7191_s20 = scalar_lea.sflag [#allocation4], %s7190_s27 }
0x10b7   : > { %8538 = dma.done.wait (%p8151_p7), %s7191_s20, 256  }
0x10b8   : > { %8540 = vsyncadd (%p8151_p7), %s7191_s20, 4294967040  ;;  %s10229_s16 = sld [smem:[#allocation17_spill]]  ;;  %s10232_s29 = smov %s8547_s30 }
0x10b9   : > { %s10230_s22 = sld [smem:[#allocation16_spill]] }
0x10ba   : > { %s10231_s15 = sld [smem:[#allocation18_spill]] }
0x10be   : > { %p27_p8 = scmp.ge.s32.totalorder %s10229_s16, 4  }
0x10bf   : > { %s10233_s30 = smov %s10230_s22 }
0x10c0   :  { %29 = sbr.rel (!%p27_p8) target bundleno = 6 (0x6), region = 128 }
0x10c5   :  { %7196 = vsyncpa [#allocation3], 1 }
0x10c6   :  { %7198 = vsyncpa [#allocation3 + $0x1], 1 }
0x10c7   :  { %7199 = vsyncpa [#allocation6], 1 }
0x10c8   :  { %7200 = vsyncpa [#allocation9], 1 }
0x10c9   :  { %7201 = vsyncpa [#allocation4], 1 }
0x10ca   :  { %7203 = vsyncpa [#allocation4 + $0x1], 1 }

</bundles_post_ra>
